<compile_context>
chip_gen: v5e
topology: v5e:2x2
jax: 0.10.0
libtpu: 0.0.40
codegen_flags: <defaults>
</compile_context>

<pallas_src>
import jax
import jax.numpy as jnp
from jax.experimental import pallas as pl
from jax.experimental.pallas import tpu as pltpu

LANE = 128
SUBLANE_PACK = 16          # bf16 sublane packing: keep padded width a multiple


def _round_up(x, m):
    return ((x + m - 1) // m) * m


# -----------------------------------------------------------------------------
# pltpu.roll direction probe (tiny one-off kernel).  Guarantees the column-shift
# direction is right regardless of the rotate convention; falls back to a
# jnp.roll (concat-based) shift if pltpu.roll is unavailable.
# -----------------------------------------------------------------------------
_ROLL_MODE = None


def _roll_mode():
    global _ROLL_MODE
    if _ROLL_MODE is not None:
        return _ROLL_MODE

    def probe_kernel(x_ref, o_ref):
        o_ref[...] = pltpu.roll(x_ref[...], 1, axis=0)

    try:
        rows = 256
        x = jnp.broadcast_to(jnp.arange(rows, dtype=jnp.float32)[:, None],
                             (rows, LANE))
        out = pl.pallas_call(
            probe_kernel,
            out_shape=jax.ShapeDtypeStruct((rows, LANE), jnp.float32))(x)
        v = float(jax.block_until_ready(out)[0, 0])
        if v == rows - 1:          # matches jnp.roll: new[0] = old[-1]
            _ROLL_MODE = "jnp"
        elif v == 1.0:             # opposite rotate direction
            _ROLL_MODE = "flipped"
        else:
            _ROLL_MODE = "concat"
    except Exception:
        _ROLL_MODE = "concat"
    return _ROLL_MODE


def _shift_up(v, k, mode):
    """y[i] = v[i + k] along axis 0 (wrapped rows land in discarded columns)."""
    if k == 0:
        return v
    if mode == "jnp":
        return pltpu.roll(v, v.shape[0] - k, axis=0)
    if mode == "flipped":
        return pltpu.roll(v, k, axis=0)
    return jnp.roll(v, -k, axis=0)


# -----------------------------------------------------------------------------
# Parameter folding / padding helpers
# -----------------------------------------------------------------------------
def fold_bn(conv_bias, gamma, beta, mean, var, eps=1e-5):
    scale = gamma / jnp.sqrt(var + eps)
    bias = (conv_bias - mean) * scale + beta
    return scale, bias


def _pad_vec(v, n):
    return jnp.pad(v, (0, n - v.shape[0])).reshape(1, n).astype(jnp.float32)


def _cat_kw(w, ci_p, co_p):
    """(3,3,Ci,Co) HWIO -> (3, ci_p, 3*co_p) bf16 (kw taps concatenated into N)."""
    wp = jnp.pad(w, ((0, 0), (0, 0), (0, ci_p - w.shape[2]),
                     (0, co_p - w.shape[3])))
    return jnp.concatenate([wp[:, 0], wp[:, 1], wp[:, 2]],
                           axis=-1).astype(jnp.bfloat16)


def _vmem_capacity_bytes():
    try:
        return int(pltpu.get_tpu_info().vmem_capacity_bytes)
    except Exception:
        return 64 * 1024 * 1024    # conservative fallback (v7x per-core VMEM)


def _pick_tile_h(H, W, Wp, cin_p, cmid_p, cout_p, weight_bytes, vmem_cap):
    """Largest tile_h (fewest grid steps) whose per-step footprint fits VMEM."""
    usable = max(int(vmem_cap * 0.6) - weight_bytes - (1 << 20), 2 << 20)
    for T in range(1, H + 1):
        th = -(-H // T)
        l1, l2 = (th + 2) * Wp, th * Wp
        xbuf = 2 * (th + 4) * Wp * cin_p * 2           # double-buffered bf16 strips
        outb = 2 * th * W * cout_p * 4                 # double-buffered out tile
        inter = (l1 * cmid_p * 6 + l1 * 3 * cmid_p * 4     # acc1 + h + conv1 result
                 + l2 * cout_p * 4 + l2 * 3 * cout_p * 4)   # acc2 + conv2 result
        if xbuf + outb + inter <= usable:
            return th
    return 1


# -----------------------------------------------------------------------------
# Fused DoubleConv forward
# -----------------------------------------------------------------------------
def double_conv_forward(x_nchw, params, tile_h=None):
    """DoubleConv forward. x_nchw: (N, Cin, H, W) -> (N, Cout, H, W)."""
    x = jnp.transpose(x_nchw, (0, 2, 3, 1))                  # NCHW -> NHWC
    N, H, W, Cin = x.shape
    Cmid = params["w1"].shape[-1]
    Cout = params["w2"].shape[-1]
    cin_p, cmid_p, cout_p = (_round_up(c, LANE) for c in (Cin, Cmid, Cout))
    Wp = _round_up(W + 4, SUBLANE_PACK)

    # Fold eval-mode BN + conv bias into per-channel affine; bf16 weights.
    s1, b1 = fold_bn(params["b1"], params["g1"], params["beta1"],
                     params["m1"], params["v1"])
    s2, b2 = fold_bn(params["b2"], params["g2"], params["beta2"],
                     params["m2"], params["v2"])
    w1c = _cat_kw(params["w1"], cin_p, cmid_p)     # (3, cin_p, 3*cmid_p) bf16
    w2c = _cat_kw(params["w2"], cmid_p, cout_p)    # (3, cmid_p, 3*cout_p) bf16
    s1p, b1p = _pad_vec(s1, cmid_p), _pad_vec(b1, cmid_p)
    s2p, b2p = _pad_vec(s2, cout_p), _pad_vec(b2, cout_p)

    vmem_cap = _vmem_capacity_bytes()
    weight_bytes = 2 * (w1c.size + w2c.size) * 2 + 4 * (cmid_p + cout_p) * 4
    if tile_h is None:
        th = _pick_tile_h(H, W, Wp, cin_p, cmid_p, cout_p, weight_bytes, vmem_cap)
    else:
        th = max(1, min(int(tile_h), H))
    T = -(-H // th)
    Hp = T * th

    # 2-row/col halo for the two stacked 3x3 convs, rows padded to Hp, width to
    # Wp, channels to a lane multiple.  bf16 halves input HBM traffic.
    xp = jnp.pad(x, ((0, 0), (2, 2 + Hp - H), (2, Wp - W - 2), (0, cin_p - Cin)))
    xp = xp.astype(jnp.bfloat16).reshape(N * (Hp + 4) * Wp, cin_p)

    strip = (th + 4) * Wp          # flat rows per halo strip
    L1 = (th + 2) * Wp             # conv1 extended region (1-halo for conv2)
    L2 = th * Wp                   # conv2 output region
    roll_mode = _roll_mode()

    def kernel(x_hbm, w1_ref, s1_ref, b1_ref, w2_ref, s2_ref, b2_ref,
               o_ref, xbuf, sem):
        n = pl.program_id(0)
        t = pl.program_id(1)
        num_t = pl.num_programs(1)
        slot = t % 2

        def start_fetch(tt, sl):
            start = (n * (Hp + 4) + tt * th) * Wp
            start = pl.multiple_of(start, 8)
            pltpu.make_async_copy(x_hbm.at[pl.ds(start, strip)],
                                  xbuf.at[sl], sem.at[sl]).start()

        # Prime the input pipeline on the first row tile of this batch image
        # (the prefetch chain is per-image, so megacore splitting the batch
        # axis across cores stays correct).
        @pl.when(t == 0)
        def _():
            start_fetch(0, 0)

        # Wait for the current strip, then prefetch the next one into the
        # other buffer while we compute on this one.
        pltpu.make_async_copy(x_hbm.at[pl.ds(0, strip)],
                              xbuf.at[slot], sem.at[slot]).wait()

        @pl.when(t + 1 < num_t)
        def _():
            start_fetch(t + 1, 1 - slot)

        x_flat = xbuf[slot]                      # ((th+4)*Wp, cin_p) bf16

        def conv3x3(src, w_ref, rows_out, c_out_p):
            # 3 aligned matmuls (kw taps packed into N) + XLU column shifts.
            acc = None
            for kh in range(3):
                lhs = src[kh * Wp:kh * Wp + rows_out, :]
                res = jnp.dot(lhs, w_ref[kh],
                              preferred_element_type=jnp.float32)
                for kw in range(3):
                    contrib = res[:, kw * c_out_p:(kw + 1) * c_out_p]
                    contrib = _shift_up(contrib, kw, roll_mode)
                    acc = contrib if acc is None else acc + contrib
            return acc

        # ---- conv1 + BN1 + ReLU on the (th+2)-row extended region ----
        acc1 = conv3x3(x_flat, w1_ref, L1, cmid_p)
        act = jnp.maximum(acc1 * s1_ref[...] + b1_ref[...], 0.0)

        # conv2's zero padding: zero every position outside the real image
        # (absolute image row handles ragged bottom tiles of non-divisor H).
        act = act.reshape(th + 2, Wp, cmid_p)
        row = jax.lax.broadcasted_iota(jnp.int32, (th + 2, Wp, 1), 0)
        col = jax.lax.broadcasted_iota(jnp.int32, (th + 2, Wp, 1), 1)
        img_row = t * th - 1 + row
        valid = (img_row >= 0) & (img_row < H) & (col >= 1) & (col <= W)
        h = jnp.where(valid, act, 0.0).astype(jnp.bfloat16).reshape(L1, cmid_p)

        # ---- conv2 + BN2 + ReLU on the in-VMEM intermediate ----
        acc2 = conv3x3(h, w2_ref, L2, cout_p)
        y = jnp.maximum(acc2 * s2_ref[...] + b2_ref[...], 0.0)
        y = y.reshape(th, Wp, cout_p)[:, :W, :]
        o_ref[...] = y.reshape(1, th, W, cout_p).astype(o_ref.dtype)

    flops = 2 * 9 * N * T * (L1 * cin_p * cmid_p + L2 * cmid_p * cout_p)
    bytes_accessed = (xp.size * 2 + N * Hp * W * cout_p * 4
                      + (w1c.size + w2c.size) * 2 + 4 * (cmid_p + cout_p) * 4)

    out = pl.pallas_call(
        kernel,
        out_shape=jax.ShapeDtypeStruct((N, Hp, W, cout_p), jnp.float32),
        grid=(N, T),
        in_specs=[
            pl.BlockSpec(memory_space=pl.ANY),                    # x stays in HBM
            pl.BlockSpec((3, cin_p, 3 * cmid_p), lambda n, t: (0, 0, 0)),
            pl.BlockSpec((1, cmid_p), lambda n, t: (0, 0)),
            pl.BlockSpec((1, cmid_p), lambda n, t: (0, 0)),
            pl.BlockSpec((3, cmid_p, 3 * cout_p), lambda n, t: (0, 0, 0)),
            pl.BlockSpec((1, cout_p), lambda n, t: (0, 0)),
            pl.BlockSpec((1, cout_p), lambda n, t: (0, 0)),
        ],
        out_specs=pl.BlockSpec((1, th, W, cout_p), lambda n, t: (n, t, 0, 0)),
        scratch_shapes=[
            pltpu.VMEM((2, strip, cin_p), jnp.bfloat16),   # double-buffered strip
            pltpu.SemaphoreType.DMA((2,)),
        ],
        compiler_params=pltpu.CompilerParams(
            dimension_semantics=("parallel", "arbitrary"),
            vmem_limit_bytes=int(vmem_cap * 0.9)),
        cost_estimate=pl.CostEstimate(flops=flops, transcendentals=0,
                                      bytes_accessed=bytes_accessed),
    )(xp, w1c, s1p, b1p, w2c, s2p, b2p)

    out = out[:, :H, :, :Cout]                              # drop row/channel pad
    return jnp.transpose(out, (0, 3, 1, 2))                 # NHWC -> NCHW


# -----------------------------------------------------------------------------
# Params + pure-JAX reference
# -----------------------------------------------------------------------------
def make_params(key, in_channels, out_channels, mid_channels=None):
    if not mid_channels:
        mid_channels = out_channels
    ks = jax.random.split(key, 10)
    f32 = jnp.float32
    return {
        "w1": jax.random.normal(ks[0], (3, 3, in_channels, mid_channels), f32) * 0.1,
        "b1": jax.random.normal(ks[1], (mid_channels,), f32) * 0.1,
        "g1": jax.random.uniform(ks[2], (mid_channels,), f32, 0.5, 1.5),
        "beta1": jax.random.normal(ks[3], (mid_channels,), f32) * 0.1,
        "m1": jax.random.normal(ks[4], (mid_channels,), f32) * 0.1,
        "v1": jax.random.uniform(ks[4], (mid_channels,), f32, 0.5, 1.5),
        "w2": jax.random.normal(ks[5], (3, 3, mid_channels, out_channels), f32) * 0.1,
        "b2": jax.random.normal(ks[6], (out_channels,), f32) * 0.1,
        "g2": jax.random.uniform(ks[7], (out_channels,), f32, 0.5, 1.5),
        "beta2": jax.random.normal(ks[8], (out_channels,), f32) * 0.1,
        "m2": jax.random.normal(ks[9], (out_channels,), f32) * 0.1,
        "v2": jax.random.uniform(ks[9], (out_channels,), f32, 0.5, 1.5),
    }


def reference_double_conv(x_nchw, params):
    """Pure-JAX f32 reference ((conv3x3 -> eval BN -> ReLU) * 2)."""
    def step(x, w, b, g, beta, m, v, eps=1e-5):
        y = jax.lax.conv_general_dilated(
            x, w, window_strides=(1, 1), padding=((1, 1), (1, 1)),
            dimension_numbers=("NHWC", "HWIO", "NHWC"))
        y = y + b
        y = (y - m) / jnp.sqrt(v + eps) * g + beta
        return jnp.maximum(y, 0.0)

    x = jnp.transpose(x_nchw, (0, 2, 3, 1))
    h = step(x, params["w1"], params["b1"], params["g1"], params["beta1"],
             params["m1"], params["v1"])
    y = step(h, params["w2"], params["b2"], params["g2"], params["beta2"],
             params["m2"], params["v2"])
    return jnp.transpose(y, (0, 3, 1, 2))


if __name__ == "__main__":
    key = jax.random.PRNGKey(0)
    k_x, k_p = jax.random.split(key)

    N, Cin, H, W = 2, 4, 16, 16
    Cout = 8

    x = jax.random.normal(k_x, (N, Cin, H, W), jnp.float32)
    params = make_params(k_p, Cin, Cout)
    ref = reference_double_conv(x, params)

    def check(out, name):
        assert out.shape == (N, Cout, H, W), name
        err = float(jnp.max(jnp.abs(out - ref)))
        assert jnp.allclose(out, ref, rtol=6e-2, atol=6e-2), (name, err)

    # Multi-tile path: exercises DMA double-buffering + first/interior/last tiles.
    check(jax.block_until_ready(double_conv_forward(x, params, tile_h=4)), "tile_h=4")
    # Non-divisor tile height: exercises padded rows + absolute-row border mask.
    check(jax.block_until_ready(double_conv_forward(x, params, tile_h=5)), "tile_h=5")
    # Auto-tiled path (whole image fits one row tile at this size).
    check(jax.block_until_ready(double_conv_forward(x, params)), "auto")

    print("KERNEL_OK")
</pallas_src>

<mosaic_0001>
module attributes {stable_mosaic.version = 11 : i64} {
  func.func @probe_kernel(%arg0: memref<256x128xf32, #tpu.memory_space<vmem>>, %arg1: memref<256x128xf32, #tpu.memory_space<vmem>>) attributes {dimension_semantics = [], scalar_prefetch = 0 : i64, scratch_operands = 0 : i64, tpu.core_type = #tpu.core_type<tc>} {
    %c0 = arith.constant 0 : index
    %c0_0 = arith.constant 0 : index
    %0 = vector.load %arg0[%c0, %c0_0] : memref<256x128xf32, #tpu.memory_space<vmem>>, vector<256x128xf32>
    %c1_i32 = arith.constant 1 : i32
    %1 = tpu.dynamic_rotate %0 by %c1_i32 dim 0 : vector<256x128xf32>, i32 -> vector<256x128xf32>
    %c0_1 = arith.constant 0 : index
    %c0_2 = arith.constant 0 : index
    %2 = vector.load %arg1[%c0_1, %c0_2] : memref<256x128xf32, #tpu.memory_space<vmem>>, vector<256x128xf32>
    tpu.vector_store %arg1[%c0_1, %c0_2], %1 {strides = array<i32>} : memref<256x128xf32, #tpu.memory_space<vmem>>, vector<256x128xf32>,
    return
  }
}

module attributes {stable_mosaic.version = 11 : i64} {
  func.func @kernel(%arg0: i32, %arg1: i32, %arg2: memref<1280x128xbf16, #tpu.memory_space<any>>, %arg3: memref<3x128x384xbf16, #tpu.memory_space<vmem>>, %arg4: memref<1x128xf32, #tpu.memory_space<vmem>>, %arg5: memref<1x128xf32, #tpu.memory_space<vmem>>, %arg6: memref<3x128x384xbf16, #tpu.memory_space<vmem>>, %arg7: memref<1x128xf32, #tpu.memory_space<vmem>>, %arg8: memref<1x128xf32, #tpu.memory_space<vmem>>, %arg9: memref<1x4x16x128xf32, #tpu.memory_space<vmem>>, %arg10: memref<2x256x128xbf16, #tpu.memory_space<vmem>>, %arg11: memref<2x!tpu.dma_semaphore, #tpu.memory_space<semaphore_mem>>) attributes {dimension_semantics = [#tpu.dimension_semantics<parallel>, #tpu.dimension_semantics<arbitrary>], iteration_bounds = array<i64: 2, 4>, scalar_prefetch = 0 : i64, scratch_operands = 2 : i64, tpu.core_type = #tpu.core_type<tc>, window_params = [{}, {pipeline_mode = #tpu.pipeline_mode<synchronous>, transform_indices = @transform_1, window_bounds = array<i64: 3, 128, 384>}, {pipeline_mode = #tpu.pipeline_mode<synchronous>, transform_indices = @transform_2, window_bounds = array<i64: 1, 128>}, {pipeline_mode = #tpu.pipeline_mode<synchronous>, transform_indices = @transform_3, window_bounds = array<i64: 1, 128>}, {pipeline_mode = #tpu.pipeline_mode<synchronous>, transform_indices = @transform_4, window_bounds = array<i64: 3, 128, 384>}, {pipeline_mode = #tpu.pipeline_mode<synchronous>, transform_indices = @transform_5, window_bounds = array<i64: 1, 128>}, {pipeline_mode = #tpu.pipeline_mode<synchronous>, transform_indices = @transform_6, window_bounds = array<i64: 1, 128>}, {transform_indices = @transform_7, window_bounds = array<i64: 1, 4, 16, 128>}]} {
    %c2_i32 = arith.constant 2 : i32
    %c0_i32 = arith.constant 0 : i32
    %0 = arith.cmpi eq, %c2_i32, %c0_i32 : i32
    %c1_i32 = arith.constant 1 : i32
    %1 = arith.select %0, %c1_i32, %c2_i32 : i32
    %2 = arith.remsi %arg1, %1 : i32
    %c0_i32_0 = arith.constant 0 : i32
    %3 = arith.cmpi ne, %2, %c0_i32_0 : i32
    %c0_i32_1 = arith.constant 0 : i32
    %4 = arith.cmpi slt, %2, %c0_i32_1 : i32
    %c0_i32_2 = arith.constant 0 : i32
    %5 = arith.cmpi slt, %1, %c0_i32_2 : i32
    %6 = arith.xori %4, %5 : i1
    %7 = arith.andi %6, %3 : i1
    %8 = arith.addi %2, %1 : i32
    %9 = arith.select %7, %8, %2 : i32
    %c0_i32_3 = arith.constant 0 : i32
    %10 = arith.cmpi eq, %arg1, %c0_i32_3 : i32
    %11 = arith.extui %10 : i1 to i32
    %c0_i32_4 = arith.constant 0 : i32
    %12 = arith.cmpi ne, %11, %c0_i32_4 : i32
    scf.if %12 {
      %c20_i32 = arith.constant 20 : i32
      %163 = arith.muli %arg0, %c20_i32 : i32
      %c0_i32_53 = arith.constant 0 : i32
      %164 = arith.addi %163, %c0_i32_53 : i32
      %c32_i32 = arith.constant 32 : i32
      %165 = arith.muli %164, %c32_i32 : i32
      %166 = tpu.assume_multiple %165, 8 : i32
      %c0_i32_54 = arith.constant 0 : i32
      %c0_i32_55 = arith.constant 0 : i32
      %c0_i32_56 = arith.constant 0 : i32
      %167 = tpu.memref_slice %arg2[%166, %c0_i32_56] : memref<1280x128xbf16, #tpu.memory_space<any>> -> memref<256x128xbf16, #tpu.memory_space<any>>
      %c0_i32_57 = arith.constant 0 : i32
      %c0_i32_58 = arith.constant 0 : i32
      %168 = tpu.memref_slice %arg10[%c0_i32_54, %c0_i32_57, %c0_i32_58] : memref<2x256x128xbf16, #tpu.memory_space<vmem>> -> memref<1x256x128xbf16, #tpu.memory_space<vmem>>
      %169 = tpu.memref_squeeze %168 : memref<1x256x128xbf16, #tpu.memory_space<vmem>> -> memref<256x128xbf16, #tpu.memory_space<vmem>>
      %170 = tpu.memref_slice %arg11[%c0_i32_55] : memref<2x!tpu.dma_semaphore, #tpu.memory_space<semaphore_mem>> -> memref<1x!tpu.dma_semaphore, #tpu.memory_space<semaphore_mem>>
      %171 = tpu.memref_squeeze %170 : memref<1x!tpu.dma_semaphore, #tpu.memory_space<semaphore_mem>> -> memref<!tpu.dma_semaphore, #tpu.memory_space<semaphore_mem>>
      tpu.enqueue_dma source(%167 : memref<256x128xbf16, #tpu.memory_space<any>>) target(%169 : memref<256x128xbf16, #tpu.memory_space<vmem>>) target_semaphore(%171 : memref<!tpu.dma_semaphore, #tpu.memory_space<semaphore_mem>>)
    } else {
    }
    %c0_i32_5 = arith.constant 0 : i32
    %c0_i32_6 = arith.constant 0 : i32
    %13 = tpu.memref_slice %arg2[%c0_i32_5, %c0_i32_6] : memref<1280x128xbf16, #tpu.memory_space<any>> -> memref<256x128xbf16, #tpu.memory_space<any>>
    %c0_i32_7 = arith.constant 0 : i32
    %c0_i32_8 = arith.constant 0 : i32
    %14 = tpu.memref_slice %arg10[%9, %c0_i32_7, %c0_i32_8] : memref<2x256x128xbf16, #tpu.memory_space<vmem>> -> memref<1x256x128xbf16, #tpu.memory_space<vmem>>
    %15 = tpu.memref_squeeze %14 : memref<1x256x128xbf16, #tpu.memory_space<vmem>> -> memref<256x128xbf16, #tpu.memory_space<vmem>>
    %16 = tpu.memref_slice %arg11[%9] : memref<2x!tpu.dma_semaphore, #tpu.memory_space<semaphore_mem>> -> memref<1x!tpu.dma_semaphore, #tpu.memory_space<semaphore_mem>>
    %17 = tpu.memref_squeeze %16 : memref<1x!tpu.dma_semaphore, #tpu.memory_space<semaphore_mem>> -> memref<!tpu.dma_semaphore, #tpu.memory_space<semaphore_mem>>
    tpu.wait_dma2 semaphore(%17 : memref<!tpu.dma_semaphore, #tpu.memory_space<semaphore_mem>>) src(%13 : memref<256x128xbf16, #tpu.memory_space<any>>) dst(%15 : memref<256x128xbf16, #tpu.memory_space<vmem>>)
    %c1_i32_9 = arith.constant 1 : i32
    %18 = arith.addi %arg1, %c1_i32_9 : i32
    %c4_i32 = arith.constant 4 : i32
    %19 = arith.cmpi slt, %18, %c4_i32 : i32
    %20 = arith.extui %19 : i1 to i32
    %c0_i32_10 = arith.constant 0 : i32
    %21 = arith.cmpi ne, %20, %c0_i32_10 : i32
    scf.if %21 {
      %c1_i32_53 = arith.constant 1 : i32
      %163 = arith.addi %arg1, %c1_i32_53 : i32
      %c1_i32_54 = arith.constant 1 : i32
      %164 = arith.subi %c1_i32_54, %9 : i32
      %c20_i32 = arith.constant 20 : i32
      %165 = arith.muli %arg0, %c20_i32 : i32
      %c4_i32_55 = arith.constant 4 : i32
      %166 = arith.muli %163, %c4_i32_55 : i32
      %167 = arith.addi %165, %166 : i32
      %c32_i32 = arith.constant 32 : i32
      %168 = arith.muli %167, %c32_i32 : i32
      %169 = tpu.assume_multiple %168, 8 : i32
      %c0_i32_56 = arith.constant 0 : i32
      %170 = tpu.memref_slice %arg2[%169, %c0_i32_56] : memref<1280x128xbf16, #tpu.memory_space<any>> -> memref<256x128xbf16, #tpu.memory_space<any>>
      %c0_i32_57 = arith.constant 0 : i32
      %c0_i32_58 = arith.constant 0 : i32
      %171 = tpu.memref_slice %arg10[%164, %c0_i32_57, %c0_i32_58] : memref<2x256x128xbf16, #tpu.memory_space<vmem>> -> memref<1x256x128xbf16, #tpu.memory_space<vmem>>
      %172 = tpu.memref_squeeze %171 : memref<1x256x128xbf16, #tpu.memory_space<vmem>> -> memref<256x128xbf16, #tpu.memory_space<vmem>>
      %173 = tpu.memref_slice %arg11[%164] : memref<2x!tpu.dma_semaphore, #tpu.memory_space<semaphore_mem>> -> memref<1x!tpu.dma_semaphore, #tpu.memory_space<semaphore_mem>>
      %174 = tpu.memref_squeeze %173 : memref<1x!tpu.dma_semaphore, #tpu.memory_space<semaphore_mem>> -> memref<!tpu.dma_semaphore, #tpu.memory_space<semaphore_mem>>
      tpu.enqueue_dma source(%170 : memref<256x128xbf16, #tpu.memory_space<any>>) target(%172 : memref<256x128xbf16, #tpu.memory_space<vmem>>) target_semaphore(%174 : memref<!tpu.dma_semaphore, #tpu.memory_space<semaphore_mem>>)
    } else {
    }
    %22 = arith.index_cast %9 : i32 to index
    %c0 = arith.constant 0 : index
    %c0_11 = arith.constant 0 : index
    %23 = vector.load %arg10[%22, %c0, %c0_11] : memref<2x256x128xbf16, #tpu.memory_space<vmem>>, vector<1x256x128xbf16>
    %24 = vector.shape_cast %23 : vector<1x256x128xbf16> to vector<256x128xbf16>
    %25 = vector.extract_strided_slice %24 {offsets = [0, 0], sizes = [192, 128], strides = [1, 1]} : vector<256x128xbf16> to vector<192x128xbf16>
    %c0_12 = arith.constant 0 : index
    %c0_13 = arith.constant 0 : index
    %c0_14 = arith.constant 0 : index
    %26 = vector.load %arg3[%c0_12, %c0_13, %c0_14] : memref<3x128x384xbf16, #tpu.memory_space<vmem>>, vector<1x128x384xbf16>
    %27 = vector.shape_cast %26 : vector<1x128x384xbf16> to vector<128x384xbf16>
    %cst = arith.constant dense<0.000000e+00> : vector<192x384xf32>
    %28 = tpu.matmul %25, %27, %cst {dimension_numbers = #tpu.dot_dimension_numbers<[1], [0], [0], [1], [0, 0, 1, 1], [], []>} : vector<192x128xbf16>, vector<128x384xbf16>, vector<192x384xf32> -> vector<192x384xf32>
    %29 = vector.extract_strided_slice %28 {offsets = [0, 0], sizes = [192, 128], strides = [1, 1]} : vector<192x384xf32> to vector<192x128xf32>
    %30 = vector.extract_strided_slice %28 {offsets = [0, 128], sizes = [192, 128], strides = [1, 1]} : vector<192x384xf32> to vector<192x128xf32>
    %31 = vector.extract_strided_slice %30 {offsets = [1, 0], sizes = [191, 128], strides = [1, 1]} : vector<192x128xf32> to vector<191x128xf32>
    %32 = vector.extract_strided_slice %30 {offsets = [0, 0], sizes = [1, 128], strides = [1, 1]} : vector<192x128xf32> to vector<1x128xf32>
    %33 = tpu.concatenate %31, %32 in 0 : vector<191x128xf32>, vector<1x128xf32> -> vector<192x128xf32>
    %34 = arith.addf %29, %33 : vector<192x128xf32>
    %35 = vector.extract_strided_slice %28 {offsets = [0, 256], sizes = [192, 128], strides = [1, 1]} : vector<192x384xf32> to vector<192x128xf32>
    %36 = vector.extract_strided_slice %35 {offsets = [2, 0], sizes = [190, 128], strides = [1, 1]} : vector<192x128xf32> to vector<190x128xf32>
    %37 = vector.extract_strided_slice %35 {offsets = [0, 0], sizes = [2, 128], strides = [1, 1]} : vector<192x128xf32> to vector<2x128xf32>
    %38 = tpu.concatenate %36, %37 in 0 : vector<190x128xf32>, vector<2x128xf32> -> vector<192x128xf32>
    %39 = arith.addf %34, %38 : vector<192x128xf32>
    %40 = vector.extract_strided_slice %24 {offsets = [32, 0], sizes = [192, 128], strides = [1, 1]} : vector<256x128xbf16> to vector<192x128xbf16>
    %c1 = arith.constant 1 : index
    %c0_15 = arith.constant 0 : index
    %c0_16 = arith.constant 0 : index
    %41 = vector.load %arg3[%c1, %c0_15, %c0_16] : memref<3x128x384xbf16, #tpu.memory_space<vmem>>, vector<1x128x384xbf16>
    %42 = vector.shape_cast %41 : vector<1x128x384xbf16> to vector<128x384xbf16>
    %cst_17 = arith.constant dense<0.000000e+00> : vector<192x384xf32>
    %43 = tpu.matmul %40, %42, %cst_17 {dimension_numbers = #tpu.dot_dimension_numbers<[1], [0], [0], [1], [0, 0, 1, 1], [], []>} : vector<192x128xbf16>, vector<128x384xbf16>, vector<192x384xf32> -> vector<192x384xf32>
    %44 = vector.extract_strided_slice %43 {offsets = [0, 0], sizes = [192, 128], strides = [1, 1]} : vector<192x384xf32> to vector<192x128xf32>
    %45 = arith.addf %39, %44 : vector<192x128xf32>
    %46 = vector.extract_strided_slice %43 {offsets = [0, 128], sizes = [192, 128], strides = [1, 1]} : vector<192x384xf32> to vector<192x128xf32>
    %47 = vector.extract_strided_slice %46 {offsets = [1, 0], sizes = [191, 128], strides = [1, 1]} : vector<192x128xf32> to vector<191x128xf32>
    %48 = vector.extract_strided_slice %46 {offsets = [0, 0], sizes = [1, 128], strides = [1, 1]} : vector<192x128xf32> to vector<1x128xf32>
    %49 = tpu.concatenate %47, %48 in 0 : vector<191x128xf32>, vector<1x128xf32> -> vector<192x128xf32>
    %50 = arith.addf %45, %49 : vector<192x128xf32>
    %51 = vector.extract_strided_slice %43 {offsets = [0, 256], sizes = [192, 128], strides = [1, 1]} : vector<192x384xf32> to vector<192x128xf32>
    %52 = vector.extract_strided_slice %51 {offsets = [2, 0], sizes = [190, 128], strides = [1, 1]} : vector<192x128xf32> to vector<190x128xf32>
    %53 = vector.extract_strided_slice %51 {offsets = [0, 0], sizes = [2, 128], strides = [1, 1]} : vector<192x128xf32> to vector<2x128xf32>
    %54 = tpu.concatenate %52, %53 in 0 : vector<190x128xf32>, vector<2x128xf32> -> vector<192x128xf32>
    %55 = arith.addf %50, %54 : vector<192x128xf32>
    %56 = vector.extract_strided_slice %24 {offsets = [64, 0], sizes = [192, 128], strides = [1, 1]} : vector<256x128xbf16> to vector<192x128xbf16>
    %c2 = arith.constant 2 : index
    %c0_18 = arith.constant 0 : index
    %c0_19 = arith.constant 0 : index
    %57 = vector.load %arg3[%c2, %c0_18, %c0_19] : memref<3x128x384xbf16, #tpu.memory_space<vmem>>, vector<1x128x384xbf16>
    %58 = vector.shape_cast %57 : vector<1x128x384xbf16> to vector<128x384xbf16>
    %cst_20 = arith.constant dense<0.000000e+00> : vector<192x384xf32>
    %59 = tpu.matmul %56, %58, %cst_20 {dimension_numbers = #tpu.dot_dimension_numbers<[1], [0], [0], [1], [0, 0, 1, 1], [], []>} : vector<192x128xbf16>, vector<128x384xbf16>, vector<192x384xf32> -> vector<192x384xf32>
    %60 = vector.extract_strided_slice %59 {offsets = [0, 0], sizes = [192, 128], strides = [1, 1]} : vector<192x384xf32> to vector<192x128xf32>
    %61 = arith.addf %55, %60 : vector<192x128xf32>
    %62 = vector.extract_strided_slice %59 {offsets = [0, 128], sizes = [192, 128], strides = [1, 1]} : vector<192x384xf32> to vector<192x128xf32>
    %63 = vector.extract_strided_slice %62 {offsets = [1, 0], sizes = [191, 128], strides = [1, 1]} : vector<192x128xf32> to vector<191x128xf32>
    %64 = vector.extract_strided_slice %62 {offsets = [0, 0], sizes = [1, 128], strides = [1, 1]} : vector<192x128xf32> to vector<1x128xf32>
    %65 = tpu.concatenate %63, %64 in 0 : vector<191x128xf32>, vector<1x128xf32> -> vector<192x128xf32>
    %66 = arith.addf %61, %65 : vector<192x128xf32>
    %67 = vector.extract_strided_slice %59 {offsets = [0, 256], sizes = [192, 128], strides = [1, 1]} : vector<192x384xf32> to vector<192x128xf32>
    %68 = vector.extract_strided_slice %67 {offsets = [2, 0], sizes = [190, 128], strides = [1, 1]} : vector<192x128xf32> to vector<190x128xf32>
    %69 = vector.extract_strided_slice %67 {offsets = [0, 0], sizes = [2, 128], strides = [1, 1]} : vector<192x128xf32> to vector<2x128xf32>
    %70 = tpu.concatenate %68, %69 in 0 : vector<190x128xf32>, vector<2x128xf32> -> vector<192x128xf32>
    %71 = arith.addf %66, %70 : vector<192x128xf32>
    %c0_21 = arith.constant 0 : index
    %c0_22 = arith.constant 0 : index
    %72 = vector.load %arg4[%c0_21, %c0_22] : memref<1x128xf32, #tpu.memory_space<vmem>>, vector<1x128xf32>
    %73 = vector.broadcast %72 : vector<1x128xf32> to vector<192x128xf32>
    %74 = arith.mulf %71, %73 : vector<192x128xf32>
    %c0_23 = arith.constant 0 : index
    %c0_24 = arith.constant 0 : index
    %75 = vector.load %arg5[%c0_23, %c0_24] : memref<1x128xf32, #tpu.memory_space<vmem>>, vector<1x128xf32>
    %76 = vector.broadcast %75 : vector<1x128xf32> to vector<192x128xf32>
    %77 = arith.addf %74, %76 : vector<192x128xf32>
    %cst_25 = arith.constant 0.000000e+00 : f32
    %78 = vector.broadcast %cst_25 : f32 to vector<192x128xf32>
    %79 = arith.maximumf %77, %78 : vector<192x128xf32>
    %80 = vector.shape_cast %79 : vector<192x128xf32> to vector<6x32x128xf32>
    %81 = tpu.iota {dimensions = array<i32: 0>} : vector<6x32x1xi32>
    %82 = tpu.iota {dimensions = array<i32: 1>} : vector<6x32x1xi32>
    %c4_i32_26 = arith.constant 4 : i32
    %83 = arith.muli %arg1, %c4_i32_26 : i32
    %c1_i32_27 = arith.constant 1 : i32
    %84 = arith.subi %83, %c1_i32_27 : i32
    %85 = vector.broadcast %84 : i32 to vector<6x32x1xi32>
    %86 = arith.addi %85, %81 : vector<6x32x1xi32>
    %c0_i32_28 = arith.constant 0 : i32
    %87 = vector.broadcast %c0_i32_28 : i32 to vector<6x32x1xi32>
    %88 = arith.cmpi sge, %86, %87 : vector<6x32x1xi32>
    %c16_i32 = arith.constant 16 : i32
    %89 = vector.broadcast %c16_i32 : i32 to vector<6x32x1xi32>
    %90 = arith.cmpi slt, %86, %89 : vector<6x32x1xi32>
    %91 = arith.andi %88, %90 : vector<6x32x1xi1>
    %c1_i32_29 = arith.constant 1 : i32
    %92 = vector.broadcast %c1_i32_29 : i32 to vector<6x32x1xi32>
    %93 = arith.cmpi sge, %82, %92 : vector<6x32x1xi32>
    %94 = arith.andi %91, %93 : vector<6x32x1xi1>
    %c16_i32_30 = arith.constant 16 : i32
    %95 = vector.broadcast %c16_i32_30 : i32 to vector<6x32x1xi32>
    %96 = arith.cmpi sle, %82, %95 : vector<6x32x1xi32>
    %97 = arith.andi %94, %96 : vector<6x32x1xi1>
    %cst_31 = arith.constant 0.000000e+00 : f32
    %98 = vector.shape_cast %97 : vector<6x32x1xi1> to vector<6x32x1xi1>
    %99 = vector.broadcast %98 : vector<6x32x1xi1> to vector<6x32x128xi1>
    %100 = vector.broadcast %cst_31 : f32 to vector<6x32x128xf32>
    %101 = arith.select %99, %80, %100 : vector<6x32x128xi1>, vector<6x32x128xf32>
    %102 = arith.truncf %101 : vector<6x32x128xf32> to vector<6x32x128xbf16>
    %103 = vector.shape_cast %102 : vector<6x32x128xbf16> to vector<192x128xbf16>
    %104 = vector.extract_strided_slice %103 {offsets = [0, 0], sizes = [128, 128], strides = [1, 1]} : vector<192x128xbf16> to vector<128x128xbf16>
    %c0_32 = arith.constant 0 : index
    %c0_33 = arith.constant 0 : index
    %c0_34 = arith.constant 0 : index
    %105 = vector.load %arg6[%c0_32, %c0_33, %c0_34] : memref<3x128x384xbf16, #tpu.memory_space<vmem>>, vector<1x128x384xbf16>
    %106 = vector.shape_cast %105 : vector<1x128x384xbf16> to vector<128x384xbf16>
    %cst_35 = arith.constant dense<0.000000e+00> : vector<128x384xf32>
    %107 = tpu.matmul %104, %106, %cst_35 {dimension_numbers = #tpu.dot_dimension_numbers<[1], [0], [0], [1], [0, 0, 1, 1], [], []>} : vector<128x128xbf16>, vector<128x384xbf16>, vector<128x384xf32> -> vector<128x384xf32>
    %108 = vector.extract_strided_slice %107 {offsets = [0, 0], sizes = [128, 128], strides = [1, 1]} : vector<128x384xf32> to vector<128x128xf32>
    %109 = vector.extract_strided_slice %107 {offsets = [0, 128], sizes = [128, 128], strides = [1, 1]} : vector<128x384xf32> to vector<128x128xf32>
    %110 = vector.extract_strided_slice %109 {offsets = [1, 0], sizes = [127, 128], strides = [1, 1]} : vector<128x128xf32> to vector<127x128xf32>
    %111 = vector.extract_strided_slice %109 {offsets = [0, 0], sizes = [1, 128], strides = [1, 1]} : vector<128x128xf32> to vector<1x128xf32>
    %112 = tpu.concatenate %110, %111 in 0 : vector<127x128xf32>, vector<1x128xf32> -> vector<128x128xf32>
    %113 = arith.addf %108, %112 : vector<128x128xf32>
    %114 = vector.extract_strided_slice %107 {offsets = [0, 256], sizes = [128, 128], strides = [1, 1]} : vector<128x384xf32> to vector<128x128xf32>
    %115 = vector.extract_strided_slice %114 {offsets = [2, 0], sizes = [126, 128], strides = [1, 1]} : vector<128x128xf32> to vector<126x128xf32>
    %116 = vector.extract_strided_slice %114 {offsets = [0, 0], sizes = [2, 128], strides = [1, 1]} : vector<128x128xf32> to vector<2x128xf32>
    %117 = tpu.concatenate %115, %116 in 0 : vector<126x128xf32>, vector<2x128xf32> -> vector<128x128xf32>
    %118 = arith.addf %113, %117 : vector<128x128xf32>
    %119 = vector.extract_strided_slice %103 {offsets = [32, 0], sizes = [128, 128], strides = [1, 1]} : vector<192x128xbf16> to vector<128x128xbf16>
    %c1_36 = arith.constant 1 : index
    %c0_37 = arith.constant 0 : index
    %c0_38 = arith.constant 0 : index
    %120 = vector.load %arg6[%c1_36, %c0_37, %c0_38] : memref<3x128x384xbf16, #tpu.memory_space<vmem>>, vector<1x128x384xbf16>
    %121 = vector.shape_cast %120 : vector<1x128x384xbf16> to vector<128x384xbf16>
    %cst_39 = arith.constant dense<0.000000e+00> : vector<128x384xf32>
    %122 = tpu.matmul %119, %121, %cst_39 {dimension_numbers = #tpu.dot_dimension_numbers<[1], [0], [0], [1], [0, 0, 1, 1], [], []>} : vector<128x128xbf16>, vector<128x384xbf16>, vector<128x384xf32> -> vector<128x384xf32>
    %123 = vector.extract_strided_slice %122 {offsets = [0, 0], sizes = [128, 128], strides = [1, 1]} : vector<128x384xf32> to vector<128x128xf32>
    %124 = arith.addf %118, %123 : vector<128x128xf32>
    %125 = vector.extract_strided_slice %122 {offsets = [0, 128], sizes = [128, 128], strides = [1, 1]} : vector<128x384xf32> to vector<128x128xf32>
    %126 = vector.extract_strided_slice %125 {offsets = [1, 0], sizes = [127, 128], strides = [1, 1]} : vector<128x128xf32> to vector<127x128xf32>
    %127 = vector.extract_strided_slice %125 {offsets = [0, 0], sizes = [1, 128], strides = [1, 1]} : vector<128x128xf32> to vector<1x128xf32>
    %128 = tpu.concatenate %126, %127 in 0 : vector<127x128xf32>, vector<1x128xf32> -> vector<128x128xf32>
    %129 = arith.addf %124, %128 : vector<128x128xf32>
    %130 = vector.extract_strided_slice %122 {offsets = [0, 256], sizes = [128, 128], strides = [1, 1]} : vector<128x384xf32> to vector<128x128xf32>
    %131 = vector.extract_strided_slice %130 {offsets = [2, 0], sizes = [126, 128], strides = [1, 1]} : vector<128x128xf32> to vector<126x128xf32>
    %132 = vector.extract_strided_slice %130 {offsets = [0, 0], sizes = [2, 128], strides = [1, 1]} : vector<128x128xf32> to vector<2x128xf32>
    %133 = tpu.concatenate %131, %132 in 0 : vector<126x128xf32>, vector<2x128xf32> -> vector<128x128xf32>
    %134 = arith.addf %129, %133 : vector<128x128xf32>
    %135 = vector.extract_strided_slice %103 {offsets = [64, 0], sizes = [128, 128], strides = [1, 1]} : vector<192x128xbf16> to vector<128x128xbf16>
    %c2_40 = arith.constant 2 : index
    %c0_41 = arith.constant 0 : index
    %c0_42 = arith.constant 0 : index
    %136 = vector.load %arg6[%c2_40, %c0_41, %c0_42] : memref<3x128x384xbf16, #tpu.memory_space<vmem>>, vector<1x128x384xbf16>
    %137 = vector.shape_cast %136 : vector<1x128x384xbf16> to vector<128x384xbf16>
    %cst_43 = arith.constant dense<0.000000e+00> : vector<128x384xf32>
    %138 = tpu.matmul %135, %137, %cst_43 {dimension_numbers = #tpu.dot_dimension_numbers<[1], [0], [0], [1], [0, 0, 1, 1], [], []>} : vector<128x128xbf16>, vector<128x384xbf16>, vector<128x384xf32> -> vector<128x384xf32>
    %139 = vector.extract_strided_slice %138 {offsets = [0, 0], sizes = [128, 128], strides = [1, 1]} : vector<128x384xf32> to vector<128x128xf32>
    %140 = arith.addf %134, %139 : vector<128x128xf32>
    %141 = vector.extract_strided_slice %138 {offsets = [0, 128], sizes = [128, 128], strides = [1, 1]} : vector<128x384xf32> to vector<128x128xf32>
    %142 = vector.extract_strided_slice %141 {offsets = [1, 0], sizes = [127, 128], strides = [1, 1]} : vector<128x128xf32> to vector<127x128xf32>
    %143 = vector.extract_strided_slice %141 {offsets = [0, 0], sizes = [1, 128], strides = [1, 1]} : vector<128x128xf32> to vector<1x128xf32>
    %144 = tpu.concatenate %142, %143 in 0 : vector<127x128xf32>, vector<1x128xf32> -> vector<128x128xf32>
    %145 = arith.addf %140, %144 : vector<128x128xf32>
    %146 = vector.extract_strided_slice %138 {offsets = [0, 256], sizes = [128, 128], strides = [1, 1]} : vector<128x384xf32> to vector<128x128xf32>
    %147 = vector.extract_strided_slice %146 {offsets = [2, 0], sizes = [126, 128], strides = [1, 1]} : vector<128x128xf32> to vector<126x128xf32>
    %148 = vector.extract_strided_slice %146 {offsets = [0, 0], sizes = [2, 128], strides = [1, 1]} : vector<128x128xf32> to vector<2x128xf32>
    %149 = tpu.concatenate %147, %148 in 0 : vector<126x128xf32>, vector<2x128xf32> -> vector<128x128xf32>
    %150 = arith.addf %145, %149 : vector<128x128xf32>
    %c0_44 = arith.constant 0 : index
    %c0_45 = arith.constant 0 : index
    %151 = vector.load %arg7[%c0_44, %c0_45] : memref<1x128xf32, #tpu.memory_space<vmem>>, vector<1x128xf32>
    %152 = vector.broadcast %151 : vector<1x128xf32> to vector<128x128xf32>
    %153 = arith.mulf %150, %152 : vector<128x128xf32>
    %c0_46 = arith.constant 0 : index
    %c0_47 = arith.constant 0 : index
    %154 = vector.load %arg8[%c0_46, %c0_47] : memref<1x128xf32, #tpu.memory_space<vmem>>, vector<1x128xf32>
    %155 = vector.broadcast %154 : vector<1x128xf32> to vector<128x128xf32>
    %156 = arith.addf %153, %155 : vector<128x128xf32>
    %cst_48 = arith.constant 0.000000e+00 : f32
    %157 = vector.broadcast %cst_48 : f32 to vector<128x128xf32>
    %158 = arith.maximumf %156, %157 : vector<128x128xf32>
    %159 = vector.shape_cast %158 : vector<128x128xf32> to vector<4x32x128xf32>
    %160 = vector.extract_strided_slice %159 {offsets = [0, 0, 0], sizes = [4, 16, 128], strides = [1, 1, 1]} : vector<4x32x128xf32> to vector<4x16x128xf32>
    %161 = vector.shape_cast %160 : vector<4x16x128xf32> to vector<1x4x16x128xf32>
    %c0_49 = arith.constant 0 : index
    %c0_50 = arith.constant 0 : index
    %c0_51 = arith.constant 0 : index
    %c0_52 = arith.constant 0 : index
    %162 = vector.load %arg9[%c0_49, %c0_50, %c0_51, %c0_52] : memref<1x4x16x128xf32, #tpu.memory_space<vmem>>, vector<1x4x16x128xf32>
    tpu.vector_store %arg9[%c0_49, %c0_50, %c0_51, %c0_52], %161 {strides = array<i32>} : memref<1x4x16x128xf32, #tpu.memory_space<vmem>>, vector<1x4x16x128xf32>,
    return
  }
  func.func @transform_1(%arg0: i32, %arg1: i32) -> (i32, i32, i32) {
    %c0_i32 = arith.constant 0 : i32
    %c0_i32_0 = arith.constant 0 : i32
    %c0_i32_1 = arith.constant 0 : i32
    %c0_i32_2 = arith.constant 0 : i32
    return %c0_i32, %c0_i32_0, %c0_i32_1 : i32, i32, i32
  }
  func.func @transform_2(%arg0: i32, %arg1: i32) -> (i32, i32) {
    %c0_i32 = arith.constant 0 : i32
    %c0_i32_0 = arith.constant 0 : i32
    %c0_i32_1 = arith.constant 0 : i32
    return %c0_i32, %c0_i32_0 : i32, i32
  }
  func.func @transform_3(%arg0: i32, %arg1: i32) -> (i32, i32) {
    %c0_i32 = arith.constant 0 : i32
    %c0_i32_0 = arith.constant 0 : i32
    %c0_i32_1 = arith.constant 0 : i32
    return %c0_i32, %c0_i32_0 : i32, i32
  }
  func.func @transform_4(%arg0: i32, %arg1: i32) -> (i32, i32, i32) {
    %c0_i32 = arith.constant 0 : i32
    %c0_i32_0 = arith.constant 0 : i32
    %c0_i32_1 = arith.constant 0 : i32
    %c0_i32_2 = arith.constant 0 : i32
    return %c0_i32, %c0_i32_0, %c0_i32_1 : i32, i32, i32
  }
  func.func @transform_5(%arg0: i32, %arg1: i32) -> (i32, i32) {
    %c0_i32 = arith.constant 0 : i32
    %c0_i32_0 = arith.constant 0 : i32
    %c0_i32_1 = arith.constant 0 : i32
    return %c0_i32, %c0_i32_0 : i32, i32
  }
  func.func @transform_6(%arg0: i32, %arg1: i32) -> (i32, i32) {
    %c0_i32 = arith.constant 0 : i32
    %c0_i32_0 = arith.constant 0 : i32
    %c0_i32_1 = arith.constant 0 : i32
    return %c0_i32, %c0_i32_0 : i32, i32
  }
  func.func @transform_7(%arg0: i32, %arg1: i32) -> (i32, i32, i32, i32) {
    %c0_i32 = arith.constant 0 : i32
    %c0_i32_0 = arith.constant 0 : i32
    %c0_i32_1 = arith.constant 0 : i32
    return %arg0, %arg1, %c0_i32, %c0_i32_0 : i32, i32, i32, i32
  }
}

</mosaic_0001>

<bundles_post_ra>
// kernel: tpu_custom_call.1
= control target key start
LH: loop header
LB: loop body
LE: loop exit
PB: predicated region body
PF: predicated region fallthrough
CT: control target
= control target key end

     0   :  { %6 = vsyncpa [#allocation3], 0  ;;  %s331_s0 = inlined_call_operand.hbm [shape: f32[256,128], index: 0, kind: input, shape index: {}]   ;;  %s332_s1 = inlined_call_operand.hbm [shape: f32[256,128], index: 1, kind: output, shape index: {}]  }
   0x1   :  { %7 = vsyncpa [#allocation4], 0  ;;  %s12_s8 = sshll.u32 %s331_s0, 4  ;;  %s231_s9 = smov [#allocation2]   ;;  %s13_s8 = int_to_ptr.hbm [resolvable:$true] %s12_s8 }
   0x2   :  { %s14_s10 = sshll.u32 %s231_s9, 4  ;;  %s232_s11 = smov 128   ;;  %s15_s10 = int_to_ptr.vmem [resolvable:$true] %s14_s10 }
   0x3   :  { %s233_s12 = smov 8  }
   0x4   :  { %20 = dma.hbm_to_vmem [thread:$0]  %s13_s8, 4096, %s15_s10, [#allocation3], %s232_s11, %s232_s11, %s233_s12  }
   0x5   :  { %227 = dma.done.wait [#allocation3], 4096  }
   0x6   :  { %228 = vsyncadd [#allocation3], 4294963200  ;;  %v89_v0 = vlaneseq  ;;  %v25_v2 = vld [vmem:[#allocation2] sm:$0xff]  ;;  %v253_v3 = vld [vmem:[#allocation2 + $0xf8] sm:$0xff]  ;;  %s234_s0 = smov [#allocation5]   ;;  %s162_s16 = sshll.u32 %s332_s1, 4  ;;  %s163_s16 = int_to_ptr.hbm [resolvable:$true] %s162_s16 }
   0x7   :  { %v26_v4 = vld [vmem:[#allocation2 + $0x8] sm:$0xff]  ;;  %v57_v5 = vrot.slane %v25_v2, 7  ;;  %v88_v6 = vrot.slane %v253_v3, 7  ;;  %v27_v8 = vld [vmem:[#allocation2 + $0x10] sm:$0xff]  ;;  %v28_v9 = vld [vmem:[#allocation2 + $0x18] sm:$0xff]  ;;  %s160_s13 = sshll.u32 %s234_s0, 4  ;;  %s161_s13 = int_to_ptr.vmem [resolvable:$true] %s160_s13 }
   0x8   :  { %v251_v1 = vshrl.u32 %v89_v0, 7  ;;  %v58_v7 = vrot.slane %v26_v4, 7  ;;  %v29_v10 = vld [vmem:[#allocation2 + $0x20] sm:$0xff]  ;;  %v59_v11 = vrot.slane %v27_v8, 7  ;;  %v60_v12 = vrot.slane %v28_v9, 7  ;;  %v30_v14 = vld [vmem:[#allocation2 + $0x28] sm:$0xff] }
   0x9   :  { %v61_v13 = vrot.slane %v29_v10, 7  ;;  %v31_v15 = vld [vmem:[#allocation2 + $0x30] sm:$0xff]  ;;  %v32_v16 = vld [vmem:[#allocation2 + $0x38] sm:$0xff]  ;;  %v62_v19 = vrot.slane %v30_v14, 7  ;;  %v33_v21 = vld [vmem:[#allocation2 + $0x40] sm:$0xff] }
   0xa   :  { %vm91_vm0 = vcmp.lt.s32.totalorder %v251_v1, 1  ;;  %v63_v20 = vrot.slane %v31_v15, 7  ;;  %v34_v22 = vld [vmem:[#allocation2 + $0x48] sm:$0xff]  ;;  %v64_v25 = vrot.slane %v32_v16, 7  ;;  %v35_v26 = vld [vmem:[#allocation2 + $0x50] sm:$0xff]  ;;  %v65_v28 = vrot.slane %v33_v21, 7 }
   0xb   :  { %v123_v17 = vsel %vm91_vm0, %v88_v6, %v57_v5  ;;  %v122_v18 = vsel %vm91_vm0, %v57_v5, %v58_v7  ;;  %v121_v23 = vsel %vm91_vm0, %v58_v7, %v59_v11  ;;  %v120_v24 = vsel %vm91_vm0, %v59_v11, %v60_v12  ;;  %v36_v29 = vld [vmem:[#allocation2 + $0x58] sm:$0xff]  ;;  %v37_v32 = vld [vmem:[#allocation2 + $0x60] sm:$0xff]  ;;  %v38_v35 = vld [vmem:[#allocation2 + $0x68] sm:$0xff] }
   0xc   :  { %124 = vst [vmem:[#allocation5] sm:$0xff] %v123_v17  ;;  %v119_v27 = vsel %vm91_vm0, %v60_v12, %v61_v13  ;;  %v118_v30 = vsel %vm91_vm0, %v61_v13, %v62_v19  ;;  %v66_v31 = vrot.slane %v34_v22, 7  ;;  %v117_v33 = vsel %vm91_vm0, %v62_v19, %v63_v20  ;;  %v39_v38 = vld [vmem:[#allocation2 + $0x70] sm:$0xff]  ;;  %v40_v41 = vld [vmem:[#allocation2 + $0x78] sm:$0xff]  ;;  %v41_v44 = vld [vmem:[#allocation2 + $0x80] sm:$0xff] }
   0xd   :  { %125 = vst [vmem:[#allocation5 + $0x8] sm:$0xff] %v122_v18  ;;  %v67_v34 = vrot.slane %v35_v26, 7  ;;  %v116_v36 = vsel %vm91_vm0, %v63_v20, %v64_v25  ;;  %v68_v37 = vrot.slane %v36_v29, 7  ;;  %v115_v39 = vsel %vm91_vm0, %v64_v25, %v65_v28  ;;  %v42_v47 = vld [vmem:[#allocation2 + $0x88] sm:$0xff]  ;;  %v43_v50 = vld [vmem:[#allocation2 + $0x90] sm:$0xff]  ;;  %v44_v53 = vld [vmem:[#allocation2 + $0x98] sm:$0xff] }
   0xe   :  { %126 = vst [vmem:[#allocation5 + $0x10] sm:$0xff] %v121_v23  ;;  %v69_v40 = vrot.slane %v37_v32, 7  ;;  %v114_v42 = vsel %vm91_vm0, %v65_v28, %v66_v31  ;;  %v70_v43 = vrot.slane %v38_v35, 7  ;;  %v71_v46 = vrot.slane %v39_v38, 7  ;;  %v45_v56 = vld [vmem:[#allocation2 + $0xa0] sm:$0xff]  ;;  %v46_v59 = vld [vmem:[#allocation2 + $0xa8] sm:$0xff] }
   0xf   :  { %127 = vst [vmem:[#allocation5 + $0x18] sm:$0xff] %v120_v24  ;;  %v113_v45 = vsel %vm91_vm0, %v66_v31, %v67_v34  ;;  %v112_v48 = vsel %vm91_vm0, %v67_v34, %v68_v37  ;;  %v72_v49 = vrot.slane %v40_v41, 7  ;;  %v73_v52 = vrot.slane %v41_v44, 7  ;;  %v47_v62 = vld [vmem:[#allocation2 + $0xb0] sm:$0xff]  ;;  %v48_v2 = vld [vmem:[#allocation2 + $0xb8] sm:$0xff]  ;;  %v49_v7 = vld [vmem:[#allocation2 + $0xc0] sm:$0xff] }
  0x10   :  { %128 = vst [vmem:[#allocation5 + $0x20] sm:$0xff] %v119_v27  ;;  %v111_v51 = vsel %vm91_vm0, %v68_v37, %v69_v40  ;;  %v110_v54 = vsel %vm91_vm0, %v69_v40, %v70_v43  ;;  %v74_v55 = vrot.slane %v42_v47, 7  ;;  %v109_v57 = vsel %vm91_vm0, %v70_v43, %v71_v46  ;;  %v50_v10 = vld [vmem:[#allocation2 + $0xc8] sm:$0xff]  ;;  %v51_v13 = vld [vmem:[#allocation2 + $0xd0] sm:$0xff]  ;;  %v52_v16 = vld [vmem:[#allocation2 + $0xd8] sm:$0xff] }
  0x11   :  { %129 = vst [vmem:[#allocation5 + $0x28] sm:$0xff] %v118_v30  ;;  %v75_v58 = vrot.slane %v43_v50, 7  ;;  %v108_v60 = vsel %vm91_vm0, %v71_v46, %v72_v49  ;;  %v76_v61 = vrot.slane %v44_v53, 7  ;;  %v107_v63 = vsel %vm91_vm0, %v72_v49, %v73_v52  ;;  %v53_v19 = vld [vmem:[#allocation2 + $0xe0] sm:$0xff]  ;;  %v54_v22 = vld [vmem:[#allocation2 + $0xe8] sm:$0xff]  ;;  %v55_v25 = vld [vmem:[#allocation2 + $0xf0] sm:$0xff] }
  0x12   :  { %130 = vst [vmem:[#allocation5 + $0x30] sm:$0xff] %v117_v33  ;;  %v77_v0 = vrot.slane %v45_v56, 7  ;;  %v106_v4 = vsel %vm91_vm0, %v73_v52, %v74_v55  ;;  %v78_v5 = vrot.slane %v46_v59, 7  ;;  %v79_v9 = vrot.slane %v47_v62, 7 }
  0x13   :  { %131 = vst [vmem:[#allocation5 + $0x38] sm:$0xff] %v116_v36  ;;  %v105_v8 = vsel %vm91_vm0, %v74_v55, %v75_v58  ;;  %v104_v11 = vsel %vm91_vm0, %v75_v58, %v76_v61  ;;  %v80_v12 = vrot.slane %v48_v2, 7  ;;  %v81_v15 = vrot.slane %v49_v7, 7 }
  0x14   :  { %132 = vst [vmem:[#allocation5 + $0x40] sm:$0xff] %v115_v39  ;;  %v103_v14 = vsel %vm91_vm0, %v76_v61, %v77_v0  ;;  %v102_v17 = vsel %vm91_vm0, %v77_v0, %v78_v5  ;;  %v82_v18 = vrot.slane %v50_v10, 7  ;;  %v101_v20 = vsel %vm91_vm0, %v78_v5, %v79_v9 }
  0x15   :  { %133 = vst [vmem:[#allocation5 + $0x48] sm:$0xff] %v114_v42  ;;  %v83_v21 = vrot.slane %v51_v13, 7  ;;  %v100_v23 = vsel %vm91_vm0, %v79_v9, %v80_v12  ;;  %v84_v24 = vrot.slane %v52_v16, 7  ;;  %v99_v26 = vsel %vm91_vm0, %v80_v12, %v81_v15 }
  0x16   :  { %134 = vst [vmem:[#allocation5 + $0x50] sm:$0xff] %v113_v45  ;;  %v85_v27 = vrot.slane %v53_v19, 7  ;;  %v98_v28 = vsel %vm91_vm0, %v81_v15, %v82_v18  ;;  %v86_v29 = vrot.slane %v54_v22, 7  ;;  %v87_v31 = vrot.slane %v55_v25, 7 }
  0x17   :  { %135 = vst [vmem:[#allocation5 + $0x58] sm:$0xff] %v112_v48  ;;  %v97_v30 = vsel %vm91_vm0, %v82_v18, %v83_v21  ;;  %v96_v32 = vsel %vm91_vm0, %v83_v21, %v84_v24 }
  0x18   :  { %136 = vst [vmem:[#allocation5 + $0x60] sm:$0xff] %v111_v51  ;;  %v95_v33 = vsel %vm91_vm0, %v84_v24, %v85_v27  ;;  %v94_v34 = vsel %vm91_vm0, %v85_v27, %v86_v29  ;;  %v93_v35 = vsel %vm91_vm0, %v86_v29, %v87_v31  ;;  %v92_v36 = vsel %vm91_vm0, %v87_v31, %v88_v6 }
  0x19   :  { %137 = vst [vmem:[#allocation5 + $0x68] sm:$0xff] %v110_v54 }
  0x1a   :  { %138 = vst [vmem:[#allocation5 + $0x70] sm:$0xff] %v109_v57 }
  0x1b   :  { %139 = vst [vmem:[#allocation5 + $0x78] sm:$0xff] %v108_v60 }
  0x1c   :  { %140 = vst [vmem:[#allocation5 + $0x80] sm:$0xff] %v107_v63 }
  0x1d   :  { %141 = vst [vmem:[#allocation5 + $0x88] sm:$0xff] %v106_v4 }
  0x1e   :  { %142 = vst [vmem:[#allocation5 + $0x90] sm:$0xff] %v105_v8 }
  0x1f   :  { %143 = vst [vmem:[#allocation5 + $0x98] sm:$0xff] %v104_v11 }
  0x20   :  { %144 = vst [vmem:[#allocation5 + $0xa0] sm:$0xff] %v103_v14 }
  0x21   :  { %145 = vst [vmem:[#allocation5 + $0xa8] sm:$0xff] %v102_v17 }
  0x22   :  { %146 = vst [vmem:[#allocation5 + $0xb0] sm:$0xff] %v101_v20 }
  0x23   :  { %147 = vst [vmem:[#allocation5 + $0xb8] sm:$0xff] %v100_v23 }
  0x24   :  { %148 = vst [vmem:[#allocation5 + $0xc0] sm:$0xff] %v99_v26 }
  0x25   :  { %149 = vst [vmem:[#allocation5 + $0xc8] sm:$0xff] %v98_v28 }
  0x26   :  { %150 = vst [vmem:[#allocation5 + $0xd0] sm:$0xff] %v97_v30 }
  0x27   :  { %151 = vst [vmem:[#allocation5 + $0xd8] sm:$0xff] %v96_v32 }
  0x28   :  { %152 = vst [vmem:[#allocation5 + $0xe0] sm:$0xff] %v95_v33 }
  0x29   :  { %153 = vst [vmem:[#allocation5 + $0xe8] sm:$0xff] %v94_v34 }
  0x2a   :  { %154 = vst [vmem:[#allocation5 + $0xf0] sm:$0xff] %v93_v35 }
  0x2b   :  { %155 = vst [vmem:[#allocation5 + $0xf8] sm:$0xff] %v92_v36 }
  0x2c   :  { %168 = dma.vmem_to_hbm [thread:$0]  %s161_s13, 4096, %s163_s16, [#allocation4], %s232_s11, %s232_s11, %s233_s12  }
  0x2d   :  { %229 = dma.done.wait [#allocation4], 4096  }
  0x2e   :  { %230 = vsyncadd [#allocation4], 4294963200 }
  0x2f   :  { %173 = vsyncpa [#allocation3], 1 }
  0x30   :  { %174 = vsyncpa [#allocation4], 1 }

// kernel: tpu_custom_call.1
= control target key start
LH: loop header
LB: loop body
LE: loop exit
PB: predicated region body
PF: predicated region fallthrough
CT: control target
= control target key end

     0   :  { %s6598_s0 = inlined_call_operand.hbm [shape: bf16[1280,128], index: 0, kind: input, shape index: {}]   ;;  %s6599_s1 = inlined_call_operand.hbm [shape: bf16[3,128,384], index: 1, kind: input, shape index: {}]   ;;  %s6600_s2 = inlined_call_operand.vmem [shape: f32[1,128], index: 2, kind: input, shape index: {}]   ;;  %s6601_s3 = inlined_call_operand.vmem [shape: f32[1,128], index: 3, kind: input, shape index: {}]   ;;  %s6602_s4 = inlined_call_operand.hbm [shape: bf16[3,128,384], index: 4, kind: input, shape index: {}]   ;;  %s6603_s5 = inlined_call_operand.vmem [shape: f32[1,128], index: 5, kind: input, shape index: {}]   ;;  %s6604_s6 = inlined_call_operand.vmem [shape: f32[1,128], index: 6, kind: input, shape index: {}]   ;;  %s6605_s7 = inlined_call_operand.hbm [shape: f32[2,16,16,128], index: 7, kind: output, shape index: {}]  }
   0x1   :  { %6625 = sst [smem:[#allocation28_spill]] %s6599_s1 }
   0x2   :  { %12 = vsyncpa [#allocation5], 0 }
   0x3   :  { %13 = vsyncpa [#allocation8], 0 }
   0x4   :  { %14 = vsyncpa [#allocation6], 0 }
   0x5   :  { %16 = vsyncpa [#allocation6 + $0x1], 0  ;;  %s5284_s24 = smov 0   ;;  %s5286_s25 = smov 0  }
   0x6   :  { %s5288_s26 = smov 0   ;;  %s5290_s27 = smov 0  }
   0x7   :  { %s5292_s28 = smov 0   ;;  %s5294_s29 = smov 0  }
   0x8   :  { %s5296_s30 = smov 0   ;;  %s5298_s8 = smov 0  }
   0x9 LB: > { %6626 = sst [smem:[#allocation20_spill]] %s5226_s29  ;;  %s4042_s9 = sadd.s32 4294967295, %s5234_s8   ;;  %s5234_s8 = sphi %s5298_s8, %s22_s8   ;;  %s5230_s30 = sphi %s5296_s30, %s6673_s30   ;;  %s5226_s29 = sphi %s5294_s29, %s6672_s29   ;;  %s5222_s28 = sphi %s5292_s28, %s6671_s28   ;;  %s5218_s27 = sphi %s5290_s27, %s6670_s27   ;;  %s5214_s26 = sphi %s5288_s26, %s6676_s26   ;;  %s5210_s25 = sphi %s5286_s25, %s6675_s25   ;;  %s5206_s24 = sphi %s5284_s24, %s6674_s24  }
   0xa   : > { %6627 = sst [smem:[#allocation21_spill]] %s5230_s30  ;;  %s4043_s10 = sadd.s32 4294967294, %s5234_s8  }
   0xb   : > { %s31_s11 = sadd.s32 1, %s5226_s29  ;;  %s34_s12 = sadd.s32 1, %s5230_s30 }
   0xc   : > { %p32_p0 = scmp.ge.s32.totalorder %s31_s11, 4  ;;  %s169_s13 = sadd.s32 1, %s5214_s26 }
   0xd   : > { %p179_p1 = scmp.ne.s32.totalorder %s5214_s26, %s5210_s25  ;;  %p180_p2 = scmp.eq.s32.totalorder %s4042_s9, 7 }
   0xe   : > { %s6678_s11 = smov (%p32_p0, %s31_s11), 0  ;;  %s6680_s12 = smov (!%p32_p0, %s34_s12), %s5230_s30 }
   0xf   : > { %6628 = sst [smem:[#allocation22_spill]] %s6678_s11  ;;  %s165_s14 = ssub.s32 %s5226_s29, %s6678_s11 }
  0x10   : > { %p5336_p3 = por %p180_p2, %p179_p1  ;;  %p36_p4 = scmp.ge.s32.totalorder %s6680_s12, 2 }
  0x11   : > { %p185_p5 = scmp.ne.s32.totalorder %s5210_s25, %s5206_s24  ;;  %p186_p6 = scmp.eq.s32.totalorder %s4043_s10, 7 }
  0x12   : > { %p4044_p7 = scmp.ge.s32.totalorder %s5234_s8, 1  ;;  %s6682_s12 = smov (%p36_p4, %s6680_s12), 0 }
  0x13   : > { %6630 = sst [smem:[#allocation23_spill]] %s6682_s12  ;;  %p5345_p8 = por %p186_p6, %p185_p5 }
  0x14   : > { %p193_p9 = scmp.lt.s32.totalorder %s5234_s8, 9  ;;  %s164_s17 = ssub.s32 %s5230_s30, %s6682_s12 }
  0x15   : > { %s6631_s16 = scalar_select %p5345_p8, 1, 0 }
  0x16   : > { %s166_s18 = sor.u32 %s165_s14, %s164_s17  ;;  %p5352_p10 = pnand %p4044_p7, %p193_p9 }
  0x17   : > { %6632 = sst [smem:[#allocation24_spill]] %s6631_s16  ;;  %p167_p11 = scmp.eq.s32.totalorder %s166_s18, 0 }
  0x18   : > { %p5356_p12 = scmp.eq.s32.totalorder %s4042_s9, 0  ;;  %p4910_p13 = pneg %p5352_p10 }
  0x19   : > { %s6635_s1 = sld [smem:[#allocation28_spill]]  ;;  %s5236_s14 = smov [#allocation4]  }
  0x1a   : > { %s5366_s10 = scalar_select %p167_p11, %s5214_s26, %s169_s13  }
  0x1b   : > { %s206_s17 = sshll.u32 %s5236_s14, 4  ;;  %p4911_p0 = pnand %p5356_p12, %p4910_p13  ;;  %s207_s17 = int_to_ptr.vmem [resolvable:$true] %s206_s17 }
  0x1c   : > { %s5237_s18 = smov 192   ;;  %s5238_s9 = smov 12  }
  0x1d   : > { %s224_s30 = sshll.u32 %s6602_s4, 4  ;;  %s5239_s29 = smov [#allocation7]   ;;  %s225_s30 = int_to_ptr.hbm [resolvable:$true] %s224_s30 }
  0x1e   : > { %s226_s16 = sshll.u32 %s5239_s29, 4  ;;  %248 = sbr.rel (%p5352_p10) target bundleno = 1174 (0x496), region = 44  ;;  %s227_s16 = int_to_ptr.vmem [resolvable:$true] %s226_s16 }
  0x1f   : > { %s204_s23 = sshll.u32 %s6635_s1, 4  ;;  %s205_s23 = int_to_ptr.hbm [resolvable:$true] %s204_s23 }
  0x20   : > { %4913 = dma.hbm_to_vmem [thread:$0]  (!%p4911_p0), %s205_s23, 9216, %s207_s17, [#allocation5], %s5237_s18, %s5237_s18, %s5238_s9  }
  0x21   : > { %4916 = dma.hbm_to_vmem [thread:$0]  (!%p4911_p0), %s225_s30, 9216, %s227_s16, [#allocation8], %s5237_s18, %s5237_s18, %s5238_s9  }
  0x23   : > { %5191 = dma.done.wait (%p5356_p12), [#allocation5], 9216  }
  0x24   : > { %5193 = vsyncadd (%p5356_p12), [#allocation5], 4294958080 }
  0x25   : > { %5195 = dma.done.wait (%p5356_p12), [#allocation8], 9216  }
  0x26   : > { %5197 = vsyncadd (%p5356_p12), [#allocation8], 4294958080  ;;  %s6611_s29 = sand.u32 1, %s5210_s25   ;;  %p280_p1 = scmp.lt.s32.totalorder %s5218_s27, 0 }
  0x27   : > { %s5387_s30 = sshll.u32 %s6611_s29, 6  ;;  %s281_s11 = ssub.s32 0, %s5218_s27 }
  0x28   : > { %s4051_s12 = smin.u32 %s5218_s27, %s281_s11  ;;  %p4925_p2 = scmp.eq.s32.totalorder %s5218_s27, 0 }
  0x29   : > { %s283_s13 = sand.u32 1, %s4051_s12   ;;  %s296_s19 = smul.u32 640, %s5222_s28 }
  0x2a   : > { %s284_s16 = ssub.s32 0, %s283_s13  ;;  %s6612_s22 = smov [#allocation2]  }
  0x2b   : > { %s6684_s16 = smov (!%p280_p1, %s284_s16), %s283_s13  ;;  %s297_s21 = sshra.s32 %s296_s19, 3 }
  0x2c   : > { %p4053_p4 = scmp.lt.s32.totalorder %s6684_s16, 0  ;;  %s290_s20 = sadd.s32 2, %s6684_s16 }
  0x2d   : > { %s310_s23 = sshll.u32 %s6612_s22, 4  ;;  %s4055_s14 = sshll.u32 %s297_s21, 2  ;;  %s311_s23 = int_to_ptr.vmem [resolvable:$true] %s310_s23 }
  0x2e   : > { %s6686_s20 = smov (!%p4053_p4, %s290_s20), %s6684_s16  ;;  %s300_s9 = scalar_lea.hbm %s6598_s0, %s4055_s14 }
  0x2f   : > { %s4715_s11 = sshll.u32 %s6686_s20, 7  ;;  %s308_s12 = sshll.u32 %s300_s9, 4  ;;  %s309_s12 = int_to_ptr.hbm [resolvable:$true] %s308_s12 }
  0x30   : > { %s5074_s13 = sshra.s32 %s309_s12, 4  ;;  %s5080_s22 = scalar_lea.hbm %s6598_s0, 640  ;;  %s5075_s13 = int_to_ptr.hbm [resolvable:$true] %s5074_s13 }
  0x31   : > { %s5076_s29 = scalar_lea.hbm %s5075_s13, 128  ;;  %p5081_p9 = scmp.lt.s32.totalorder %s5075_s13, %s6598_s0 }
  0x32   : > { %p5077_p5 = scmp.ne.s32.totalorder %s5075_s13, %s5076_s29  ;;  %p5082_p10 = scmp.lt.s32.totalorder %s5080_s22, %s5076_s29 }
  0x34   : > { %p5078_p6 = pnand %p5077_p5, %p4925_p2  ;;  %p5083_p11 = por %p5082_p10, %p5081_p9 }
  0x36   : > { %p5079_p7 = pneg %p5078_p6 }
  0x38   : > { %p5084_p12 = pnand %p5083_p11, %p5079_p7 }
  0x3a   : > { %5087 = shalt.err (!%p5084_p12)  }
  0x3b   : > { %4905 = dma.hbm_to_vmem [thread:$0]  (%p4925_p2), %s309_s12, 2048, %s311_s23, [#allocation3] }
  0x3c   : > { %s5415_s18 = scalar_lea.vmem [#allocation9], %s5387_s30  ;;  %s5417_s9 = scalar_lea.vmem [#allocation2], %s4715_s11 }
  0x3d   : > { %s317_s19 = scalar_lea.sflag [#allocation3], %s6686_s20 }
  0x3e   : > { %5198 = dma.done.wait %s317_s19, 2048 }
  0x3f   : > { %5199 = vsyncadd %s317_s19, 4294965248  ;;  %s322_s1 = sadd.s32 1, %s5218_s27  ;;  %s4716_s29 = sshll.u32 %s5218_s27, 2  ;;  %v4198_v0 = vld [vmem:[#allocation4 + $0xa8] sm:$0xf] }
  0x40   : > { %s327_s13 = ssub.s32 1, %s6686_s20  ;;  %s328_s16 = smul.u32 20, %s5222_s28  ;;  %v4757_v1 = vld [vmem:[#allocation4 + $0xb0] sm:$0xf0]  ;;  %v4756_v2 = vld [vmem:[#allocation4 + $0xac] sm:$0xf] }
  0x41   : > { %s4717_s21 = sadd.s32 4, %s4716_s29  ;;  %v4199_v3 = vor.u32 %v4757_v1, %v4198_v0  ;;  %v4200_v4 = vld [vmem:[#allocation4 + $0xb4] sm:$0xf0]  ;;  %v4206_v5 = vld [vmem:[#allocation4 + $0xb0] sm:$0xf]  ;;  %s4718_s23 = sshll.u32 %s327_s13, 7 }
  0x42   : > { %v4758_v6 = vld [vmem:[#allocation4 + $0xb8] sm:$0xf0]  ;;  %v4203_v7 = vor.u32 %v4756_v2, %v4200_v4  ;;  %v4186_v9 = vld [vmem:[#allocation4 + $0x90] sm:$0xf]  ;;  %v4753_v11 = vld [vmem:[#allocation4 + $0x94] sm:$0xf]  ;;  %s330_s30 = sadd.s32 %s4717_s21, %s328_s16 }
  0x43   : > { %v5426_v8 = vor.u32 %v4758_v6, %v4206_v5  ;;  %v4754_v10 = vld [vmem:[#allocation4 + $0x98] sm:$0xf0]  ;;  %617 = vmatpush.bf16.msra.mxu0 %v4199_v3  ;;  %v4188_v13 = vld [vmem:[#allocation4 + $0x9c] sm:$0xf0]  ;;  %v4194_v14 = vld [vmem:[#allocation4 + $0x98] sm:$0xf] }
  0x44   : > { %v4187_v12 = vor.u32 %v4754_v10, %v4186_v9  ;;  %v4755_v15 = vld [vmem:[#allocation4 + $0xa0] sm:$0xf0]  ;;  %686 = vmatpush.bf16.msra.mxu1 %v4203_v7  ;;  %4880 = vmatpush.bf16.msra.mxu3 %v4203_v7  ;;  %v4191_v16 = vor.u32 %v4753_v11, %v4188_v13  ;;  %v4174_v17 = vld [vmem:[#allocation4 + $0x78] sm:$0xf]  ;;  %v4750_v20 = vld [vmem:[#allocation4 + $0x7c] sm:$0xf] }
  0x45   : > { %v4751_v18 = vld [vmem:[#allocation4 + $0x80] sm:$0xf0]  ;;  %755 = vmatpush.bf16.msra.mxu2 %v5426_v8  ;;  %v5431_v19 = vor.u32 %v4755_v15, %v4194_v14  ;;  %v4176_v21 = vld [vmem:[#allocation4 + $0x84] sm:$0xf0]  ;;  %v4182_v22 = vld [vmem:[#allocation4 + $0x80] sm:$0xf] }
  0x46   : > { %v4752_v23 = vld [vmem:[#allocation4 + $0x88] sm:$0xf0]  ;;  %s4060_s11 = sshll.u32 %s330_s30, 5  ;;  %v4175_v24 = vor.u32 %v4751_v18, %v4174_v17  ;;  %v4179_v25 = vor.u32 %v4750_v20, %v4176_v21  ;;  %v4162_v26 = vld [vmem:[#allocation4 + $0x60] sm:$0xf]  ;;  %s338_s17 = scalar_lea.vmem [#allocation2], %s4718_s23 }
  0x47   : > { %618 = vmatpush.bf16.msra.mxu0 %v4187_v12  ;;  %v4748_v27 = vld [vmem:[#allocation4 + $0x68] sm:$0xf0]  ;;  %v5434_v28 = vor.u32 %v4752_v23, %v4182_v22  ;;  %v4747_v29 = vld [vmem:[#allocation4 + $0x64] sm:$0xf]  ;;  %v4164_v30 = vld [vmem:[#allocation4 + $0x6c] sm:$0xf0] }
  0x48   : > { %687 = vmatpush.bf16.msra.mxu1 %v4191_v16  ;;  %4881 = vmatpush.bf16.msra.mxu3 %v4191_v16  ;;  %s332_s12 = sshra.s32 %s4060_s11, 3  ;;  %v4170_v31 = vld [vmem:[#allocation4 + $0x68] sm:$0xf]  ;;  %v4749_v32 = vld [vmem:[#allocation4 + $0x70] sm:$0xf0]  ;;  %s5436_s14 = sshll.u32 %s338_s17, 4  ;;  %v4163_v33 = vor.u32 %v4748_v27, %v4162_v26  ;;  %v4167_v34 = vor.u32 %v4747_v29, %v4164_v30  ;;  %s350_s14 = int_to_ptr.vmem [resolvable:$true] %s5436_s14 }
  0x49   : > { %756 = vmatpush.bf16.msra.mxu2 %v5431_v19  ;;  %p5440_p13 = scmp.lt.s32.totalorder %s322_s1, 4  ;;  %v4150_v35 = vld [vmem:[#allocation4 + $0x48] sm:$0xf]  ;;  %v4745_v36 = vld [vmem:[#allocation4 + $0x50] sm:$0xf0]  ;;  %s4061_s16 = sshll.u32 %s332_s12, 2  ;;  %v5445_v37 = vor.u32 %v4749_v32, %v4170_v31 }
  0x4a   : > { %v4744_v38 = vld [vmem:[#allocation4 + $0x4c] sm:$0xf]  ;;  %v4152_v39 = vld [vmem:[#allocation4 + $0x54] sm:$0xf0]  ;;  %s335_s1 = scalar_lea.hbm %s6598_s0, %s4061_s16  ;;  %v4158_v40 = vld [vmem:[#allocation4 + $0x50] sm:$0xf]  ;;  %v4151_v42 = vor.u32 %v4745_v36, %v4150_v35 }
  0x4b   : > { %619 = vmatpush.bf16.msra.mxu0 %v4175_v24  ;;  %v4746_v41 = vld [vmem:[#allocation4 + $0x58] sm:$0xf0]  ;;  %s347_s23 = sshll.u32 %s335_s1, 4  ;;  %v4138_v43 = vld [vmem:[#allocation4 + $0x30] sm:$0xf]  ;;  %v4155_v45 = vor.u32 %v4744_v38, %v4152_v39  ;;  %s339_s11 = scalar_lea.sflag [#allocation3], %s327_s13  ;;  %s5451_s23 = int_to_ptr.hbm [resolvable:$true] %s347_s23 }
  0x4c   : > { %688 = vmatpush.bf16.msra.mxu1 %v4179_v25  ;;  %4882 = vmatpush.bf16.msra.mxu3 %v4179_v25  ;;  %v4742_v44 = vld [vmem:[#allocation4 + $0x38] sm:$0xf0]  ;;  %v4741_v46 = vld [vmem:[#allocation4 + $0x34] sm:$0xf]  ;;  %v4140_v47 = vld [vmem:[#allocation4 + $0x3c] sm:$0xf0] }
  0x4d   : > { %757 = vmatpush.bf16.msra.mxu2 %v5434_v28  ;;  %s5102_s12 = sshra.s32 %s5451_s23, 4  ;;  %s5103_s12 = int_to_ptr.hbm [resolvable:$true] %s5102_s12 }
  0x4e   : > { %s5104_s17 = scalar_lea.hbm %s5103_s12, 128  ;;  %p5109_p4 = scmp.lt.s32.totalorder %s5103_s12, %s6598_s0 }
  0x4f   : > { %620 = vmatpush.bf16.msra.mxu0 %v4163_v33  ;;  %p5105_p0 = scmp.ne.s32.totalorder %s5103_s12, %s5104_s17  ;;  %p5110_p5 = scmp.lt.s32.totalorder %s5080_s22, %s5104_s17 }
  0x50   : > { %689 = vmatpush.bf16.msra.mxu1 %v4167_v34  ;;  %4883 = vmatpush.bf16.msra.mxu3 %v4167_v34 }
  0x51   : > { %p5106_p1 = pnand %p5105_p0, %p5440_p13  ;;  %p5111_p6 = por %p5110_p5, %p5109_p4 }
  0x53   : > { %p5107_p2 = pneg %p5106_p1 }
  0x55   : > { %p5112_p7 = pnand %p5111_p6, %p5107_p2 }
  0x57   : > { %5115 = shalt.err (!%p5112_p7)  }
  0x58   : > { %s5116_s20 = sshra.s32 %s350_s14, 4  ;;  %s6637_s16 = smov [#allocation2]   ;;  %s5117_s20 = int_to_ptr.vmem [resolvable:$true] %s5116_s20 }
  0x59   : > { %s5118_s13 = scalar_lea.vmem %s5117_s20, 128  ;;  %s5122_s12 = scalar_lea.vmem %s6637_s16, 256 }
  0x5a   : > { %p5119_p9 = scmp.ne.s32.totalorder %s5117_s20, %s5118_s13  ;;  %p5123_p12 = scmp.lt.s32.totalorder %s5117_s20, [#allocation2] }
  0x5b   : > { %p5124_p0 = scmp.lt.s32.totalorder %s5122_s12, %s5118_s13 }
  0x5c   : > { %p5120_p10 = pnand %p5119_p9, %p5440_p13 }
  0x5d   : > { %p5125_p1 = por %p5124_p0, %p5123_p12 }
  0x5e   : > { %p5121_p11 = pneg %p5120_p10 }
  0x60   : > { %p5126_p8 = pnand %p5125_p1, %p5121_p11 }
  0x62   : > { %5129 = shalt.err (!%p5126_p8)  }
  0x63   : > { %4907 = dma.hbm_to_vmem [thread:$0]  (%p5440_p13), %s5451_s23, 2048, %s350_s14, %s339_s11  ;;  %758 = vmatpush.bf16.msra.mxu2 %v5445_v37  ;;  %v4159_v48 = vor.u32 %v4746_v41, %v4158_v40  ;;  %v4146_v49 = vld [vmem:[#allocation4 + $0x38] sm:$0xf]  ;;  %v4743_v50 = vld [vmem:[#allocation4 + $0x40] sm:$0xf0]  ;;  %621 = vmatpush.bf16.msra.mxu0 %v4151_v42  ;;  %v4139_v51 = vor.u32 %v4742_v44, %v4138_v43  ;;  %v4143_v52 = vor.u32 %v4741_v46, %v4140_v47  ;;  %vm848_vm0 = vcmask 1046528  }
  0x64   : > { %690 = vmatpush.bf16.msra.mxu1 %v4155_v45  ;;  %4884 = vmatpush.bf16.msra.mxu3 %v4155_v45  ;;  %v4126_v53 = vld [vmem:[#allocation4 + $0x18] sm:$0xf]  ;;  %v4739_v54 = vld [vmem:[#allocation4 + $0x20] sm:$0xf0]  ;;  %v4147_v55 = vor.u32 %v4743_v50, %v4146_v49  ;;  %v4738_v56 = vld [vmem:[#allocation4 + $0x1c] sm:$0xf] }
  0x65   : > { %v4128_v57 = vld [vmem:[#allocation4 + $0x24] sm:$0xf0]  ;;  %v4134_v58 = vld [vmem:[#allocation4 + $0x20] sm:$0xf]  ;;  %v4740_v59 = vld [vmem:[#allocation4 + $0x28] sm:$0xf0]  ;;  %v4127_v60 = vor.u32 %v4739_v54, %v4126_v53 }
  0x66   : > { %v4131_v61 = vor.u32 %v4738_v56, %v4128_v57  ;;  %v4114_v62 = vld [vmem:[#allocation4] sm:$0xf]  ;;  %v4736_v63 = vld [vmem:[#allocation4 + $0x8] sm:$0xf0]  ;;  %v4135_v0 = vor.u32 %v4740_v59, %v4134_v58  ;;  %v4735_v1 = vld [vmem:[#allocation4 + $0x4] sm:$0xf] }
  0x67   : > { %759 = vmatpush.bf16.msra.mxu2 %v4159_v48  ;;  %622 = vmatpush.bf16.msra.mxu0 %v4139_v51  ;;  %v4116_v2 = vld [vmem:[#allocation4 + $0xc] sm:$0xf0]  ;;  %v4122_v3 = vld [vmem:[#allocation4 + $0x8] sm:$0xf]  ;;  %v4737_v4 = vld [vmem:[#allocation4 + $0x10] sm:$0xf0]  ;;  %v4115_v7 = vor.u32 %v4736_v63, %v4114_v62 }
  0x68   : > { %691 = vmatpush.bf16.msra.mxu1 %v4143_v52  ;;  %4885 = vmatpush.bf16.msra.mxu3 %v4143_v52  ;;  %v4780_v5 = vld [vmem:[#allocation4 + $0x16c] sm:$0xf]  ;;  %v4304_v6 = vld [vmem:[#allocation4 + $0x174] sm:$0xf0]  ;;  %v4119_v9 = vor.u32 %v4735_v1, %v4116_v2  ;;  %v4123_v10 = vor.u32 %v4737_v4, %v4122_v3  ;;  %v4719_v12 = vld [vmem:[%s5417_s9] sm:$0xff]  ;;  %vm970_vm1 = vcmask 1045504  }
  0x69   : > { %v4307_v11 = vor.u32 %v4780_v5, %v4304_v6  ;;  %v4777_v13 = vld [vmem:[#allocation4 + $0x154] sm:$0xf]  ;;  %v4292_v14 = vld [vmem:[#allocation4 + $0x15c] sm:$0xf0]  ;;  %v5478_v15 = vld [vmem:[%s5417_s9 + $0x48] sm:$0xff]  ;;  %s4417_s22 = sadd.s32 4294967295, %s4716_s29 }
  0x6a   : > { %v4295_v16 = vor.u32 %v4777_v13, %v4292_v14  ;;  %v4720_v17 = vld [vmem:[%s5417_s9 + $0x8] sm:$0xff]  ;;  %v5487_v18 = vld [vmem:[%s5417_s9 + $0x50] sm:$0xff]  ;;  %v5494_v22 = vld [vmem:[%s5417_s9 + $0x58] sm:$0xff]  ;;  %s4879_s16 = sshll.u32 %s5218_s27, 3  ;;  %s4709_s12 = sshll.u32 %s5222_s28, 5 }
  0x6b   : > { %760 = vmatpush.bf16.msra.mxu2 %v4147_v55  ;;  %623 = vmatpush.bf16.msra.mxu0 %v4127_v60  ;;  %v4280_v20 = vld [vmem:[#allocation4 + $0x144] sm:$0xf0]  ;;  %v4781_v24 = vld [vmem:[#allocation4 + $0x170] sm:$0xf0]  ;;  %v4290_v26 = vld [vmem:[#allocation4 + $0x150] sm:$0xf] }
  0x6c   : > { %692 = vmatpush.bf16.msra.mxu1 %v4131_v61  ;;  %4886 = vmatpush.bf16.msra.mxu3 %v4131_v61  ;;  %v4302_v23 = vld [vmem:[#allocation4 + $0x168] sm:$0xf]  ;;  %v4778_v27 = vld [vmem:[#allocation4 + $0x158] sm:$0xf0]  ;;  %v4268_v30 = vld [vmem:[#allocation4 + $0x12c] sm:$0xf0] }
  0x6d   : > { %v4303_v25 = vor.u32 %v4781_v24, %v4302_v23  ;;  %v4291_v29 = vor.u32 %v4778_v27, %v4290_v26  ;;  %v4278_v32 = vld [vmem:[#allocation4 + $0x138] sm:$0xf]  ;;  %v4775_v33 = vld [vmem:[#allocation4 + $0x140] sm:$0xf0]  ;;  %v4266_v35 = vld [vmem:[#allocation4 + $0x120] sm:$0xf] }
  0x6e   : > { %v4279_v34 = vor.u32 %v4775_v33, %v4278_v32  ;;  %v4772_v36 = vld [vmem:[#allocation4 + $0x128] sm:$0xf0]  ;;  %v5501_v38 = vld [vmem:[%s5417_s9 + $0x18] sm:$0xff]  ;;  %v4254_v39 = vld [vmem:[#allocation4 + $0x108] sm:$0xf]  ;;  %s3930_s29 = sshll.u32 %s5415_s18, 4  ;;  %s3931_s29 = int_to_ptr.vmem [resolvable:$true] %s3930_s29 }
  0x6f   : > { %761 = vmatpush.bf16.msra.mxu2 %v4135_v0  ;;  %624 = vmatpush.bf16.msra.mxu0 %v4115_v7  ;;  %v4769_v40 = vld [vmem:[#allocation4 + $0x110] sm:$0xf0]  ;;  %v4242_v42 = vld [vmem:[#allocation4 + $0xf0] sm:$0xf]  ;;  %v4766_v43 = vld [vmem:[#allocation4 + $0xf8] sm:$0xf0] }
  0x70   : > { %693 = vmatpush.bf16.msra.mxu1 %v4119_v9  ;;  %4887 = vmatpush.bf16.msra.mxu3 %v4119_v9  ;;  %v4255_v41 = vor.u32 %v4769_v40, %v4254_v39  ;;  %v4243_v44 = vor.u32 %v4766_v43, %v4242_v42  ;;  %v4230_v45 = vld [vmem:[#allocation4 + $0xd8] sm:$0xf]  ;;  %v4763_v46 = vld [vmem:[#allocation4 + $0xe0] sm:$0xf0]  ;;  %v4760_v49 = vld [vmem:[#allocation4 + $0xc8] sm:$0xf0] }
  0x71   : > { %v4231_v47 = vor.u32 %v4763_v46, %v4230_v45  ;;  %v5508_v51 = vld [vmem:[%s5417_s9 + $0x20] sm:$0xff]  ;;  %v4768_v52 = vld [vmem:[#allocation4 + $0x10c] sm:$0xf]  ;;  %v4256_v53 = vld [vmem:[#allocation4 + $0x114] sm:$0xf0]  ;;  %s6667_s23 = sand.u32 1, %s5210_s25  }
  0x72   : > { %625 = vmatmul.bf16.vlgmr.msra.gmra.mxu0 %v4719_v12  ;;  %v4259_v54 = vor.u32 %v4768_v52, %v4256_v53  ;;  %v4765_v56 = vld [vmem:[#allocation4 + $0xf4] sm:$0xf]  ;;  %v4244_v57 = vld [vmem:[#allocation4 + $0xfc] sm:$0xf0]  ;;  %v5529_v60 = vld [vmem:[%s5417_s9 + $0x38] sm:$0xff]  ;;  %s3915_s11 = scalar_lea.sflag [#allocation6], %s6667_s23 }
  0x73   : > { %762 = vmatpush.bf16.msra.mxu2 %v4123_v10  ;;  %1310 = vmatpush.bf16.msrb.mxu0 %v4307_v11  ;;  %v4247_v58 = vor.u32 %v4765_v56, %v4244_v57  ;;  %v5522_v59 = vld [vmem:[%s5417_s9 + $0x30] sm:$0xff]  ;;  %v4762_v61 = vld [vmem:[#allocation4 + $0xdc] sm:$0xf]  ;;  %v4232_v62 = vld [vmem:[#allocation4 + $0xe4] sm:$0xf0]  ;;  %s5150_s20 = scalar_lea.hbm %s6605_s7, 512 }
  0x74   : > { %4888 = vmatpush.bf16.msrb.mxu3 %v5426_v8  ;;  %694 = vmatmul.bf16.vlgmr.msra.gmra.mxu1 %v4719_v12  ;;  %v4774_v8 = vld [vmem:[#allocation4 + $0x13c] sm:$0xf]  ;;  %v4235_v63 = vor.u32 %v4762_v61, %v4232_v62  ;;  %v4310_v3 = vld [vmem:[#allocation4 + $0x170] sm:$0xf]  ;;  %v4779_v13 = vld [vmem:[#allocation4 + $0x160] sm:$0xf0] }
  0x75   : > { %739 = vmatmul.bf16.vlgmr.msra.gmra.mxu3 %v5478_v15  ;;  %v4283_v21 = vor.u32 %v4774_v8, %v4280_v20  ;;  %v4782_v4 = vld [vmem:[#allocation4 + $0x178] sm:$0xf0]  ;;  %v4220_v8 = vld [vmem:[#allocation4 + $0xcc] sm:$0xf0]  ;;  %v4805_v23 = vld [vmem:[#allocation4 + $0x230] sm:$0xf0] }
  0x76   : > { %763 = vmatmul.bf16.vlgmr.msra.gmra.mxu2 %v4719_v12  ;;  %v4311_v5 = vor.u32 %v4782_v4, %v4310_v3  ;;  %v4298_v12 = vld [vmem:[#allocation4 + $0x158] sm:$0xf]  ;;  %v4286_v26 = vld [vmem:[#allocation4 + $0x140] sm:$0xf]  ;;  %v4776_v27 = vld [vmem:[#allocation4 + $0x148] sm:$0xf0] }
  0x77   : > { %1311 = vmatpush.bf16.msrb.mxu0 %v4295_v16  ;;  %v4299_v16 = vor.u32 %v4779_v13, %v4298_v12  ;;  %v4274_v40 = vld [vmem:[#allocation4 + $0x128] sm:$0xf]  ;;  %v4382_v46 = vld [vmem:[#allocation4 + $0x1f8] sm:$0xf]  ;;  %v4770_v52 = vld [vmem:[#allocation4 + $0x118] sm:$0xf0] }
  0x78   : > { %4889 = vmatpush.bf16.msrb.mxu3 %v5431_v19  ;;  %v5491_v19 = vld [vmem:[%s5417_s9 + $0x10] sm:$0xff]  ;;  %1379 = vmatpush.bf16.msrb.mxu1 %v4311_v5  ;;  %v4370_v61 = vld [vmem:[#allocation4 + $0x1e0] sm:$0xf]  ;;  %v4796_v62 = vld [vmem:[#allocation4 + $0x1e8] sm:$0xf0] }
  0x79   : > { %v4250_v3 = vld [vmem:[#allocation4 + $0xf8] sm:$0xf]  ;;  %v4767_v4 = vld [vmem:[#allocation4 + $0x100] sm:$0xf0]  ;;  %v4358_v12 = vld [vmem:[#allocation4 + $0x1c8] sm:$0xf] }
  0x7a   : > { %v4793_v13 = vld [vmem:[#allocation4 + $0x1d0] sm:$0xf0] }
  0x7b   : > { %1312 = vmatpush.bf16.msrb.mxu0 %v4283_v21  ;;  %v4406_v21 = vld [vmem:[#allocation4 + $0x228] sm:$0xf] }
  0x7c   : > { %4890 = vmatpush.bf16.msrb.mxu3 %v5434_v28  ;;  %v4771_v28 = vld [vmem:[#allocation4 + $0x124] sm:$0xf]  ;;  %1380 = vmatpush.bf16.msrb.mxu1 %v4299_v16  ;;  %v4407_v24 = vor.u32 %v4805_v23, %v4406_v21  ;;  %v4359_v16 = vor.u32 %v4793_v13, %v4358_v12  ;;  %v4764_v21 = vld [vmem:[#allocation4 + $0xe8] sm:$0xf0]  ;;  %v4396_v12 = vld [vmem:[#allocation4 + $0x21c] sm:$0xf0] }
  0x7d   : > { %v4271_v31 = vor.u32 %v4771_v28, %v4268_v30 }
  0x7e   : > { %1887 = vmatpush.bf16.msrb.mxu2 %v4407_v24 }
  0x7f   : > { %1313 = vmatpush.bf16.msrb.mxu0 %v4271_v31 }
  0x80   : > { %4891 = vmatpush.bf16.msrb.mxu3 %v5445_v37  ;;  %v4267_v37 = vor.u32 %v4772_v36, %v4266_v35  ;;  %v4802_v35 = vld [vmem:[#allocation4 + $0x218] sm:$0xf0] }
  0x82   : > { %630 = vmatmul.bf16.gmra.mxu0 %v4720_v17 }
  0x83   : > { %1314 = vmatpush.bf16.msrb.mxu0 %v4259_v54 }
  0x84   : > { %4892 = vmatpush.bf16.msrb.mxu3 %v4159_v48  ;;  %699 = vmatmul.bf16.gmra.mxu1 %v4720_v17  ;;  %v4218_v48 = vld [vmem:[#allocation4 + $0xc0] sm:$0xf] }
  0x85   : > { %744 = vmatmul.bf16.gmra.mxu3 %v5487_v18  ;;  %v4219_v50 = vor.u32 %v4760_v49, %v4218_v48 }
  0x86   : > { %768 = vmatmul.bf16.gmra.mxu2 %v4720_v17  ;;  %v4759_v17 = vld [vmem:[#allocation4 + $0xc4] sm:$0xf] }
  0x87   : > { %1315 = vmatpush.bf16.msrb.mxu0 %v4247_v58  ;;  %v4223_v20 = vor.u32 %v4759_v17, %v4220_v8 }
  0x88   : > { %4893 = vmatpush.bf16.msrb.mxu3 %v4147_v55  ;;  %v5515_v55 = vld [vmem:[%s5417_s9 + $0x28] sm:$0xff] }
  0x8b   : > { %1316 = vmatpush.bf16.msrb.mxu0 %v4235_v63 }
  0x8c   : > { %4894 = vmatpush.bf16.msrb.mxu3 %v4135_v0  ;;  %v5536_v0 = vld [vmem:[%s5417_s9 + $0x40] sm:$0xff] }
  0x8f   : > { %1317 = vmatpush.bf16.msrb.mxu0 %v4223_v20  ;;  %v4238_v20 = vld [vmem:[#allocation4 + $0xe0] sm:$0xf] }
  0x90   : > { %4895 = vmatpush.bf16.msrb.mxu3 %v4123_v10  ;;  %v4239_v24 = vor.u32 %v4764_v21, %v4238_v20 }
  0x92   : > { %635 = vmatmul.bf16.gmra.mxu0 %v5491_v19 }
  0x94   : > { %704 = vmatmul.bf16.gmra.mxu1 %v5491_v19  ;;  %1241 = vmatpush.bf16.msra.mxu3 %v4303_v25 }
  0x95   : > { %749 = vmatmul.bf16.gmra.mxu3 %v5494_v22 }
  0x96   : > { %773 = vmatmul.bf16.gmra.mxu2 %v5491_v19 }
  0x98   : > { %1242 = vmatpush.bf16.msra.mxu3 %v4291_v29  ;;  %v4287_v29 = vor.u32 %v4776_v27, %v4286_v26 }
  0x9a   : > { %1381 = vmatpush.bf16.msrb.mxu1 %v4287_v29  ;;  %v4790_v29 = vld [vmem:[#allocation4 + $0x1b8] sm:$0xf0] }
  0x9c   : > { %1243 = vmatpush.bf16.msra.mxu3 %v4279_v34  ;;  %v4394_v34 = vld [vmem:[#allocation4 + $0x210] sm:$0xf] }
  0x9d   : > { %v4395_v39 = vor.u32 %v4802_v35, %v4394_v34  ;;  %v4226_v35 = vld [vmem:[#allocation4 + $0xc8] sm:$0xf] }
  0x9f   : > { %1888 = vmatpush.bf16.msrb.mxu2 %v4395_v39  ;;  %v4414_v39 = vld [vmem:[#allocation4 + $0x230] sm:$0xf] }
  0xa0   : > { %1244 = vmatpush.bf16.msra.mxu3 %v4267_v37 }
  0xa2   : > { %640 = vmatmul.bf16.gmra.mxu0 %v5501_v38 }
  0xa4   : > { %709 = vmatmul.bf16.gmra.mxu1 %v5501_v38  ;;  %1245 = vmatpush.bf16.msra.mxu3 %v4255_v41  ;;  %v4773_v41 = vld [vmem:[#allocation4 + $0x130] sm:$0xf0] }
  0xa5   : > { %808 = vmatmul.bf16.vlgmr.msrb.gmra.mxu3 %v5478_v15  ;;  %v4275_v43 = vor.u32 %v4773_v41, %v4274_v40  ;;  %v4806_v40 = vld [vmem:[#allocation4 + $0x238] sm:$0xf0]  ;;  %v4334_v41 = vld [vmem:[#allocation4 + $0x198] sm:$0xf] }
  0xa6   : > { %778 = vmatmul.bf16.gmra.mxu2 %v5501_v38 }
  0xa7   : > { %1382 = vmatpush.bf16.msrb.mxu1 %v4275_v43  ;;  %v4415_v43 = vor.u32 %v4806_v40, %v4414_v39 }
  0xa8   : > { %1246 = vmatpush.bf16.msra.mxu3 %v4243_v44 }
  0xa9   : > { %2025 = vmatpush.bf16.msra.mxu0 %v4415_v43 }
  0xac   : > { %1247 = vmatpush.bf16.msra.mxu3 %v4231_v47  ;;  %v4799_v47 = vld [vmem:[#allocation4 + $0x200] sm:$0xf0] }
  0xad   : > { %v4383_v49 = vor.u32 %v4799_v47, %v4382_v46 }
  0xaf   : > { %1889 = vmatpush.bf16.msrb.mxu2 %v4383_v49 }
  0xb0   : > { %1248 = vmatpush.bf16.msra.mxu3 %v4219_v50  ;;  %v4262_v50 = vld [vmem:[#allocation4 + $0x110] sm:$0xf] }
  0xb1   : > { %v4263_v54 = vor.u32 %v4770_v52, %v4262_v50  ;;  %v4322_v52 = vld [vmem:[#allocation4 + $0x180] sm:$0xf] }
  0xb2   : > { %645 = vmatmul.bf16.gmra.mxu0 %v5508_v51 }
  0xb3   : > { %1383 = vmatpush.bf16.msrb.mxu1 %v4263_v54 }
  0xb4   : > { %714 = vmatmul.bf16.gmra.mxu1 %v5508_v51 }
  0xb5   : > { %813 = vmatmul.bf16.gmra.mxu3 %v5487_v18 }
  0xb6   : > { %783 = vmatmul.bf16.gmra.mxu2 %v5508_v51 }
  0xc2   : > { %650 = vmatmul.bf16.gmra.mxu0 %v5515_v55 }
  0xc4   : > { %719 = vmatmul.bf16.gmra.mxu1 %v5515_v55 }
  0xc5   : > { %818 = vmatmul.bf16.gmra.mxu3 %v5494_v22 }
  0xc6   : > { %788 = vmatmul.bf16.gmra.mxu2 %v5515_v55 }
  0xd2   : > { %655 = vmatmul.bf16.gmra.mxu0 %v5522_v59 }
  0xd4   : > { %724 = vmatmul.bf16.gmra.mxu1 %v5522_v59 }
  0xd5   : > { %1249 = vmatmul.bf16.vlgmr.msra.gmra.mxu3 %v5491_v19 }
  0xd6   : > { %793 = vmatmul.bf16.gmra.mxu2 %v5522_v59 }
  0xe2   : > { %660 = vmatmul.bf16.gmra.mxu0 %v5529_v60 }
  0xe4   : > { %729 = vmatmul.bf16.gmra.mxu1 %v5529_v60 }
  0xe5   : > { %1254 = vmatmul.bf16.gmra.mxu3 %v5501_v38 }
  0xe6   : > { %798 = vmatmul.bf16.gmra.mxu2 %v5529_v60 }
  0xef   : > { %v626_v1 = vpop.f32.mrf.mxu0 }
  0xf1   : > { %v695_v2 = vpop.f32.mrf.mxu1 }
  0xf2   : > { %665 = vmatmul.bf16.gmra.mxu0 %v5536_v0  ;;  %v849_v7 = vrot.slane %v695_v2, 1  ;;  %v4371_v2 = vor.u32 %v4796_v62, %v4370_v61 }
  0xf4   : > { %734 = vmatmul.bf16.gmra.mxu1 %v5536_v0  ;;  %1890 = vmatpush.bf16.msrb.mxu2 %v4371_v2 }
  0xf5   : > { %1259 = vmatmul.bf16.gmra.mxu3 %v5508_v51 }
  0xf6   : > { %803 = vmatmul.bf16.gmra.mxu2 %v5536_v0 }
  0xf7   : > { %v628_v10 = vpop.f32.mrf.mxu0 }
  0xf8   : > { %v5542_v6 = vpop.f32.mrf.mxu3  ;;  %1891 = vmatpush.bf16.msrb.mxu2 %v4359_v16 }
  0xf9   : > { %v764_v9 = vpop.f32.mrf.mxu2  ;;  %v697_v11 = vpop.f32.mrf.mxu1 }
  0xfa   : > { %v850_v14 = vrot.slane %v697_v11, 1  ;;  %v971_v30 = vrot.slane %v764_v9, 2  ;;  %v4804_v9 = vld [vmem:[#allocation4 + $0x22c] sm:$0xf]  ;;  %v4408_v11 = vld [vmem:[#allocation4 + $0x234] sm:$0xf0] }
  0xfc   : > { %v851_v25 = vsel %vm848_vm0, %v849_v7, %v850_v14  ;;  %v4251_v7 = vor.u32 %v4767_v4, %v4250_v3 }
  0xfd   : > { %v922_v28 = vadd.f32 %v851_v25, %v626_v1 }
  0xfe   : > { %1384 = vmatpush.bf16.msrb.mxu1 %v4251_v7 }
  0xff   : > { %v631_v33 = vpop.f32.mrf.mxu0 }
 0x100   : > { %v5545_v31 = vpop.f32.mrf.mxu3 }
 0x101   : > { %v766_v32 = vpop.f32.mrf.mxu2  ;;  %v700_v37 = vpop.f32.mrf.mxu1 }
 0x102   : > { %v972_v36 = vrot.slane %v766_v32, 2  ;;  %v852_v42 = vrot.slane %v700_v37, 1  ;;  %670 = vmatmul.bf16.gmra.mxu0 %v5478_v15  ;;  %1385 = vmatpush.bf16.msrb.mxu1 %v4239_v24 }
 0x104   : > { %v973_v44 = vsel %vm970_vm1, %v971_v30, %v972_v36  ;;  %v853_v45 = vsel %vm848_vm0, %v850_v14, %v852_v42 }
 0x105   : > { %1264 = vmatmul.bf16.gmra.mxu3 %v5515_v55  ;;  %v5551_v48 = vadd.f32 %v973_v44, %v922_v28  ;;  %v923_v53 = vadd.f32 %v853_v45, %v628_v10  ;;  %v4411_v10 = vor.u32 %v4804_v9, %v4408_v11  ;;  %v4346_v28 = vld [vmem:[#allocation4 + $0x1b0] sm:$0xf]  ;;  %v4787_v44 = vld [vmem:[#allocation4 + $0x1a0] sm:$0xf0] }
 0x106   : > { %v4347_v34 = vor.u32 %v4790_v29, %v4346_v28  ;;  %v4335_v45 = vor.u32 %v4787_v44, %v4334_v41  ;;  %v4803_v28 = vld [vmem:[#allocation4 + $0x220] sm:$0xf0] }
 0x107   : > { %v633_v58 = vpop.f32.mrf.mxu0  ;;  %1956 = vmatpush.bf16.msrb.mxu3 %v4411_v10  ;;  %v4801_v10 = vld [vmem:[#allocation4 + $0x214] sm:$0xf] }
 0x108   : > { %v5553_v56 = vpop.f32.mrf.mxu3  ;;  %1892 = vmatpush.bf16.msrb.mxu2 %v4347_v34 }
 0x109   : > { %v769_v57 = vpop.f32.mrf.mxu2  ;;  %v702_v1 = vpop.f32.mrf.mxu1 }
 0x10a   : > { %v974_v63 = vrot.slane %v769_v57, 2  ;;  %v854_v5 = vrot.slane %v702_v1, 1 }
 0x10c   : > { %v975_v14 = vsel %vm970_vm1, %v972_v36, %v974_v63  ;;  %v855_v8 = vsel %vm848_vm0, %v852_v42, %v854_v5  ;;  %v4761_v36 = vld [vmem:[#allocation4 + $0xd0] sm:$0xf0]  ;;  %1893 = vmatpush.bf16.msrb.mxu2 %v4335_v45 }
 0x10d   : > { %v5556_v17 = vadd.f32 %v975_v14, %v923_v53  ;;  %v924_v23 = vadd.f32 %v855_v8, %v631_v33  ;;  %v4227_v37 = vor.u32 %v4761_v36, %v4226_v35  ;;  %v4784_v53 = vld [vmem:[#allocation4 + $0x188] sm:$0xf0]  ;;  %v4399_v14 = vor.u32 %v4801_v10, %v4396_v12 }
 0x10e   : > { %v4323_v57 = vor.u32 %v4784_v53, %v4322_v52  ;;  %v884_v36 = vrot.slane %v5542_v6, 1 }
 0x10f   : > { %v636_v27 = vpop.f32.mrf.mxu0  ;;  %1386 = vmatpush.bf16.msrb.mxu1 %v4227_v37  ;;  %1957 = vmatpush.bf16.msrb.mxu3 %v4399_v14  ;;  %v886_v37 = vrot.slane %v5545_v31, 1 }
 0x110   : > { %v5559_v25 = vpop.f32.mrf.mxu3  ;;  %1894 = vmatpush.bf16.msrb.mxu2 %v4323_v57  ;;  %v4384_v57 = vld [vmem:[#allocation4 + $0x204] sm:$0xf0] }
 0x111   : > { %v771_v26 = vpop.f32.mrf.mxu2  ;;  %v705_v32 = vpop.f32.mrf.mxu1  ;;  %v5595_v44 = vsel %vm848_vm0, %v884_v36, %v886_v37 }
 0x112   : > { %v976_v30 = vrot.slane %v771_v26, 2  ;;  %675 = vmatmul.bf16.gmra.mxu0 %v5487_v18  ;;  %1387 = vmatmul.bf16.vlgmr.msrb.gmra.mxu1 %v5491_v19  ;;  %v856_v47 = vrot.slane %v705_v32, 1 }
 0x113   : > { %1895 = vmatmul.bf16.vlgmr.msrb.gmra.mxu2 %v5508_v51 }
 0x114   : > { %v977_v33 = vsel %vm970_vm1, %v974_v63, %v976_v30 }
 0x115   : > { %1269 = vmatmul.bf16.gmra.mxu3 %v5522_v59  ;;  %v5564_v42 = vadd.f32 %v977_v33, %v924_v23 }
 0x117   : > { %v638_v50 = vpop.f32.mrf.mxu0 }
 0x118   : > { %v5566_v46 = vpop.f32.mrf.mxu3 }
 0x119   : > { %v774_v49 = vpop.f32.mrf.mxu2  ;;  %v707_v54 = vpop.f32.mrf.mxu1 }
 0x11a   : > { %v858_v58 = vrot.slane %v707_v54, 1  ;;  %v978_v63 = vrot.slane %v774_v49, 2  ;;  %v4798_v54 = vld [vmem:[#allocation4 + $0x1fc] sm:$0xf] }
 0x11c   : > { %v859_v61 = vsel %vm848_vm0, %v856_v47, %v858_v58 }
 0x11d   : > { %v926_v62 = vadd.f32 %v859_v61, %v636_v27  ;;  %v4402_v27 = vld [vmem:[#allocation4 + $0x218] sm:$0xf] }
 0x11e   : > { %v4403_v29 = vor.u32 %v4803_v28, %v4402_v27 }
 0x11f   : > { %v641_v3 = vpop.f32.mrf.mxu0 }
 0x120   : > { %v5570_v1 = vpop.f32.mrf.mxu3  ;;  %2026 = vmatpush.bf16.msra.mxu0 %v4403_v29 }
 0x121   : > { %v776_v2 = vpop.f32.mrf.mxu2  ;;  %v710_v5 = vpop.f32.mrf.mxu1 }
 0x122   : > { %v980_v4 = vrot.slane %v776_v2, 2  ;;  %v860_v7 = vrot.slane %v710_v5, 1  ;;  %680 = vmatmul.bf16.gmra.mxu0 %v5494_v22  ;;  %1392 = vmatmul.bf16.gmra.mxu1 %v5501_v38  ;;  %v890_v2 = vrot.slane %v5559_v25, 1 }
 0x123   : > { %1900 = vmatmul.bf16.gmra.mxu2 %v5515_v55 }
 0x124   : > { %v981_v9 = vsel %vm970_vm1, %v978_v63, %v980_v4  ;;  %v861_v11 = vsel %vm848_vm0, %v858_v58, %v860_v7  ;;  %v4387_v58 = vor.u32 %v4798_v54, %v4384_v57  ;;  %v888_v63 = vrot.slane %v5553_v56, 1  ;;  %v4372_v54 = vld [vmem:[#allocation4 + $0x1ec] sm:$0xf0] }
 0x125   : > { %1274 = vmatmul.bf16.gmra.mxu3 %v5529_v60  ;;  %v5577_v13 = vadd.f32 %v981_v9, %v926_v62  ;;  %v927_v16 = vadd.f32 %v861_v11, %v638_v50 }
 0x126   : > { %1958 = vmatpush.bf16.msrb.mxu3 %v4387_v58  ;;  %v5613_v14 = vsel %vm848_vm0, %v888_v63, %v890_v2 }
 0x127   : > { %v643_v21 = vpop.f32.mrf.mxu0 }
 0x128   : > { %v5579_v8 = vpop.f32.mrf.mxu3 }
 0x129   : > { %v779_v20 = vpop.f32.mrf.mxu2  ;;  %v712_v24 = vpop.f32.mrf.mxu1 }
 0x12a   : > { %v982_v23 = vrot.slane %v779_v20, 2  ;;  %v862_v26 = vrot.slane %v712_v24, 1  ;;  %v4800_v20 = vld [vmem:[#allocation4 + $0x208] sm:$0xf0] }
 0x12c   : > { %v983_v30 = vsel %vm970_vm1, %v980_v4, %v982_v23  ;;  %v863_v34 = vsel %vm848_vm0, %v860_v7, %v862_v26 }
 0x12d   : > { %v5583_v32 = vadd.f32 %v983_v30, %v927_v16  ;;  %v928_v35 = vadd.f32 %v863_v34, %v641_v3  ;;  %v892_v3 = vrot.slane %v5566_v46, 1  ;;  %v4390_v16 = vld [vmem:[#allocation4 + $0x200] sm:$0xf] }
 0x12f   : > { %v646_v40 = vpop.f32.mrf.mxu0  ;;  %v5617_v25 = vsel %vm848_vm0, %v890_v2, %v892_v3 }
 0x130   : > { %v5588_v33 = vpop.f32.mrf.mxu3 }
 0x131   : > { %v781_v39 = vpop.f32.mrf.mxu2  ;;  %v715_v43 = vpop.f32.mrf.mxu1 }
 0x132   : > { %v984_v41 = vrot.slane %v781_v39, 2  ;;  %1318 = vmatmul.bf16.vlgmr.msrb.gmra.mxu0 %v5491_v19  ;;  %1397 = vmatmul.bf16.gmra.mxu1 %v5508_v51  ;;  %v864_v49 = vrot.slane %v715_v43, 1 }
 0x133   : > { %1905 = vmatmul.bf16.gmra.mxu2 %v5522_v59 }
 0x134   : > { %v985_v45 = vsel %vm970_vm1, %v982_v23, %v984_v41  ;;  %v4391_v23 = vor.u32 %v4800_v20, %v4390_v16 }
 0x135   : > { %1279 = vmatmul.bf16.gmra.mxu3 %v5536_v0  ;;  %v5599_v31 = vadd.f32 %v985_v45, %v928_v35 }
 0x136   : > { %2027 = vmatpush.bf16.msra.mxu0 %v4391_v23 }
 0x137   : > { %v648_v52 = vpop.f32.mrf.mxu0 }
 0x138   : > { %v5601_v47 = vpop.f32.mrf.mxu3 }
 0x139   : > { %v784_v50 = vpop.f32.mrf.mxu2  ;;  %v717_v53 = vpop.f32.mrf.mxu1 }
 0x13a   : > { %v866_v19 = vrot.slane %v717_v53, 1  ;;  %v986_v4 = vrot.slane %v784_v50, 2 }
 0x13c   : > { %v867_v61 = vsel %vm848_vm0, %v864_v49, %v866_v19 }
 0x13d   : > { %v930_v62 = vadd.f32 %v867_v61, %v646_v40  ;;  %v894_v40 = vrot.slane %v5570_v1, 1 }
 0x13f   : > { %v651_v9 = vpop.f32.mrf.mxu0 }
 0x140   : > { %v5608_v5 = vpop.f32.mrf.mxu3 }
 0x141   : > { %v786_v7 = vpop.f32.mrf.mxu2  ;;  %v720_v10 = vpop.f32.mrf.mxu1 }
 0x142   : > { %v988_v11 = vrot.slane %v786_v7, 2  ;;  %v868_v12 = vrot.slane %v720_v10, 1  ;;  %1323 = vmatmul.bf16.gmra.mxu0 %v5501_v38  ;;  %1402 = vmatmul.bf16.gmra.mxu1 %v5515_v55  ;;  %v4378_v7 = vld [vmem:[#allocation4 + $0x1e8] sm:$0xf] }
 0x143   : > { %1910 = vmatmul.bf16.gmra.mxu2 %v5529_v60 }
 0x144   : > { %v989_v56 = vsel %vm970_vm1, %v986_v4, %v988_v11  ;;  %v869_v46 = vsel %vm848_vm0, %v866_v19, %v868_v12  ;;  %v4795_v19 = vld [vmem:[#allocation4 + $0x1e4] sm:$0xf] }
 0x145   : > { %1284 = vmatmul.bf16.gmra.mxu3 %v5478_v15  ;;  %v5621_v21 = vadd.f32 %v989_v56, %v930_v62  ;;  %v931_v24 = vadd.f32 %v869_v46, %v648_v52  ;;  %v5636_v52 = vsel %vm848_vm0, %v892_v3, %v894_v40  ;;  %v4375_v57 = vor.u32 %v4795_v19, %v4372_v54 }
 0x146   : > { %v1006_v56 = vrot.slane %v5579_v8, 2  ;;  %v1008_v46 = vrot.slane %v5588_v33, 2 }
 0x147   : > { %v653_v27 = vpop.f32.mrf.mxu0  ;;  %1959 = vmatpush.bf16.msrb.mxu3 %v4375_v57  ;;  %v4786_v57 = vld [vmem:[#allocation4 + $0x19c] sm:$0xf] }
 0x148   : > { %v5623_v26 = vpop.f32.mrf.mxu3  ;;  %v5658_v33 = vsel %vm970_vm1, %v1006_v56, %v1008_v46 }
 0x149   : > { %v789_v38 = vpop.f32.mrf.mxu2  ;;  %v722_v29 = vpop.f32.mrf.mxu1 }
 0x14a   : > { %v990_v28 = vrot.slane %v789_v38, 2  ;;  %v870_v30 = vrot.slane %v722_v29, 1  ;;  %v4792_v29 = vld [vmem:[#allocation4 + $0x1cc] sm:$0xf] }
 0x14c   : > { %v991_v34 = vsel %vm970_vm1, %v988_v11, %v990_v28  ;;  %v871_v37 = vsel %vm848_vm0, %v868_v12, %v870_v30  ;;  %v4360_v30 = vld [vmem:[#allocation4 + $0x1d4] sm:$0xf0] }
 0x14d   : > { %v5627_v35 = vadd.f32 %v991_v34, %v931_v24  ;;  %v932_v39 = vadd.f32 %v871_v37, %v651_v9  ;;  %v4797_v9 = vld [vmem:[#allocation4 + $0x1f0] sm:$0xf0] }
 0x14e   : > { %v4379_v10 = vor.u32 %v4797_v9, %v4378_v7 }
 0x14f   : > { %v656_v45 = vpop.f32.mrf.mxu0 }
 0x150   : > { %v5631_v41 = vpop.f32.mrf.mxu3  ;;  %2028 = vmatpush.bf16.msra.mxu0 %v4379_v10  ;;  %v1012_v10 = vrot.slane %v5608_v5, 2 }
 0x151   : > { %v791_v43 = vpop.f32.mrf.mxu2  ;;  %v725_v50 = vpop.f32.mrf.mxu1 }
 0x152   : > { %v992_v49 = vrot.slane %v791_v43, 2  ;;  %1328 = vmatmul.bf16.gmra.mxu0 %v5508_v51  ;;  %1407 = vmatmul.bf16.gmra.mxu1 %v5522_v59  ;;  %v872_v61 = vrot.slane %v725_v50, 1 }
 0x153   : > { %1915 = vmatmul.bf16.gmra.mxu2 %v5536_v0 }
 0x154   : > { %v993_v53 = vsel %vm970_vm1, %v990_v28, %v992_v49  ;;  %v4348_v49 = vld [vmem:[#allocation4 + $0x1bc] sm:$0xf0] }
 0x155   : > { %1289 = vmatmul.bf16.gmra.mxu3 %v5487_v18  ;;  %v5640_v1 = vadd.f32 %v993_v53, %v932_v39 }
 0x157   : > { %v658_v2 = vpop.f32.mrf.mxu0 }
 0x158   : > { %v1250_v58 = vpop.f32.mrf.mxu3 }
 0x159   : > { %v794_v62 = vpop.f32.mrf.mxu2  ;;  %v5644_v63 = vadd.f32 %v1250_v58, %v5551_v48  ;;  %v727_v3 = vpop.f32.mrf.mxu1  ;;  %v4336_v58 = vld [vmem:[#allocation4 + $0x1a4] sm:$0xf0] }
 0x15a   : > { %v874_v4 = vrot.slane %v727_v3, 1  ;;  %v994_v16 = vrot.slane %v794_v62, 2 }
 0x15c   : > { %v875_v11 = vsel %vm848_vm0, %v872_v61, %v874_v4 }
 0x15d   : > { %v934_v12 = vadd.f32 %v875_v11, %v656_v45  ;;  %v4789_v45 = vld [vmem:[#allocation4 + $0x1b4] sm:$0xf] }
 0x15e   : > { %v4351_v54 = vor.u32 %v4789_v45, %v4348_v49 }
 0x15f   : > { %v661_v24 = vpop.f32.mrf.mxu0 }
 0x160   : > { %v1252_v20 = vpop.f32.mrf.mxu3 }
 0x161   : > { %v796_v48 = vpop.f32.mrf.mxu2  ;;  %v5651_v23 = vadd.f32 %v1252_v20, %v5556_v17  ;;  %v730_v27 = vpop.f32.mrf.mxu1  ;;  %v4363_v17 = vor.u32 %v4792_v29, %v4360_v30  ;;  %v4324_v20 = vld [vmem:[#allocation4 + $0x18c] sm:$0xf0] }
 0x162   : > { %v996_v38 = vrot.slane %v796_v48, 2  ;;  %v876_v28 = vrot.slane %v730_v27, 1  ;;  %1333 = vmatmul.bf16.gmra.mxu0 %v5515_v55  ;;  %1412 = vmatmul.bf16.gmra.mxu1 %v5529_v60 }
 0x163   : > { %1960 = vmatpush.bf16.msrb.mxu3 %v4363_v17  ;;  %1920 = vmatmul.bf16.gmra.mxu2 %v5478_v15 }
 0x164   : > { %v997_v34 = vsel %vm970_vm1, %v994_v16, %v996_v38  ;;  %v877_v37 = vsel %vm848_vm0, %v874_v4, %v876_v28  ;;  %v4783_v16 = vld [vmem:[#allocation4 + $0x184] sm:$0xf] }
 0x165   : > { %1294 = vmatmul.bf16.gmra.mxu3 %v5494_v22  ;;  %v5662_v39 = vadd.f32 %v997_v34, %v934_v12  ;;  %v935_v40 = vadd.f32 %v877_v37, %v658_v2  ;;  %v4339_v2 = vor.u32 %v4786_v57, %v4336_v58  ;;  %v1014_v12 = vrot.slane %v5623_v26, 2  ;;  %v4794_v34 = vld [vmem:[#allocation4 + $0x1d8] sm:$0xf0] }
 0x166   : > { %v4327_v29 = vor.u32 %v4783_v16, %v4324_v20 }
 0x167   : > { %v663_v19 = vpop.f32.mrf.mxu0  ;;  %1961 = vmatpush.bf16.msrb.mxu3 %v4351_v54  ;;  %v1015_v26 = vsel %vm970_vm1, %v1012_v10, %v1014_v12 }
 0x168   : > { %v1255_v43 = vpop.f32.mrf.mxu3 }
 0x169   : > { %v799_v50 = vpop.f32.mrf.mxu2  ;;  %v5666_v53 = vadd.f32 %v1255_v43, %v5564_v42  ;;  %v732_v62 = vpop.f32.mrf.mxu1  ;;  %v1010_v42 = vrot.slane %v5601_v47, 2 }
 0x16a   : > { %v998_v61 = vrot.slane %v799_v50, 2  ;;  %v878_v3 = vrot.slane %v732_v62, 1 }
 0x16b   : > { %1962 = vmatpush.bf16.msrb.mxu3 %v4339_v2  ;;  %v1013_v5 = vsel %vm970_vm1, %v1010_v42, %v1012_v10  ;;  %v5700_v42 = vld [vmem:[%s5417_s9 + $0x68] sm:$0xff] }
 0x16c   : > { %v999_v4 = vsel %vm970_vm1, %v996_v38, %v998_v61  ;;  %v879_v9 = vsel %vm848_vm0, %v876_v28, %v878_v3  ;;  %v5677_v38 = vld [vmem:[%s5417_s9 + $0x60] sm:$0xff]  ;;  %v1016_v3 = vrot.slane %v5631_v41, 2 }
 0x16d   : > { %v5669_v7 = vadd.f32 %v999_v4, %v935_v40  ;;  %v936_v11 = vadd.f32 %v879_v9, %v661_v24  ;;  %v4366_v24 = vld [vmem:[#allocation4 + $0x1d0] sm:$0xf] }
 0x16e   : > { %v4367_v17 = vor.u32 %v4794_v34, %v4366_v24 }
 0x16f   : > { %v666_v27 = vpop.f32.mrf.mxu0  ;;  %1963 = vmatpush.bf16.msrb.mxu3 %v4327_v29 }
 0x170   : > { %v1257_v46 = vpop.f32.mrf.mxu3  ;;  %2029 = vmatpush.bf16.msra.mxu0 %v4367_v17 }
 0x171   : > { %v801_v48 = vpop.f32.mrf.mxu2  ;;  %v735_v28 = vpop.f32.mrf.mxu1 }
 0x172   : > { %v1000_v30 = vrot.slane %v801_v48, 2  ;;  %1338 = vmatmul.bf16.gmra.mxu0 %v5522_v59  ;;  %1417 = vmatmul.bf16.gmra.mxu1 %v5536_v0  ;;  %v880_v43 = vrot.slane %v735_v28, 1 }
 0x173   : > { %1925 = vmatmul.bf16.gmra.mxu2 %v5487_v18 }
 0x174   : > { %v1001_v47 = vsel %vm970_vm1, %v998_v61, %v1000_v30 }
 0x175   : > { %1299 = vmatmul.bf16.gmra.mxu3 %v5677_v38  ;;  %v5684_v37 = vadd.f32 %v1001_v47, %v936_v11 }
 0x177   : > { %v668_v50 = vpop.f32.mrf.mxu0 }
 0x178   : > { %v1260_v40 = vpop.f32.mrf.mxu3 }
 0x179   : > { %v804_v45 = vpop.f32.mrf.mxu2  ;;  %v5688_v49 = vadd.f32 %v1260_v40, %v5577_v13  ;;  %v737_v19 = vpop.f32.mrf.mxu1 }
 0x17a   : > { %v882_v54 = vrot.slane %v737_v19, 1  ;;  %v1002_v2 = vrot.slane %v804_v45, 2  ;;  %v4788_v19 = vld [vmem:[#allocation4 + $0x1a8] sm:$0xf0] }
 0x17c   : > { %v885_v57 = vsel %vm848_vm0, %v882_v54, %v884_v36  ;;  %v883_v58 = vsel %vm848_vm0, %v880_v43, %v882_v54 }
 0x17d   : > { %v938_v61 = vadd.f32 %v883_v58, %v666_v27  ;;  %v939_v62 = vadd.f32 %v885_v57, %v668_v50  ;;  %v4354_v27 = vld [vmem:[#allocation4 + $0x1b8] sm:$0xf] }
 0x17f   : > { %v671_v11 = vpop.f32.mrf.mxu0 }
 0x180   : > { %v1262_v4 = vpop.f32.mrf.mxu3  ;;  %v940_v36 = vadd.f32 %v5595_v44, %v671_v11 }
 0x181   : > { %v806_v9 = vpop.f32.mrf.mxu2  ;;  %v5697_v13 = vadd.f32 %v1262_v4, %v5583_v32  ;;  %v1017_v32 = vsel %vm970_vm1, %v1014_v12, %v1016_v3 }
 0x182   : > { %v1004_v6 = vrot.slane %v806_v9, 2  ;;  %1343 = vmatmul.bf16.gmra.mxu0 %v5529_v60  ;;  %v5709_v46 = vadd.f32 %v5658_v33, %v940_v36  ;;  %1422 = vmatmul.bf16.gmra.mxu1 %v5478_v15 }
 0x183   : > { %1930 = vmatmul.bf16.gmra.mxu2 %v5494_v22 }
 0x184   : > { %v1005_v10 = vsel %vm970_vm1, %v1002_v2, %v1004_v6  ;;  %v1007_v41 = vsel %vm970_vm1, %v1004_v6, %v1006_v56  ;;  %v4791_v56 = vld [vmem:[#allocation4 + $0x1c0] sm:$0xf0]  ;;  %v4506_v2 = vld [vmem:[#allocation7 + $0xb4] sm:$0xf0] }
 0x185   : > { %1304 = vmatmul.bf16.gmra.mxu3 %v5700_v42  ;;  %v5713_v16 = vadd.f32 %v1005_v10, %v938_v61  ;;  %v5715_v20 = vadd.f32 %v1007_v41, %v939_v62  ;;  %v4355_v29 = vor.u32 %v4791_v56, %v4354_v27  ;;  %v4829_v10 = vld [vmem:[#allocation7 + $0xb0] sm:$0xf0] }
 0x187   : > { %v673_v8 = vpop.f32.mrf.mxu0  ;;  %2030 = vmatpush.bf16.msra.mxu0 %v4355_v29 }
 0x188   : > { %v1265_v44 = vpop.f32.mrf.mxu3  ;;  %v4785_v8 = vld [vmem:[#allocation4 + $0x190] sm:$0xf0] }
 0x189   : > { %v5719_v48 = vadd.f32 %v1265_v44, %v5599_v31  ;;  %v4330_v44 = vld [vmem:[#allocation4 + $0x188] sm:$0xf] }
 0x18a   : > { %v4331_v56 = vor.u32 %v4785_v8, %v4330_v44 }
 0x18f   : > { %v676_v12 = vpop.f32.mrf.mxu0  ;;  %v1388_v47 = vpop.f32.mrf.mxu1 }
 0x190   : > { %v1267_v33 = vpop.f32.mrf.mxu3  ;;  %v942_v30 = vadd.f32 %v5613_v14, %v676_v12  ;;  %v1617_v4 = vrot.slane %v1388_v47, 2 }
 0x192   : > { %1348 = vmatmul.bf16.gmra.mxu0 %v5536_v0  ;;  %v5724_v28 = vadd.f32 %v1013_v5, %v942_v30  ;;  %1427 = vmatmul.bf16.gmra.mxu1 %v5487_v18 }
 0x193   : > { %1935 = vmatmul.bf16.gmra.mxu2 %v5677_v38 }
 0x195   : > { %1964 = vmatmul.bf16.vlgmr.msrb.gmra.mxu3 %v5508_v51 }
 0x196   : > { %v1896_v50 = vpop.f32.mrf.mxu2 }
 0x197   : > { %v678_v34 = vpop.f32.mrf.mxu0  ;;  %v5734_v43 = vpop.f32.mrf.mxu1 }
 0x198   : > { %v1270_v31 = vpop.f32.mrf.mxu3  ;;  %v943_v17 = vadd.f32 %v5617_v25, %v678_v34  ;;  %v6620_v11 = vrot.slane %v5734_v43, 2 }
 0x199   : > { %v5729_v24 = vadd.f32 %v1270_v31, %v5621_v21 }
 0x19a   : > { %v5732_v40 = vadd.f32 %v1015_v26, %v943_v17  ;;  %v4342_v26 = vld [vmem:[#allocation4 + $0x1a0] sm:$0xf]  ;;  %v1619_v33 = vsel %vm970_vm1, %v1617_v4, %v6620_v11  ;;  %v5804_v4 = vld [vmem:[%s5417_s9 + $0x78] sm:$0xff] }
 0x19b   : > { %v4343_v54 = vor.u32 %v4788_v19, %v4342_v26  ;;  %v5783_v19 = vld [vmem:[%s5417_s9 + $0x58] sm:$0xff] }
 0x19d   : > { %2031 = vmatpush.bf16.msra.mxu0 %v4343_v54 }
 0x19e   : > { %v5751_v58 = vpop.f32.mrf.mxu2 }
 0x19f   : > { %v681_v51 = vpop.f32.mrf.mxu0  ;;  %v5745_v25 = vpop.f32.mrf.mxu1 }
 0x1a0   : > { %v1272_v14 = vpop.f32.mrf.mxu3  ;;  %v944_v45 = vadd.f32 %v5636_v52, %v681_v51 }
 0x1a1   : > { %v5738_v5 = vadd.f32 %v1272_v14, %v5627_v35  ;;  %2032 = vmatpush.bf16.msra.mxu0 %v4331_v56 }
 0x1a2   : > { %1353 = vmatmul.bf16.gmra.mxu0 %v5478_v15  ;;  %v5742_v21 = vadd.f32 %v1017_v32, %v944_v45  ;;  %1432 = vmatmul.bf16.gmra.mxu1 %v5494_v22  ;;  %v4828_v22 = vld [vmem:[#allocation7 + $0xac] sm:$0xf] }
 0x1a3   : > { %1940 = vmatmul.bf16.gmra.mxu2 %v5700_v42 }
 0x1a5   : > { %1969 = vmatmul.bf16.gmra.mxu3 %v5515_v55 }
 0x1a6   : > { %v5754_v62 = vpop.f32.mrf.mxu2 }
 0x1a7   : > { %v683_v52 = vpop.f32.mrf.mxu0  ;;  %v1395_v15 = vpop.f32.mrf.mxu1 }
 0x1a8   : > { %v1275_v57 = vpop.f32.mrf.mxu3 }
 0x1a9   : > { %v5749_v35 = vadd.f32 %v1275_v57, %v5640_v1  ;;  %v4509_v1 = vor.u32 %v4828_v22, %v4506_v2  ;;  %v4825_v22 = vld [vmem:[#allocation7 + $0x94] sm:$0xf]  ;;  %v4494_v2 = vld [vmem:[#allocation7 + $0x9c] sm:$0xf0] }
 0x1ab   : > { %2872 = vmatpush.bf16.msra.mxu2 %v4509_v1  ;;  %v4497_v1 = vor.u32 %v4825_v22, %v4494_v2 }
 0x1ae   : > { %v1903_v27 = vpop.f32.mrf.mxu2 }
 0x1af   : > { %v1319_v55 = vpop.f32.mrf.mxu0  ;;  %v5758_v3 = vpop.f32.mrf.mxu1  ;;  %2873 = vmatpush.bf16.msra.mxu2 %v4497_v1  ;;  %v5835_v1 = vld [vmem:[%s5417_s9 + $0x48] sm:$0xff] }
 0x1b0   : > { %v1277_v61 = vpop.f32.mrf.mxu3  ;;  %v1624_v27 = vrot.slane %v5758_v3, 2 }
 0x1b1   : > { %v6622_v61 = vrot.slane %v5745_v25, 2 }
 0x1b2   : > { %1358 = vmatmul.bf16.gmra.mxu0 %v5487_v18  ;;  %1437 = vmatmul.bf16.gmra.mxu1 %v5677_v38  ;;  %v4504_v18 = vld [vmem:[#allocation7 + $0xa8] sm:$0xf] }
 0x1b3   : > { %v4505_v32 = vor.u32 %v4829_v10, %v4504_v18 }
 0x1b5   : > { %1974 = vmatmul.bf16.gmra.mxu3 %v5522_v59  ;;  %v1496_v59 = vrot.slane %v1319_v55, 1  ;;  %2831 = vmatpush.bf16.msra.mxu1 %v4505_v32  ;;  %v4826_v32 = vld [vmem:[#allocation7 + $0x98] sm:$0xf0] }
 0x1b6   : > { %v1906_v45 = vpop.f32.mrf.mxu2 }
 0x1b7   : > { %v1321_v36 = vpop.f32.mrf.mxu0  ;;  %v5773_v30 = vpop.f32.mrf.mxu1 }
 0x1b8   : > { %v1280_v9 = vpop.f32.mrf.mxu3  ;;  %v1497_v41 = vrot.slane %v1321_v36, 1 }
 0x1b9   : > { %v5763_v6 = vadd.f32 %v1280_v9, %v5662_v39  ;;  %v5770_v39 = vld [vmem:[%s5417_s9 + $0x70] sm:$0xff] }
 0x1ba   : > { %v1498_v29 = vsel %vm848_vm0, %v1496_v59, %v1497_v41  ;;  %1945 = vmatmul.bf16.gmra.mxu2 %v5770_v39 }
 0x1bb   : > { %v1569_v12 = vadd.f32 %v1498_v29, %v5644_v63  ;;  %v6617_v29 = vrot.slane %v5773_v30, 2 }
 0x1bd   : > { %v1690_v47 = vadd.f32 %v1619_v33, %v1569_v12 }
 0x1bf   : > { %v5779_v17 = vadd.f32 %v1896_v50, %v1690_v47  ;;  %v1324_v14 = vpop.f32.mrf.mxu0  ;;  %v5790_v54 = vpop.f32.mrf.mxu1  ;;  %v1622_v50 = vrot.slane %v1395_v15, 2 }
 0x1c0   : > { %v1282_v31 = vpop.f32.mrf.mxu3  ;;  %v1499_v51 = vrot.slane %v1324_v14, 1 }
 0x1c1   : > { %v5777_v34 = vadd.f32 %v1282_v31, %v5669_v7  ;;  %v1623_v15 = vsel %vm970_vm1, %v6622_v61, %v1622_v50 }
 0x1c2   : > { %v1500_v26 = vsel %vm848_vm0, %v1497_v41, %v1499_v51  ;;  %1363 = vmatmul.bf16.gmra.mxu0 %v5783_v19  ;;  %1442 = vmatmul.bf16.gmra.mxu1 %v5700_v42  ;;  %v4492_v41 = vld [vmem:[#allocation7 + $0x90] sm:$0xf] }
 0x1c3   : > { %v5788_v63 = vadd.f32 %v1500_v26, %v5651_v23  ;;  %v4493_v44 = vor.u32 %v4826_v32, %v4492_v41  ;;  %v4480_v41 = vld [vmem:[#allocation7 + $0x78] sm:$0xf]  ;;  %v4823_v32 = vld [vmem:[#allocation7 + $0x80] sm:$0xf0] }
 0x1c5   : > { %1979 = vmatmul.bf16.gmra.mxu3 %v5529_v60  ;;  %v5797_v60 = vpop.f32.mrf.mxu2  ;;  %2832 = vmatpush.bf16.msra.mxu1 %v4493_v44  ;;  %v6619_v44 = vrot.slane %v5790_v54, 2 }
 0x1c7   : > { %v1326_v52 = vpop.f32.mrf.mxu0  ;;  %v1405_v9 = vpop.f32.mrf.mxu1 }
 0x1c8   : > { %v1285_v7 = vpop.f32.mrf.mxu3  ;;  %v1501_v55 = vrot.slane %v1326_v52, 1 }
 0x1c9   : > { %v5794_v57 = vadd.f32 %v1285_v7, %v5684_v37 }
 0x1ca   : > { %v1502_v23 = vsel %vm848_vm0, %v1499_v51, %v1501_v55  ;;  %1950 = vmatmul.bf16.gmra.mxu2 %v5804_v4 }
 0x1cb   : > { %v1571_v37 = vadd.f32 %v1502_v23, %v5666_v53 }
 0x1cd   : > { %v1692_v36 = vadd.f32 %v1623_v15, %v1571_v37  ;;  %v1911_v8 = vpop.f32.mrf.mxu2  ;;  %v4482_v15 = vld [vmem:[#allocation7 + $0x84] sm:$0xf0] }
 0x1cf   : > { %v5809_v10 = vadd.f32 %v5754_v62, %v1692_v36  ;;  %v1329_v59 = vpop.f32.mrf.mxu0  ;;  %v5813_v53 = vpop.f32.mrf.mxu1  ;;  %v1630_v36 = vrot.slane %v1405_v9, 2 }
 0x1d0   : > { %v1287_v18 = vpop.f32.mrf.mxu3  ;;  %v1503_v12 = vrot.slane %v1329_v59, 1 }
 0x1d1   : > { %v1631_v9 = vsel %vm970_vm1, %v6619_v44, %v1630_v36  ;;  %v4470_v36 = vld [vmem:[#allocation7 + $0x6c] sm:$0xf0] }
 0x1d2   : > { %1368 = vmatmul.bf16.gmra.mxu0 %v5677_v38 }
 0x1d5   : > { %1984 = vmatmul.bf16.gmra.mxu3 %v5536_v0  ;;  %v1913_v31 = vpop.f32.mrf.mxu2  ;;  %v1627_v0 = vsel %vm970_vm1, %v1624_v27, %v6617_v29  ;;  %v4481_v27 = vor.u32 %v4823_v32, %v4480_v41  ;;  %v4814_v29 = vld [vmem:[#allocation7 + $0x38] sm:$0xf0] }
 0x1d7   : > { %v1331_v33 = vpop.f32.mrf.mxu0  ;;  %v5825_v3 = vpop.f32.mrf.mxu1  ;;  %2833 = vmatpush.bf16.msra.mxu1 %v4481_v27 }
 0x1d8   : > { %v1290_v56 = vpop.f32.mrf.mxu3  ;;  %v1505_v47 = vrot.slane %v1331_v33, 1 }
 0x1d9   : > { %v5818_v62 = vadd.f32 %v1290_v56, %v5713_v16 }
 0x1da   : > { %v1506_v14 = vsel %vm848_vm0, %v1503_v12, %v1505_v47 }
 0x1db   : > { %v1573_v51 = vadd.f32 %v1506_v14, %v5688_v49 }
 0x1dd   : > { %v1694_v26 = vadd.f32 %v1627_v0, %v1573_v51  ;;  %v1916_v22 = vpop.f32.mrf.mxu2 }
 0x1df   : > { %v5830_v50 = vadd.f32 %v1906_v45, %v1694_v26  ;;  %v1334_v52 = vpop.f32.mrf.mxu0  ;;  %v5841_v23 = vpop.f32.mrf.mxu1  ;;  %v5006_v26 = vld [vmem:[%s5417_s9 + $0x20] sm:$0xff] }
 0x1e0   : > { %v1292_v7 = vpop.f32.mrf.mxu3  ;;  %v1507_v55 = vrot.slane %v1334_v52, 1 }
 0x1e1   : > { %v5828_v16 = vadd.f32 %v1292_v7, %v5715_v20  ;;  %v4822_v20 = vld [vmem:[#allocation7 + $0x7c] sm:$0xf]  ;;  %v5858_v7 = vld [vmem:[%s5417_s9 + $0x50] sm:$0xff] }
 0x1e2   : > { %v1508_v2 = vsel %vm848_vm0, %v1505_v47, %v1507_v55  ;;  %1373 = vmatmul.bf16.gmra.mxu0 %v5700_v42  ;;  %v4485_v45 = vor.u32 %v4822_v20, %v4482_v15 }
 0x1e3   : > { %v5839_v49 = vadd.f32 %v1508_v2, %v5697_v13 }
 0x1e4   : > { %2874 = vmatpush.bf16.msra.mxu2 %v4485_v45 }
 0x1e5   : > { %1989 = vmatmul.bf16.gmra.mxu3 %v5835_v1  ;;  %v5847_v56 = vpop.f32.mrf.mxu2 }
 0x1e7   : > { %v1336_v59 = vpop.f32.mrf.mxu0  ;;  %v1415_v12 = vpop.f32.mrf.mxu1 }
 0x1e8   : > { %v1295_v37 = vpop.f32.mrf.mxu3  ;;  %v1509_v13 = vrot.slane %v1336_v59, 1 }
 0x1e9   : > { %v5844_v18 = vadd.f32 %v1295_v37, %v5709_v46  ;;  %v4819_v37 = vld [vmem:[#allocation7 + $0x64] sm:$0xf] }
 0x1ea   : > { %v1510_v33 = vsel %vm848_vm0, %v1507_v55, %v1509_v13  ;;  %v1632_v55 = vrot.slane %v5813_v53, 2  ;;  %v4473_v41 = vor.u32 %v4819_v37, %v4470_v36 }
 0x1eb   : > { %v1575_v46 = vadd.f32 %v1510_v33, %v5719_v48  ;;  %v6613_v48 = vrot.slane %v5825_v3, 2 }
 0x1ec   : > { %2875 = vmatpush.bf16.msra.mxu2 %v4473_v41 }
 0x1ed   : > { %v1696_v47 = vadd.f32 %v1631_v9, %v1575_v46  ;;  %v1921_v51 = vpop.f32.mrf.mxu2  ;;  %v1635_v53 = vsel %vm970_vm1, %v1632_v55, %v6613_v48  ;;  %v4468_v55 = vld [vmem:[#allocation7 + $0x60] sm:$0xf] }
 0x1ef   : > { %v5854_v14 = vadd.f32 %v1911_v8, %v1696_v47  ;;  %v1339_v0 = vpop.f32.mrf.mxu0  ;;  %v5861_v52 = vpop.f32.mrf.mxu1 }
 0x1f0   : > { %v1297_v31 = vpop.f32.mrf.mxu3  ;;  %v1511_v15 = vrot.slane %v1339_v0, 1 }
 0x1f2   : > { %2033 = vmatmul.bf16.vlgmr.msra.gmra.mxu0 %v5006_v26 }
 0x1f5   : > { %1994 = vmatmul.bf16.gmra.mxu3 %v5858_v7  ;;  %v1923_v59 = vpop.f32.mrf.mxu2 }
 0x1f7   : > { %v1341_v8 = vpop.f32.mrf.mxu0  ;;  %v5878_v47 = vpop.f32.mrf.mxu1 }
 0x1f8   : > { %v1300_v2 = vpop.f32.mrf.mxu3  ;;  %v1513_v45 = vrot.slane %v1341_v8, 1  ;;  %v4820_v8 = vld [vmem:[#allocation7 + $0x68] sm:$0xf0] }
 0x1f9   : > { %v5866_v20 = vadd.f32 %v1300_v2, %v5724_v28  ;;  %v5008_v2 = vld [vmem:[%s5417_s9 + $0x28] sm:$0xff] }
 0x1fa   : > { %v1514_v32 = vsel %vm848_vm0, %v1511_v15, %v1513_v45  ;;  %v1638_v15 = vrot.slane %v1415_v12, 2 }
 0x1fb   : > { %v1577_v13 = vadd.f32 %v1514_v32, %v5729_v24 }
 0x1fd   : > { %v1698_v27 = vadd.f32 %v1635_v53, %v1577_v13  ;;  %v1926_v0 = vpop.f32.mrf.mxu2 }
 0x1ff   : > { %v5876_v9 = vadd.f32 %v1916_v22, %v1698_v27  ;;  %v1344_v46 = vpop.f32.mrf.mxu0  ;;  %v5890_v41 = vpop.f32.mrf.mxu1 }
 0x200   : > { %v1302_v28 = vpop.f32.mrf.mxu3  ;;  %v1515_v31 = vrot.slane %v1344_v46, 1 }
 0x201   : > { %v5874_v33 = vadd.f32 %v1302_v28, %v5732_v40  ;;  %v4469_v40 = vor.u32 %v4820_v8, %v4468_v55  ;;  %v4816_v55 = vld [vmem:[#allocation7 + $0x4c] sm:$0xf]  ;;  %v4458_v8 = vld [vmem:[#allocation7 + $0x54] sm:$0xf0] }
 0x202   : > { %v1516_v26 = vsel %vm848_vm0, %v1513_v45, %v1515_v31  ;;  %2038 = vmatmul.bf16.gmra.mxu0 %v5008_v2  ;;  %v6615_v45 = vrot.slane %v5841_v23, 2 }
 0x203   : > { %v5884_v24 = vadd.f32 %v1516_v26, %v5738_v5  ;;  %2834 = vmatpush.bf16.msra.mxu1 %v4469_v40  ;;  %v5009_v26 = vld [vmem:[%s5417_s9 + $0x30] sm:$0xff]  ;;  %v1640_v40 = vrot.slane %v5861_v52, 2 }
 0x204   : > { %v1639_v5 = vsel %vm970_vm1, %v6615_v45, %v1638_v15  ;;  %v4456_v15 = vld [vmem:[#allocation7 + $0x48] sm:$0xf] }
 0x205   : > { %1999 = vmatmul.bf16.gmra.mxu3 %v5783_v19  ;;  %v5892_v32 = vpop.f32.mrf.mxu2 }
 0x207   : > { %v1346_v36 = vpop.f32.mrf.mxu0  ;;  %v1425_v2 = vpop.f32.mrf.mxu1 }
 0x208   : > { %v1305_v22 = vpop.f32.mrf.mxu3  ;;  %v1517_v59 = vrot.slane %v1346_v36, 1  ;;  %v4817_v36 = vld [vmem:[#allocation7 + $0x50] sm:$0xf0] }
 0x209   : > { %v5887_v37 = vadd.f32 %v1305_v22, %v5742_v21  ;;  %v6614_v22 = vrot.slane %v5878_v47, 2 }
 0x20a   : > { %v1518_v53 = vsel %vm848_vm0, %v1515_v31, %v1517_v59  ;;  %v4461_v31 = vor.u32 %v4816_v55, %v4458_v8 }
 0x20b   : > { %v1579_v13 = vadd.f32 %v1518_v53, %v5749_v35  ;;  %v4457_v53 = vor.u32 %v4817_v36, %v4456_v15 }
 0x20c   : > { %2876 = vmatpush.bf16.msra.mxu2 %v4461_v31 }
 0x20d   : > { %v1700_v12 = vadd.f32 %v1639_v5, %v1579_v13  ;;  %v1931_v46 = vpop.f32.mrf.mxu2  ;;  %2835 = vmatpush.bf16.msra.mxu1 %v4457_v53 }
 0x20f   : > { %v5899_v21 = vadd.f32 %v1921_v51, %v1700_v12  ;;  %v1349_v28 = vpop.f32.mrf.mxu0  ;;  %v1643_v12 = vsel %vm970_vm1, %v1640_v40, %v6614_v22  ;;  %v1646_v40 = vrot.slane %v1425_v2, 2  ;;  %v4512_v2 = vld [vmem:[#allocation7 + $0xb0] sm:$0xf] }
 0x210   : > { %v1307_v27 = vpop.f32.mrf.mxu3  ;;  %v1519_v51 = vrot.slane %v1349_v28, 1 }
 0x212   : > { %2043 = vmatmul.bf16.gmra.mxu0 %v5009_v26  ;;  %v1428_v26 = vpop.f32.mrf.mxu1 }
 0x215   : > { %2004 = vmatmul.bf16.gmra.mxu3 %v5677_v38  ;;  %v1933_v5 = vpop.f32.mrf.mxu2 }
 0x217   : > { %v1351_v35 = vpop.f32.mrf.mxu0 }
 0x218   : > { %v1521_v59 = vrot.slane %v1351_v35, 1  ;;  %v5010_v35 = vld [vmem:[%s5417_s9 + $0x38] sm:$0xff] }
 0x21a   : > { %v1522_v13 = vsel %vm848_vm0, %v1519_v51, %v1521_v59  ;;  %v5918_v51 = vpop.f32.mrf.mxu1 }
 0x21b   : > { %v1581_v52 = vadd.f32 %v1522_v13, %v5763_v6  ;;  %v5920_v6 = vpop.f32.mrf.mxu3 }
 0x21d   : > { %v1702_v27 = vadd.f32 %v1643_v12, %v1581_v52  ;;  %v1936_v48 = vpop.f32.mrf.mxu2  ;;  %v4446_v12 = vld [vmem:[#allocation7 + $0x3c] sm:$0xf0] }
 0x21f   : > { %v5910_v55 = vadd.f32 %v1926_v0, %v1702_v27  ;;  %v1354_v8 = vpop.f32.mrf.mxu0  ;;  %v6616_v0 = vrot.slane %v5890_v41, 2 }
 0x220   : > { %v1523_v31 = vrot.slane %v1354_v8, 1  ;;  %v4830_v8 = vld [vmem:[#allocation7 + $0xb8] sm:$0xf0] }
 0x221   : > { %v1647_v13 = vsel %vm970_vm1, %v6616_v0, %v1646_v40  ;;  %v5011_v40 = vld [vmem:[%s5417_s9 + $0x40] sm:$0xff]  ;;  %v4444_v0 = vld [vmem:[#allocation7 + $0x30] sm:$0xf] }
 0x222   : > { %v1524_v28 = vsel %vm848_vm0, %v1521_v59, %v1523_v31  ;;  %2048 = vmatmul.bf16.gmra.mxu0 %v5010_v35 }
 0x223   : > { %v5916_v15 = vadd.f32 %v1524_v28, %v5777_v34  ;;  %v4813_v34 = vld [vmem:[#allocation7 + $0x34] sm:$0xf]  ;;  %v4513_v28 = vor.u32 %v4830_v8, %v4512_v2  ;;  %v5934_v45 = vpop.f32.mrf.mxu3 }
 0x224   : > { %v4449_v27 = vor.u32 %v4813_v34, %v4446_v12 }
 0x225   : > { %2009 = vmatmul.bf16.gmra.mxu3 %v5700_v42  ;;  %v5923_v5 = vpop.f32.mrf.mxu2 }
 0x226   : > { %2877 = vmatpush.bf16.msra.mxu2 %v4449_v27  ;;  %2917 = vmatpush.bf16.msra.mxu3 %v4513_v28 }
 0x227   : > { %v1356_v36 = vpop.f32.mrf.mxu0 }
 0x228   : > { %v1525_v53 = vrot.slane %v1356_v36, 1 }
 0x22a   : > { %v1526_v59 = vsel %vm848_vm0, %v1523_v31, %v1525_v53  ;;  %v5932_v31 = vpop.f32.mrf.mxu1 }
 0x22b   : > { %v1583_v52 = vadd.f32 %v1526_v59, %v5794_v57  ;;  %v4445_v57 = vor.u32 %v4814_v29, %v4444_v0  ;;  %v1648_v59 = vrot.slane %v1428_v26, 2 }
 0x22d   : > { %v1704_v35 = vadd.f32 %v1647_v13, %v1583_v52  ;;  %v1941_v53 = vpop.f32.mrf.mxu2  ;;  %2836 = vmatpush.bf16.msra.mxu1 %v4445_v57  ;;  %v6618_v13 = vrot.slane %v5918_v51, 2 }
 0x22f   : > { %v5930_v36 = vadd.f32 %v1931_v46, %v1704_v35  ;;  %v1359_v22 = vpop.f32.mrf.mxu0  ;;  %v1651_v27 = vsel %vm970_vm1, %v1648_v59, %v6618_v13  ;;  %v5944_v35 = vpop.f32.mrf.mxu3 }
 0x230   : > { %v1527_v46 = vrot.slane %v1359_v22, 1 }
 0x232   : > { %2053 = vmatmul.bf16.gmra.mxu0 %v5011_v40  ;;  %v1435_v28 = vpop.f32.mrf.mxu1 }
 0x235   : > { %2014 = vmatmul.bf16.gmra.mxu3 %v5770_v39  ;;  %v1943_v2 = vpop.f32.mrf.mxu2 }
 0x236   : > { %v4500_v2 = vld [vmem:[#allocation7 + $0x98] sm:$0xf] }
 0x237   : > { %v1361_v34 = vpop.f32.mrf.mxu0 }
 0x238   : > { %v1529_v12 = vrot.slane %v1361_v34, 1  ;;  %v4810_v34 = vld [vmem:[#allocation7 + $0x1c] sm:$0xf] }
 0x23a   : > { %v1530_v52 = vsel %vm848_vm0, %v1527_v46, %v1529_v12  ;;  %v4434_v46 = vld [vmem:[#allocation7 + $0x24] sm:$0xf0] }
 0x23b   : > { %v1585_v8 = vadd.f32 %v1530_v52, %v5818_v62  ;;  %v4437_v59 = vor.u32 %v4810_v34, %v4434_v46  ;;  %v4827_v52 = vld [vmem:[#allocation7 + $0xa0] sm:$0xf0] }
 0x23c   : > { %v4811_v34 = vld [vmem:[#allocation7 + $0x20] sm:$0xf0] }
 0x23d   : > { %v1706_v29 = vadd.f32 %v1651_v27, %v1585_v8  ;;  %v1946_v57 = vpop.f32.mrf.mxu2  ;;  %v4501_v27 = vor.u32 %v4827_v52, %v4500_v2  ;;  %2878 = vmatpush.bf16.msra.mxu2 %v4437_v59  ;;  %v5954_v8 = vpop.f32.mrf.mxu3 }
 0x23f   : > { %v5946_v0 = vadd.f32 %v1936_v48, %v1706_v29  ;;  %v1364_v26 = vpop.f32.mrf.mxu0  ;;  %v1438_v48 = vpop.f32.mrf.mxu1  ;;  %v1654_v29 = vrot.slane %v1435_v28, 2  ;;  %2918 = vmatpush.bf16.msra.mxu3 %v4501_v27 }
 0x240   : > { %v1531_v40 = vrot.slane %v1364_v26, 1 }
 0x242   : > { %v1532_v22 = vsel %vm848_vm0, %v1529_v12, %v1531_v40  ;;  %2058 = vmatmul.bf16.gmra.mxu0 %v5835_v1  ;;  %v6621_v1 = vrot.slane %v5932_v31, 2 }
 0x243   : > { %v5952_v62 = vadd.f32 %v1532_v22, %v5828_v16  ;;  %v4432_v22 = vld [vmem:[#allocation7 + $0x18] sm:$0xf] }
 0x244   : > { %v1655_v16 = vsel %vm970_vm1, %v6621_v1, %v1654_v29  ;;  %v4433_v2 = vor.u32 %v4811_v34, %v4432_v22  ;;  %v4488_v34 = vld [vmem:[#allocation7 + $0x80] sm:$0xf] }
 0x245   : > { %2019 = vmatmul.bf16.gmra.mxu3 %v5804_v4  ;;  %v5957_v13 = vpop.f32.mrf.mxu2 }
 0x246   : > { %6638 = vst [vmem:[#allocation25_spill] sm:$0xff] %v5957_v13  ;;  %2837 = vmatpush.bf16.msra.mxu1 %v4433_v2 }
 0x247   : > { %v1366_v12 = vpop.f32.mrf.mxu0  ;;  %v5966_v27 = vpop.f32.mrf.mxu1 }
 0x248   : > { %v1533_v26 = vrot.slane %v1366_v12, 1  ;;  %6640 = vst [vmem:[#allocation27_spill] sm:$0xff] %v5966_v27  ;;  %v5968_v12 = vpop.f32.mrf.mxu3  ;;  %v6623_v29 = vrot.slane %v5966_v27, 2 }
 0x24a   : > { %v1534_v44 = vsel %vm848_vm0, %v1531_v40, %v1533_v26  ;;  %v1656_v40 = vrot.slane %v1438_v48, 2 }
 0x24b   : > { %v1587_v46 = vadd.f32 %v1534_v44, %v5844_v18 }
 0x24c   : > { %v1659_v22 = vsel %vm970_vm1, %v1656_v40, %v6623_v29  ;;  %v4464_v40 = vld [vmem:[#allocation7 + $0x50] sm:$0xf]  ;;  %v4818_v29 = vld [vmem:[#allocation7 + $0x58] sm:$0xf0] }
 0x24d   : > { %v1708_v59 = vadd.f32 %v1655_v16, %v1587_v46  ;;  %v1951_v11 = vpop.f32.mrf.mxu2  ;;  %v4824_v46 = vld [vmem:[#allocation7 + $0x88] sm:$0xf0] }
 0x24e   : > { %v4489_v48 = vor.u32 %v4824_v46, %v4488_v34  ;;  %v4807_v34 = vld [vmem:[#allocation7 + $0x4] sm:$0xf] }
 0x24f   : > { %v5964_v28 = vadd.f32 %v1941_v53, %v1708_v59  ;;  %v1369_v52 = vpop.f32.mrf.mxu0  ;;  %v5972_v18 = vpop.f32.mrf.mxu1  ;;  %v4476_v59 = vld [vmem:[#allocation7 + $0x68] sm:$0xf] }
 0x250   : > { %v1535_v1 = vrot.slane %v1369_v52, 1  ;;  %v5974_v16 = vpop.f32.mrf.mxu3  ;;  %2919 = vmatpush.bf16.msra.mxu3 %v4489_v48  ;;  %v4821_v52 = vld [vmem:[#allocation7 + $0x70] sm:$0xf0]  ;;  %v4808_v48 = vld [vmem:[#allocation7 + $0x8] sm:$0xf0] }
 0x251   : > { %6639 = vst [vmem:[#allocation26_spill] sm:$0xff] %v5964_v28  ;;  %v4477_v13 = vor.u32 %v4821_v52, %v4476_v59  ;;  %v4815_v59 = vld [vmem:[#allocation7 + $0x40] sm:$0xf0] }
 0x252   : > { %2063 = vmatmul.bf16.gmra.mxu0 %v5858_v7 }
 0x254   : > { %2920 = vmatpush.bf16.msra.mxu3 %v4477_v13 }
 0x255   : > { %v1953_v44 = vpop.f32.mrf.mxu2 }
 0x257   : > { %v1371_v26 = vpop.f32.mrf.mxu0 }
 0x258   : > { %v1537_v61 = vrot.slane %v1371_v26, 1 }
 0x25a   : > { %v1538_v53 = vsel %vm848_vm0, %v1535_v1, %v1537_v61 }
 0x25b   : > { %v1589_v7 = vadd.f32 %v1538_v53, %v5866_v20  ;;  %v1445_v20 = vpop.f32.mrf.mxu1  ;;  %v4465_v53 = vor.u32 %v4818_v29, %v4464_v40  ;;  %v4440_v40 = vld [vmem:[#allocation7 + $0x20] sm:$0xf] }
 0x25c   : > { %v1662_v13 = vrot.slane %v1445_v20, 2 }
 0x25d   : > { %v1710_v2 = vadd.f32 %v1659_v22, %v1589_v7  ;;  %v5988_v22 = vpop.f32.mrf.mxu3  ;;  %v4420_v7 = vld [vmem:[#allocation7] sm:$0xf]  ;;  %2921 = vmatpush.bf16.msra.mxu3 %v4465_v53  ;;  %v4812_v53 = vld [vmem:[#allocation7 + $0x28] sm:$0xf0] }
 0x25f   : > { %v5981_v26 = vadd.f32 %v1946_v57, %v1710_v2  ;;  %v1374_v44 = vpop.f32.mrf.mxu0  ;;  %v4422_v57 = vld [vmem:[#allocation7 + $0xc] sm:$0xf0]  ;;  %v4421_v2 = vor.u32 %v4808_v48, %v4420_v7  ;;  %v4428_v7 = vld [vmem:[#allocation7 + $0x8] sm:$0xf]  ;;  %v4809_v48 = vld [vmem:[#allocation7 + $0x10] sm:$0xf0] }
 0x260   : > { %v1539_v28 = vrot.slane %v1374_v44, 1  ;;  %v4425_v46 = vor.u32 %v4807_v34, %v4422_v57  ;;  %v4441_v34 = vor.u32 %v4812_v53, %v4440_v40  ;;  %v4853_v40 = vld [vmem:[#allocation7 + $0x170] sm:$0xf0]  ;;  %v6642_v53 = vrot.slane %v5734_v43, 2 }
 0x261   : > { %2838 = vmatpush.bf16.msra.mxu1 %v4421_v2  ;;  %v6021_v43 = vstv %s4417_s22  ;;  %s3927_s22 = sadd.s32 %s4879_s16, %s4709_s12 }
 0x262   : > { %v1540_v1 = vsel %vm848_vm0, %v1537_v61, %v1539_v28  ;;  %2068 = vmatmul.bf16.gmra.mxu0 %v5783_v19  ;;  %v4452_v61 = vld [vmem:[#allocation7 + $0x38] sm:$0xf]  ;;  %2879 = vmatpush.bf16.msra.mxu2 %v4425_v46  ;;  %vm2453_vm2 = vcmp.ge.s32.totalorder %v6021_v43, 0  ;;  %vm2459_vm3 = vcmp.lt.s32.totalorder %v6021_v43, 16  ;;  %s4710_s9 = sshll.u32 %s3927_s22, 3 }
 0x263   : > { %v5986_v27 = vadd.f32 %v1540_v1, %v5874_v33  ;;  %v4453_v52 = vor.u32 %v4815_v59, %v4452_v61  ;;  %v1660_v33 = vrot.slane %v5972_v18, 2  ;;  %v2142_v59 = vrot.slane %v5920_v6, 1  ;;  %vm6037_vm4 = vmand %vm2453_vm2, %vm2459_vm3  ;;  %s3929_s14 = scalar_lea.hbm %s6605_s7, %s4710_s9 }
 0x264   : > { %s3932_s19 = sshll.u32 %s3929_s14, 4  ;;  %s3933_s19 = int_to_ptr.hbm [resolvable:$true] %s3932_s19 }
 0x265   : > { %2922 = vmatpush.bf16.msra.mxu3 %v4453_v52  ;;  %v1663_v1 = vsel %vm970_vm1, %v1660_v33, %v1662_v13  ;;  %v5996_v46 = vpop.f32.mrf.mxu3  ;;  %v2143_v13 = vrot.slane %v5934_v45, 1  ;;  %s5144_s17 = sshra.s32 %s3933_s19, 4  ;;  %s5145_s17 = int_to_ptr.hbm [resolvable:$true] %s5144_s17 }
 0x266   : > { %s5146_s21 = scalar_lea.hbm %s5145_s17, 64  ;;  %p5151_p4 = scmp.lt.s32.totalorder %s5145_s17, %s6605_s7 }
 0x267   : > { %v1376_v19 = vpop.f32.mrf.mxu0  ;;  %p5147_p8 = scmp.ne.s32.totalorder %s5145_s17, %s5146_s21  ;;  %p5152_p5 = scmp.lt.s32.totalorder %s5150_s20, %s5146_s21 }
 0x268   : > { %v1541_v44 = vrot.slane %v1376_v19, 1  ;;  %v4602_v19 = vld [vmem:[#allocation7 + $0x174] sm:$0xf0] }
 0x269   : > { %2923 = vmatpush.bf16.msra.mxu3 %v4441_v34  ;;  %p5148_p13 = pnand %p5147_p8, %p5336_p3  ;;  %p5153_p6 = por %p5152_p5, %p5151_p4 }
 0x26a   : > { %v1542_v29 = vsel %vm848_vm0, %v1539_v28, %v1541_v44  ;;  %v4429_v28 = vor.u32 %v4809_v48, %v4428_v7  ;;  %v2144_v44 = vsel %vm848_vm0, %v2142_v59, %v2143_v13  ;;  %v6017_v7 = vld [vmem:[%s6600_s2] ss:$0 sm:$0xff]  ;;  %v2440_v48 = vlaneseq }
 0x26b   : > { %v1591_v20 = vadd.f32 %v1542_v29, %v5887_v37  ;;  %v4852_v37 = vld [vmem:[#allocation7 + $0x16c] sm:$0xf]  ;;  %p5149_p2 = pneg %p5148_p13 }
 0x26c   : > { %v4605_v52 = vor.u32 %v4852_v37, %v4602_v19  ;;  %v6030_v19 = vshrl.u32 %v2440_v48, 7 }
 0x26d   : > { %v1712_v57 = vadd.f32 %v1663_v1, %v1591_v20  ;;  %2924 = vmatpush.bf16.msra.mxu3 %v4429_v28  ;;  %v4600_v1 = vld [vmem:[#allocation7 + $0x168] sm:$0xf]  ;;  %v6011_v45 = vpop.f32.mrf.mxu3  ;;  %v2145_v28 = vrot.slane %v5944_v35, 1  ;;  %p5154_p7 = pnand %p5153_p6, %p5149_p2 }
 0x26e   : > { %3272 = vmatpush.bf16.msrb.mxu2 %v4605_v52  ;;  %v4601_v34 = vor.u32 %v4853_v40, %v4600_v1  ;;  %vm2471_vm5 = vcmp.ge.s32.totalorder %v6030_v19, 1  ;;  %v6645_v40 = vrot.slane %v5790_v54, 2  ;;  %v2448_v54 = vadd.s32 1, %v6021_v43 }
 0x26f   : > { %v5998_v2 = vadd.f32 %v1951_v11, %v1712_v57  ;;  %v2034_v61 = vpop.f32.mrf.mxu0  ;;  %v6641_v11 = vrot.slane %v5745_v25, 2  ;;  %v2215_v57 = vadd.f32 %v2144_v44, %v5779_v17  ;;  %v6027_v17 = vld [vmem:[%s6601_s3] ss:$0 sm:$0xff]  ;;  %v2146_v52 = vsel %vm848_vm0, %v2143_v13, %v2145_v28  ;;  %vm2475_vm6 = vmand %vm6037_vm4, %vm2471_vm5 }
 0x270   : > { %3231 = vmatpush.bf16.msrb.mxu1 %v4601_v34  ;;  %vm2454_vm9 = vcmp.ge.s32.totalorder %v2448_v54, 0  ;;  %vm2460_vm10 = vcmp.lt.s32.totalorder %v2448_v54, 16 }
 0x271   : > { %v1621_v6 = vsel %vm970_vm1, %v6642_v53, %v6641_v11  ;;  %v2147_v11 = vrot.slane %v5954_v8, 1  ;;  %vm6095_vm11 = vmand %vm2454_vm9, %vm2460_vm10 }
 0x272   : > { %2073 = vmatmul.bf16.gmra.mxu0 %v5677_v38  ;;  %v2263_v38 = vrot.slane %v2034_v61, 2  ;;  %v1691_v59 = vadd.f32 %v1621_v6, %v5788_v63  ;;  %vm2479_vm12 = vmand %vm6095_vm11, %vm2471_vm5 }
 0x273   : > { %v2148_v34 = vsel %vm848_vm0, %v2145_v28, %v2147_v11 }
 0x274   : > { %v2095_v35 = vadd.f32 %v5751_v58, %v1691_v59 }
 0x275   : > { %v6043_v13 = vpop.f32.mrf.mxu3 }
 0x276   : > { %v2216_v1 = vadd.f32 %v2146_v52, %v2095_v35  ;;  %v6059_v35 = vadd.s32 16, %v6030_v19  ;;  %v5012_v19 = vld [vmem:[%s6601_s3] ss:$0 sm:$0xff] }
 0x277   : > { %v2036_v29 = vpop.f32.mrf.mxu0 }
 0x278   : > { %v2264_v20 = vrot.slane %v2036_v29, 2  ;;  %vm2501_vm7 = vcmp.le.s32.totalorder %v6059_v35, 16 }
 0x279   : > { %vm2505_vm8 = vmand %vm6037_vm4, %vm2501_vm7 }
 0x27a   : > { %v2265_v25 = vsel %vm970_vm1, %v2263_v38, %v2264_v20  ;;  %vm2509_vm13 = vmand %vm6095_vm11, %vm2501_vm7 }
 0x27b   : > { %v2336_v61 = vadd.f32 %v2265_v25, %v2215_v57 }
 0x27d   : > { %v2364_v37 = vmul.f32 %v6017_v7, %v2336_v61 }
 0x27f   : > { %v2392_v63 = vadd.f32 %v6027_v17, %v2364_v37  ;;  %v2039_v44 = vpop.f32.mrf.mxu0 }
 0x280   : > { %v2266_v29 = vrot.slane %v2039_v44, 2 }
 0x281   : > { %v2416_v58 = vmax.f32 %v2392_v63, 0.0  ;;  %v6061_v63 = vpop.f32.mrf.mxu3 }
 0x282   : > { %v2267_v53 = vsel %vm970_vm1, %v2264_v20, %v2266_v29  ;;  %2078 = vmatmul.bf16.gmra.mxu0 %v5700_v42  ;;  %v2217_v20 = vadd.f32 %v2148_v34, %v5809_v10 }
 0x283   : > { %v2337_v6 = vadd.f32 %v2267_v53, %v2216_v1  ;;  %v2575_v57 = vsel %vm2475_vm6, %v2416_v58, 0.0  ;;  %v4849_v58 = vld [vmem:[#allocation7 + $0x154] sm:$0xf] }
 0x284   : > { %v2599_v42 = vpack.c.bf16 %v2575_v57, %v2575_v57  ;;  %v4588_v57 = vld [vmem:[#allocation7 + $0x150] sm:$0xf] }
 0x285   : > { %v2365_v38 = vmul.f32 %v6017_v7, %v2337_v6  ;;  %v4590_v6 = vld [vmem:[#allocation7 + $0x15c] sm:$0xf0] }
 0x286   : > { %v2671_v11 = vunpack.c.l.b16 %v2599_v42  ;;  %v4593_v34 = vor.u32 %v4849_v58, %v4590_v6  ;;  %v4877_v42 = vld [vmem:[#allocation7 + $0x230] sm:$0xf0]  ;;  %v4846_v6 = vld [vmem:[#allocation7 + $0x13c] sm:$0xf] }
 0x287   : > { %v2393_v8 = vadd.f32 %v6027_v17, %v2365_v38  ;;  %v2041_v48 = vpop.f32.mrf.mxu0 }
 0x288   : > { %v2268_v25 = vrot.slane %v2041_v48, 2  ;;  %v2149_v48 = vrot.slane %v5968_v12, 1  ;;  %3273 = vmatpush.bf16.msrb.mxu2 %v4593_v34 }
 0x289   : > { %v2417_v59 = vmax.f32 %v2393_v8, 0.0  ;;  %v4850_v8 = vld [vmem:[#allocation7 + $0x158] sm:$0xf0] }
 0x28a   : > { %v2269_v61 = vsel %vm970_vm1, %v2266_v29, %v2268_v25  ;;  %v2151_v25 = vrot.slane %v5974_v16, 1  ;;  %v6074_v16 = vpop.f32.mrf.mxu3 }
 0x28b   : > { %v2576_v37 = vsel %vm6037_vm4, %v2417_v59, 0.0  ;;  %v2338_v52 = vadd.f32 %v2269_v61, %v2217_v20  ;;  %v4589_v20 = vor.u32 %v4850_v8, %v4588_v57  ;;  %v4696_v59 = vld [vmem:[#allocation7 + $0x228] sm:$0xf]  ;;  %v4576_v8 = vld [vmem:[#allocation7 + $0x138] sm:$0xf] }
 0x28c   : > { %v2600_v28 = vpack.c.bf16 %v2576_v37, %v2576_v37  ;;  %v4697_v61 = vor.u32 %v4877_v42, %v4696_v59  ;;  %v2152_v12 = vsel %vm848_vm0, %v2149_v48, %v2151_v25  ;;  %v4847_v48 = vld [vmem:[#allocation7 + $0x140] sm:$0xf0]  ;;  %v4672_v42 = vld [vmem:[#allocation7 + $0x1f8] sm:$0xf] }
 0x28d   : > { %v2366_v44 = vmul.f32 %v6017_v7, %v2338_v52  ;;  %3232 = vmatpush.bf16.msrb.mxu1 %v4589_v20  ;;  %v4874_v52 = vld [vmem:[#allocation7 + $0x218] sm:$0xf0]  ;;  %v2219_v34 = vadd.f32 %v2152_v12, %v5830_v50  ;;  %v2153_v20 = vrot.slane %v5988_v22, 1  ;;  %v5241_v50 = vmov 0.0|0.0  }
 0x28e   : > { %v2672_v1 = vunpack.c.l.b16 %v2600_v28  ;;  %3639 = vmatpush.bf16.msrb.mxu0 %v4697_v61  ;;  %v4871_v61 = vld [vmem:[#allocation7 + $0x200] sm:$0xf0]  ;;  %v6086_v12 = vunpack.c.l.b16 %v5241_v50 }
 0x28f   : > { %v2044_v53 = vpop.f32.mrf.mxu0  ;;  %v2394_v10 = vadd.f32 %v6027_v17, %v2366_v44  ;;  %v2154_v22 = vsel %vm848_vm0, %v2151_v25, %v2153_v20  ;;  %v2155_v25 = vrot.slane %v5996_v46, 1 }
 0x290   : > { %v2687_v29 = vpack.c.b16 %v2672_v1, %v2671_v11  ;;  %v6646_v1 = vrot.slane %v5773_v30, 2  ;;  %v4577_v30 = vor.u32 %v4847_v48, %v4576_v8  ;;  %v4865_v48 = vld [vmem:[#allocation7 + $0x1d0] sm:$0xf0] }
 0x291   : > { %v2418_v38 = vmax.f32 %v2394_v10, 0.0  ;;  %v2270_v10 = vrot.slane %v2044_v53, 2  ;;  %v2156_v46 = vsel %vm848_vm0, %v2153_v20, %v2155_v25 }
 0x292   : > { %2083 = vmatmul.bf16.gmra.mxu0 %v5770_v39  ;;  %2839 = vmatmul.bf16.vlgmr.msra.gmra.mxu1 %v2687_v29  ;;  %v4684_v39 = vld [vmem:[#allocation7 + $0x210] sm:$0xf]  ;;  %v1629_v11 = vsel %vm970_vm1, %v6646_v1, %v6645_v40  ;;  %v4868_v40 = vld [vmem:[#allocation7 + $0x1e8] sm:$0xf0]  ;;  %v2221_v50 = vadd.f32 %v2156_v46, %v5854_v14 }
 0x293   : > { %2880 = vmatmul.bf16.vlgmr.msra.gmra.mxu2 %v2687_v29  ;;  %2925 = vmatmul.bf16.vlgmr.msra.gmra.mxu3 %v2687_v29  ;;  %v2577_v37 = vsel %vm2505_vm8, %v2418_v38, 0.0  ;;  %v4685_v44 = vor.u32 %v4874_v52, %v4684_v39  ;;  %v4578_v38 = vld [vmem:[#allocation7 + $0x144] sm:$0xf0]  ;;  %v1695_v53 = vadd.f32 %v1629_v11, %v5839_v49  ;;  %v4673_v39 = vor.u32 %v4871_v61, %v4672_v42 }
 0x294   : > { %v2601_v58 = vpack.c.bf16 %v2577_v37, %v2577_v37  ;;  %v4581_v57 = vor.u32 %v4846_v6, %v4578_v38  ;;  %3233 = vmatpush.bf16.msrb.mxu1 %v4577_v30 }
 0x295   : > { %3640 = vmatpush.bf16.msrb.mxu0 %v4685_v44  ;;  %v4660_v44 = vld [vmem:[#allocation7 + $0x1e0] sm:$0xf]  ;;  %v2099_v1 = vadd.f32 %v5797_v60, %v1695_v53  ;;  %v4648_v60 = vld [vmem:[#allocation7 + $0x1c8] sm:$0xf] }
 0x296   : > { %3274 = vmatpush.bf16.msrb.mxu2 %v4581_v57  ;;  %v2673_v52 = vunpack.c.l.b16 %v2601_v58  ;;  %v6092_v58 = vpop.f32.mrf.mxu3  ;;  %v4649_v30 = vor.u32 %v4865_v48, %v4648_v60  ;;  %v4856_v60 = vld [vmem:[#allocation7 + $0x188] sm:$0xf0]  ;;  %v6650_v57 = vrot.slane %v5825_v3, 2 }
 0x297   : > { %v2046_v28 = vpop.f32.mrf.mxu0 }
 0x298   : > { %v2272_v29 = vrot.slane %v2046_v28, 2  ;;  %v2688_v38 = vpack.c.b16 %v6086_v12, %v2673_v52 }
 0x299   : > { %3641 = vmatpush.bf16.msrb.mxu0 %v4673_v39 }
 0x29a   : > { %v2273_v59 = vsel %vm970_vm1, %v2270_v10, %v2272_v29  ;;  %v4661_v10 = vor.u32 %v4868_v40, %v4660_v44 }
 0x29b   : > { %v2340_v37 = vadd.f32 %v2273_v59, %v2219_v34  ;;  %v2220_v34 = vadd.f32 %v2154_v22, %v2099_v1  ;;  %v4624_v1 = vld [vmem:[#allocation7 + $0x198] sm:$0xf] }
 0x29d   : > { %v2368_v28 = vmul.f32 %v6017_v7, %v2340_v37  ;;  %3642 = vmatpush.bf16.msrb.mxu0 %v4661_v10 }
 0x29e   : > { %v6110_v22 = vpop.f32.mrf.mxu3 }
 0x29f   : > { %v2396_v49 = vadd.f32 %v6027_v17, %v2368_v28  ;;  %v2049_v11 = vpop.f32.mrf.mxu0 }
 0x2a0   : > { %v2274_v6 = vrot.slane %v2049_v11, 2 }
 0x2a1   : > { %v2420_v59 = vmax.f32 %v2396_v49, 0.0  ;;  %3643 = vmatpush.bf16.msrb.mxu0 %v4649_v30  ;;  %v4859_v49 = vld [vmem:[#allocation7 + $0x1a0] sm:$0xf0] }
 0x2a2   : > { %v2275_v8 = vsel %vm970_vm1, %v2272_v29, %v2274_v6  ;;  %2088 = vmatmul.bf16.gmra.mxu0 %v5804_v4  ;;  %2844 = vmatmul.bf16.gmra.mxu1 %v2688_v38  ;;  %v4636_v29 = vld [vmem:[#allocation7 + $0x1b0] sm:$0xf]  ;;  %v4862_v4 = vld [vmem:[#allocation7 + $0x1b8] sm:$0xf0]  ;;  %v4625_v10 = vor.u32 %v4859_v49, %v4624_v1  ;;  %v4843_v30 = vld [vmem:[#allocation7 + $0x124] sm:$0xf] }
 0x2a3   : > { %v2341_v54 = vadd.f32 %v2275_v8, %v2220_v34  ;;  %2885 = vmatmul.bf16.gmra.mxu2 %v2688_v38  ;;  %2930 = vmatmul.bf16.gmra.mxu3 %v2688_v38  ;;  %v2579_v61 = vsel %vm2479_vm12, %v2420_v59, 0.0  ;;  %v4637_v39 = vor.u32 %v4862_v4, %v4636_v29  ;;  %v4612_v8 = vld [vmem:[#allocation7 + $0x180] sm:$0xf] }
 0x2a4   : > { %v2603_v44 = vpack.c.bf16 %v2579_v61, %v2579_v61  ;;  %v4564_v4 = vld [vmem:[#allocation7 + $0x120] sm:$0xf]  ;;  %v4844_v61 = vld [vmem:[#allocation7 + $0x128] sm:$0xf0] }
 0x2a5   : > { %v2369_v42 = vmul.f32 %v6017_v7, %v2341_v54  ;;  %3644 = vmatpush.bf16.msrb.mxu0 %v4637_v39  ;;  %v4613_v54 = vor.u32 %v4856_v60, %v4612_v8  ;;  %v4565_v39 = vor.u32 %v4844_v61, %v4564_v4  ;;  %v4596_v61 = vld [vmem:[#allocation7 + $0x158] sm:$0xf] }
 0x2a6   : > { %v2675_v25 = vunpack.c.l.b16 %v2603_v44 }
 0x2a7   : > { %v2397_v53 = vadd.f32 %v6027_v17, %v2369_v42  ;;  %v2051_v37 = vpop.f32.mrf.mxu0  ;;  %v4566_v42 = vld [vmem:[#allocation7 + $0x12c] sm:$0xf0]  ;;  %3234 = vmatpush.bf16.msrb.mxu1 %v4565_v39 }
 0x2a8   : > { %v2276_v52 = vrot.slane %v2051_v37, 2  ;;  %v4569_v29 = vor.u32 %v4843_v30, %v4566_v42  ;;  %v2159_v37 = vrot.slane %v6043_v13, 1 }
 0x2a9   : > { %v2421_v28 = vmax.f32 %v2397_v53, 0.0  ;;  %3645 = vmatpush.bf16.msrb.mxu0 %v4625_v10  ;;  %v2157_v53 = vrot.slane %v6011_v45, 1 }
 0x2aa   : > { %v2277_v40 = vsel %vm970_vm1, %v2274_v6, %v2276_v52  ;;  %v6128_v52 = vpop.f32.mrf.mxu3  ;;  %3275 = vmatpush.bf16.msrb.mxu2 %v4569_v29 }
 0x2ab   : > { %v2580_v20 = vsel %vm6095_vm11, %v2421_v28, 0.0  ;;  %v2342_v11 = vadd.f32 %v2277_v40, %v2221_v50  ;;  %v2160_v45 = vsel %vm848_vm0, %v2157_v53, %v2159_v37  ;;  %v6649_v28 = vrot.slane %v5841_v23, 2 }
 0x2ac   : > { %v2604_v38 = vpack.c.bf16 %v2580_v20, %v2580_v20  ;;  %v4840_v20 = vld [vmem:[#allocation7 + $0x10c] sm:$0xf]  ;;  %v2223_v10 = vadd.f32 %v2160_v45, %v5876_v9  ;;  %v2449_v23 = vadd.s32 2, %v6021_v43  ;;  %v2163_v53 = vrot.slane %v6074_v16, 1 }
 0x2ad   : > { %v2370_v34 = vmul.f32 %v6017_v7, %v2342_v11  ;;  %3646 = vmatpush.bf16.msrb.mxu0 %v4613_v54  ;;  %v1637_v44 = vsel %vm970_vm1, %v6650_v57, %v6649_v28  ;;  %v4554_v11 = vld [vmem:[#allocation7 + $0x114] sm:$0xf0] }
 0x2ae   : > { %v2676_v14 = vunpack.c.l.b16 %v2604_v38  ;;  %v4557_v38 = vor.u32 %v4840_v20, %v4554_v11  ;;  %v1699_v3 = vadd.f32 %v1637_v44, %v5884_v24  ;;  %vm2455_vm14 = vcmp.ge.s32.totalorder %v2449_v23, 0 }
 0x2af   : > { %v2398_v48 = vadd.f32 %v6027_v17, %v2370_v34  ;;  %v2054_v59 = vpop.f32.mrf.mxu0  ;;  %v4552_v34 = vld [vmem:[#allocation7 + $0x108] sm:$0xf]  ;;  %vm2461_vm15 = vcmp.lt.s32.totalorder %v2449_v23, 16 }
 0x2b0   : > { %v6117_v6 = vpack.c.b16 %v2676_v14, %v2675_v25  ;;  %v2278_v1 = vrot.slane %v2054_v59, 2  ;;  %v4841_v25 = vld [vmem:[#allocation7 + $0x110] sm:$0xf0]  ;;  %v2161_v14 = vrot.slane %v6061_v63, 1  ;;  %3276 = vmatpush.bf16.msrb.mxu2 %v4557_v38  ;;  %v2103_v63 = vadd.f32 %v5847_v56, %v1699_v3  ;;  %vm6150_vm2 = vmand %vm2455_vm14, %vm2461_vm15 }
 0x2b1   : > { %v2422_v46 = vmax.f32 %v2398_v48, 0.0  ;;  %v4553_v60 = vor.u32 %v4841_v25, %v4552_v34  ;;  %vm2483_vm3 = vmand %vm6150_vm2, %vm2471_vm5  ;;  %v4837_v3 = vld [vmem:[#allocation7 + $0xf4] sm:$0xf] }
 0x2b2   : > { %2847 = vmatmul.bf16.gmra.mxu1 %v6117_v6  ;;  %v2162_v9 = vsel %vm848_vm0, %v2159_v37, %v2161_v14  ;;  %v6143_v30 = vpop.f32.mrf.mxu3  ;;  %v2164_v45 = vsel %vm848_vm0, %v2161_v14, %v2163_v53  ;;  %vm2513_vm4 = vmand %vm6150_vm2, %vm2501_vm7  ;;  %v4854_v53 = vld [vmem:[#allocation7 + $0x178] sm:$0xf0] }
 0x2b3   : > { %2889 = vmatmul.bf16.gmra.mxu2 %v6117_v6  ;;  %2934 = vmatmul.bf16.gmra.mxu3 %v6117_v6  ;;  %v2581_v50 = vsel %vm2509_vm13, %v2422_v46, 0.0  ;;  %v2224_v4 = vadd.f32 %v2162_v9, %v2103_v63  ;;  %v4838_v9 = vld [vmem:[#allocation7 + $0xf8] sm:$0xf0]  ;;  %v2165_v63 = vrot.slane %v6092_v58, 1 }
 0x2b4   : > { %v2605_v40 = vpack.c.bf16 %v2581_v50, %v2581_v50  ;;  %3235 = vmatpush.bf16.msrb.mxu1 %v4553_v60 }
 0x2b6   : > { %v2677_v59 = vunpack.c.l.b16 %v2605_v40  ;;  %v2225_v40 = vadd.f32 %v2164_v45, %v5899_v21  ;;  %v4542_v21 = vld [vmem:[#allocation7 + $0xfc] sm:$0xf0]  ;;  %v6653_v45 = vrot.slane %v5890_v41, 2  ;;  %v2450_v41 = vadd.s32 3, %v6021_v43 }
 0x2b7   : > { %v2056_v13 = vpop.f32.mrf.mxu0 }
 0x2b8   : > { %v2280_v49 = vrot.slane %v2056_v13, 2  ;;  %v6148_v29 = vpack.c.b16 %v6086_v12, %v2677_v59  ;;  %v4545_v59 = vor.u32 %v4837_v3, %v4542_v21  ;;  %vm2456_vm6 = vcmp.ge.s32.totalorder %v2450_v41, 0 }
 0x2b9   : > { %vm2462_vm8 = vcmp.lt.s32.totalorder %v2450_v41, 16 }
 0x2ba   : > { %v2281_v8 = vsel %vm970_vm1, %v2278_v1, %v2280_v49  ;;  %v6166_v57 = vpop.f32.mrf.mxu3  ;;  %3277 = vmatpush.bf16.msrb.mxu2 %v4545_v59  ;;  %vm6208_vm9 = vmand %vm2456_vm6, %vm2462_vm8 }
 0x2bb   : > { %v2344_v48 = vadd.f32 %v2281_v8, %v2223_v10  ;;  %vm2487_vm10 = vmand %vm6208_vm9, %vm2471_vm5 }
 0x2bc   : > { %vm2517_vm11 = vmand %vm6208_vm9, %vm2501_vm7 }
 0x2bd   : > { %v2372_v54 = vmul.f32 %v6017_v7, %v2344_v48 }
 0x2bf   : > { %v2400_v42 = vadd.f32 %v6027_v17, %v2372_v54  ;;  %v2059_v46 = vpop.f32.mrf.mxu0  ;;  %v4540_v54 = vld [vmem:[#allocation7 + $0xf0] sm:$0xf] }
 0x2c0   : > { %v2282_v24 = vrot.slane %v2059_v46, 2 }
 0x2c1   : > { %v2424_v39 = vmax.f32 %v2400_v42, 0.0  ;;  %v2167_v42 = vrot.slane %v6110_v22, 1 }
 0x2c2   : > { %v2283_v37 = vsel %vm970_vm1, %v2280_v49, %v2282_v24  ;;  %2852 = vmatmul.bf16.gmra.mxu1 %v6148_v29  ;;  %v6178_v46 = vpop.f32.mrf.mxu3 }
 0x2c3   : > { %v2345_v56 = vadd.f32 %v2283_v37, %v2224_v4  ;;  %2894 = vmatmul.bf16.gmra.mxu2 %v6148_v29  ;;  %2939 = vmatmul.bf16.gmra.mxu3 %v6148_v29  ;;  %v2583_v16 = vsel %vm2483_vm3, %v2424_v39, 0.0  ;;  %v4608_v4 = vld [vmem:[#allocation7 + $0x170] sm:$0xf]  ;;  %v2168_v37 = vsel %vm848_vm0, %v2165_v63, %v2167_v42  ;;  %v4851_v39 = vld [vmem:[#allocation7 + $0x160] sm:$0xf0] }
 0x2c4   : > { %v2607_v49 = vpack.c.bf16 %v2583_v16, %v2583_v16  ;;  %v4609_v58 = vor.u32 %v4854_v53, %v4608_v4  ;;  %v6654_v16 = vrot.slane %v5878_v47, 2 }
 0x2c5   : > { %v2373_v50 = vmul.f32 %v6017_v7, %v2345_v56 }
 0x2c6   : > { %v2679_v25 = vunpack.c.l.b16 %v2607_v49  ;;  %3317 = vmatpush.bf16.msrb.mxu3 %v4609_v58  ;;  %v4530_v49 = vld [vmem:[#allocation7 + $0xe4] sm:$0xf0] }
 0x2c7   : > { %v2401_v13 = vadd.f32 %v6027_v17, %v2373_v50  ;;  %v2061_v28 = vpop.f32.mrf.mxu0  ;;  %v4597_v50 = vor.u32 %v4851_v39, %v4596_v61  ;;  %v4842_v39 = vld [vmem:[#allocation7 + $0x118] sm:$0xf0] }
 0x2c8   : > { %v2284_v44 = vrot.slane %v2061_v28, 2 }
 0x2c9   : > { %v2425_v1 = vmax.f32 %v2401_v13, 0.0  ;;  %v1645_v13 = vsel %vm970_vm1, %v6654_v16, %v6653_v45 }
 0x2ca   : > { %v2285_v20 = vsel %vm970_vm1, %v2282_v24, %v2284_v44  ;;  %v4541_v24 = vor.u32 %v4838_v9, %v4540_v54  ;;  %3318 = vmatpush.bf16.msrb.mxu3 %v4597_v50  ;;  %v4572_v54 = vld [vmem:[#allocation7 + $0x128] sm:$0xf]  ;;  %v4845_v9 = vld [vmem:[#allocation7 + $0x130] sm:$0xf0] }
 0x2cb   : > { %v2584_v11 = vsel %vm6150_vm2, %v2425_v1, 0.0  ;;  %v2346_v10 = vadd.f32 %v2285_v20, %v2225_v40  ;;  %v4834_v1 = vld [vmem:[#allocation7 + $0xdc] sm:$0xf]  ;;  %v2227_v20 = vadd.f32 %v2168_v37, %v5910_v55  ;;  %v4573_v4 = vor.u32 %v4845_v9, %v4572_v54  ;;  %v4516_v54 = vld [vmem:[#allocation7 + $0xc0] sm:$0xf] }
 0x2cc   : > { %v2608_v38 = vpack.c.bf16 %v2584_v11, %v2584_v11  ;;  %3236 = vmatpush.bf16.msrb.mxu1 %v4541_v24  ;;  %v4533_v11 = vor.u32 %v4834_v1, %v4530_v49  ;;  %v6658_v37 = vrot.slane %v5918_v51, 2 }
 0x2cd   : > { %v2374_v34 = vmul.f32 %v6017_v7, %v2346_v10  ;;  %v4528_v10 = vld [vmem:[#allocation7 + $0xd8] sm:$0xf] }
 0x2ce   : > { %v2680_v14 = vunpack.c.l.b16 %v2608_v38  ;;  %v4835_v38 = vld [vmem:[#allocation7 + $0xe0] sm:$0xf0]  ;;  %3278 = vmatpush.bf16.msrb.mxu2 %v4533_v11 }
 0x2cf   : > { %v2402_v8 = vadd.f32 %v6027_v17, %v2374_v34  ;;  %v2064_v23 = vpop.f32.mrf.mxu0  ;;  %v2169_v34 = vrot.slane %v6128_v52, 1  ;;  %v4529_v47 = vor.u32 %v4835_v38, %v4528_v10 }
 0x2d0   : > { %v6174_v60 = vpack.c.b16 %v2680_v14, %v2679_v25  ;;  %v2286_v44 = vrot.slane %v2064_v23, 2  ;;  %v4584_v14 = vld [vmem:[#allocation7 + $0x140] sm:$0xf]  ;;  %v1703_v23 = vadd.f32 %v1645_v13, %v5916_v15 }
 0x2d1   : > { %v2426_v48 = vmax.f32 %v2402_v8, 0.0  ;;  %v4848_v8 = vld [vmem:[#allocation7 + $0x148] sm:$0xf0]  ;;  %3237 = vmatpush.bf16.msrb.mxu1 %v4529_v47  ;;  %v2170_v52 = vsel %vm848_vm0, %v2167_v42, %v2169_v34  ;;  %v2171_v42 = vrot.slane %v6143_v30, 1  ;;  %v4536_v47 = vld [vmem:[#allocation7 + $0xe0] sm:$0xf] }
 0x2d2   : > { %2855 = vmatmul.bf16.gmra.mxu1 %v6174_v60  ;;  %3647 = vmatmul.bf16.vlgmr.msrb.gmra.mxu0 %v6174_v60  ;;  %v4585_v21 = vor.u32 %v4848_v8, %v4584_v14  ;;  %v2107_v63 = vadd.f32 %v5892_v32, %v1703_v23  ;;  %v4560_v32 = vld [vmem:[#allocation7 + $0x110] sm:$0xf]  ;;  %v4836_v14 = vld [vmem:[#allocation7 + $0xe8] sm:$0xf0] }
 0x2d3   : > { %2898 = vmatmul.bf16.gmra.mxu2 %v6174_v60  ;;  %2943 = vmatmul.bf16.gmra.mxu3 %v6174_v60  ;;  %v2585_v22 = vsel %vm2513_vm4, %v2426_v48, 0.0  ;;  %v6199_v48 = vpop.f32.mrf.mxu3  ;;  %v4561_v45 = vor.u32 %v4842_v39, %v4560_v32  ;;  %v2172_v16 = vsel %vm848_vm0, %v2169_v34, %v2171_v42  ;;  %v4537_v23 = vor.u32 %v4836_v14, %v4536_v47 }
 0x2d4   : > { %v2609_v28 = vpack.c.bf16 %v2585_v22, %v2585_v22  ;;  %3319 = vmatpush.bf16.msrb.mxu3 %v4585_v21  ;;  %v2228_v22 = vadd.f32 %v2170_v52, %v2107_v63  ;;  %v2229_v10 = vadd.f32 %v2172_v16, %v5930_v36  ;;  %v4831_v52 = vld [vmem:[#allocation7 + $0xc4] sm:$0xf]  ;;  %v4518_v36 = vld [vmem:[#allocation7 + $0xcc] sm:$0xf0]  ;;  %v6657_v16 = vrot.slane %v5932_v31, 2 }
 0x2d5   : > { %v2451_v31 = vadd.s32 4, %v6021_v43 }
 0x2d6   : > { %v2681_v55 = vunpack.c.l.b16 %v2609_v28  ;;  %v4548_v28 = vld [vmem:[#allocation7 + $0xf8] sm:$0xf] }
 0x2d7   : > { %v2066_v56 = vpop.f32.mrf.mxu0  ;;  %vm2457_vm12 = vcmp.ge.s32.totalorder %v2451_v31, 0  ;;  %vm2463_vm13 = vcmp.lt.s32.totalorder %v2451_v31, 16 }
 0x2d8   : > { %v2288_v40 = vrot.slane %v2066_v56, 2  ;;  %v6206_v53 = vpack.c.b16 %v6086_v12, %v2681_v55  ;;  %3320 = vmatpush.bf16.msrb.mxu3 %v4573_v4  ;;  %v4524_v4 = vld [vmem:[#allocation7 + $0xc8] sm:$0xf]  ;;  %vm6267_vm14 = vmand %vm2457_vm12, %vm2463_vm13 }
 0x2d9   : > { %vm2491_vm15 = vmand %vm6267_vm14, %vm2471_vm5 }
 0x2da   : > { %v2289_v25 = vsel %vm970_vm1, %v2286_v44, %v2288_v40  ;;  %v4839_v44 = vld [vmem:[#allocation7 + $0x100] sm:$0xf0]  ;;  %vm2521_vm2 = vmand %vm6267_vm14, %vm2501_vm7 }
 0x2db   : > { %v2348_v3 = vadd.f32 %v2289_v25, %v2227_v20  ;;  %v6224_v13 = vpop.f32.mrf.mxu3  ;;  %v4549_v20 = vor.u32 %v4839_v44, %v4548_v28  ;;  %v1653_v28 = vsel %vm970_vm1, %v6658_v37, %v6657_v16 }
 0x2dc   : > { %3321 = vmatpush.bf16.msrb.mxu3 %v4561_v45  ;;  %v1707_v14 = vadd.f32 %v1653_v28, %v5952_v62 }
 0x2dd   : > { %v2376_v59 = vmul.f32 %v6017_v7, %v2348_v3 }
 0x2df   : > { %v2404_v15 = vadd.f32 %v6027_v17, %v2376_v59  ;;  %v2069_v24 = vpop.f32.mrf.mxu0 }
 0x2e0   : > { %v2290_v58 = vrot.slane %v2069_v24, 2  ;;  %3322 = vmatpush.bf16.msrb.mxu3 %v4549_v20  ;;  %v4832_v24 = vld [vmem:[#allocation7 + $0xc8] sm:$0xf0] }
 0x2e1   : > { %v2428_v56 = vmax.f32 %v2404_v15, 0.0  ;;  %v4521_v15 = vor.u32 %v4831_v52, %v4518_v36  ;;  %v2179_v36 = vrot.slane %v6224_v13, 1 }
 0x2e2   : > { %v2291_v61 = vsel %vm970_vm1, %v2288_v40, %v2290_v58  ;;  %2860 = vmatmul.bf16.gmra.mxu1 %v6206_v53  ;;  %3652 = vmatmul.bf16.gmra.mxu0 %v6206_v53 }
 0x2e3   : > { %v2349_v50 = vadd.f32 %v2291_v61, %v2228_v22  ;;  %2903 = vmatmul.bf16.gmra.mxu2 %v6206_v53  ;;  %2948 = vmatmul.bf16.gmra.mxu3 %v6206_v53  ;;  %v2587_v40 = vsel %vm2487_vm10, %v2428_v56, 0.0  ;;  %v6233_v22 = vpop.f32.mrf.mxu3  ;;  %v4517_v61 = vor.u32 %v4832_v24, %v4516_v54  ;;  %v2173_v56 = vrot.slane %v6166_v57, 1  ;;  %v4875_v24 = vld [vmem:[#allocation7 + $0x220] sm:$0xf0] }
 0x2e4   : > { %v2611_v25 = vpack.c.bf16 %v2587_v40, %v2587_v40  ;;  %3323 = vmatpush.bf16.msrb.mxu3 %v4537_v23  ;;  %3279 = vmatpush.bf16.msrb.mxu2 %v4521_v15  ;;  %v4692_v15 = vld [vmem:[#allocation7 + $0x218] sm:$0xf] }
 0x2e5   : > { %v2377_v30 = vmul.f32 %v6017_v7, %v2349_v50  ;;  %v2175_v50 = vrot.slane %v6178_v46, 1  ;;  %3238 = vmatpush.bf16.msrb.mxu1 %v4517_v61 }
 0x2e6   : > { %v2683_v55 = vunpack.c.l.b16 %v2611_v25  ;;  %v2177_v25 = vrot.slane %v6199_v48, 1  ;;  %v2111_v48 = vadd.f32 %v5923_v5, %v1707_v14  ;;  %v2181_v14 = vrot.slane %v6233_v22, 1  ;;  %v6662_v22 = vld [vmem:[#allocation27_spill] sm:$0xff] }
 0x2e7   : > { %v2405_v1 = vadd.f32 %v6027_v17, %v2377_v30  ;;  %v2071_v49 = vpop.f32.mrf.mxu0  ;;  %v2176_v57 = vsel %vm848_vm0, %v2173_v56, %v2175_v50 }
 0x2e8   : > { %v2292_v11 = vrot.slane %v2071_v49, 2  ;;  %v4878_v49 = vld [vmem:[#allocation7 + $0x238] sm:$0xf0]  ;;  %v2231_v20 = vadd.f32 %v2176_v57, %v5946_v0  ;;  %v2178_v23 = vsel %vm848_vm0, %v2175_v50, %v2177_v25  ;;  %v6661_v50 = vld [vmem:[#allocation26_spill] sm:$0xff] }
 0x2e9   : > { %v2429_v38 = vmax.f32 %v2405_v1, 0.0  ;;  %v4704_v1 = vld [vmem:[#allocation7 + $0x230] sm:$0xf]  ;;  %v2232_v62 = vadd.f32 %v2178_v23, %v2111_v48 }
 0x2ea   : > { %v2293_v41 = vsel %vm970_vm1, %v2290_v58, %v2292_v11  ;;  %v4833_v58 = vld [vmem:[#allocation7 + $0xd0] sm:$0xf0]  ;;  %v4705_v11 = vor.u32 %v4878_v49, %v4704_v1 }
 0x2eb   : > { %v2588_v34 = vsel %vm6208_vm9, %v2429_v38, 0.0  ;;  %v2350_v8 = vadd.f32 %v2293_v41, %v2229_v10  ;;  %v4525_v32 = vor.u32 %v4833_v58, %v4524_v4  ;;  %v4876_v10 = vld [vmem:[#allocation7 + $0x22c] sm:$0xf]  ;;  %v4698_v38 = vld [vmem:[#allocation7 + $0x234] sm:$0xf0]  ;;  %v6255_v41 = vpop.f32.mrf.mxu3  ;;  %v2180_v4 = vsel %vm848_vm0, %v2177_v25, %v2179_v36 }
 0x2ec   : > { %v2612_v3 = vpack.c.bf16 %v2588_v34, %v2588_v34  ;;  %v4701_v51 = vor.u32 %v4876_v10, %v4698_v38  ;;  %3725 = vmatpush.bf16.msra.mxu2 %v4705_v11  ;;  %v4693_v58 = vor.u32 %v4875_v24, %v4692_v15 }
 0x2ed   : > { %v2378_v21 = vmul.f32 %v6017_v7, %v2350_v8  ;;  %3324 = vmatpush.bf16.msrb.mxu3 %v4525_v32 }
 0x2ee   : > { %v2684_v59 = vunpack.c.l.b16 %v2612_v3  ;;  %3680 = vmatpush.bf16.msra.mxu1 %v4701_v51 }
 0x2ef   : > { %v2406_v9 = vadd.f32 %v6027_v17, %v2378_v21  ;;  %v2074_v63 = vpop.f32.mrf.mxu0 }
 0x2f0   : > { %v6235_v42 = vpack.c.b16 %v2684_v59, %v2683_v55  ;;  %v2294_v30 = vrot.slane %v2074_v63, 2  ;;  %3726 = vmatpush.bf16.msra.mxu2 %v4693_v58  ;;  %v2452_v58 = vadd.s32 5, %v6021_v43 }
 0x2f1   : > { %v2430_v39 = vmax.f32 %v2406_v9, 0.0 }
 0x2f2   : > { %2863 = vmatmul.bf16.gmra.mxu1 %v6235_v42  ;;  %3655 = vmatmul.bf16.gmra.mxu0 %v6235_v42  ;;  %vm2458_vm3 = vcmp.ge.s32.totalorder %v2452_v58, 0  ;;  %vm2464_vm4 = vcmp.lt.s32.totalorder %v2452_v58, 16 }
 0x2f3   : > { %2907 = vmatmul.bf16.gmra.mxu2 %v6235_v42  ;;  %2952 = vmatmul.bf16.gmra.mxu3 %v6235_v42  ;;  %v2589_v45 = vsel %vm2517_vm11, %v2430_v39, 0.0  ;;  %v6277_v63 = vpop.f32.mrf.mxu3  ;;  %vm6326_vm6 = vmand %vm2458_vm3, %vm2464_vm4 }
 0x2f4   : > { %v2613_v44 = vpack.c.bf16 %v2589_v45, %v2589_v45  ;;  %v2233_v45 = vadd.f32 %v2180_v4, %v6661_v50  ;;  %vm2495_vm8 = vmand %vm6326_vm6, %vm2471_vm5 }
 0x2f5   : > { %vm2525_vm5 = vmand %vm6326_vm6, %vm2501_vm7 }
 0x2f6   : > { %v2685_v8 = vunpack.c.l.b16 %v2613_v44 }
 0x2f7   : > { %v2076_v46 = vpop.f32.mrf.mxu0 }
 0x2f8   : > { %v2296_v40 = vrot.slane %v2076_v46, 2  ;;  %v6265_v55 = vpack.c.b16 %v6086_v12, %v2685_v8  ;;  %v4686_v46 = vld [vmem:[#allocation7 + $0x21c] sm:$0xf0] }
 0x2f9   : > { %v4680_v8 = vld [vmem:[#allocation7 + $0x200] sm:$0xf] }
 0x2fa   : > { %v2297_v47 = vsel %vm970_vm1, %v2294_v30, %v2296_v40  ;;  %v4873_v30 = vld [vmem:[#allocation7 + $0x214] sm:$0xf] }
 0x2fb   : > { %v2352_v34 = vadd.f32 %v2297_v47, %v2231_v20  ;;  %v4689_v28 = vor.u32 %v4873_v30, %v4686_v46  ;;  %v6291_v20 = vpop.f32.mrf.mxu3 }
 0x2fd   : > { %v2380_v0 = vmul.f32 %v6017_v7, %v2352_v34  ;;  %3681 = vmatpush.bf16.msra.mxu1 %v4689_v28  ;;  %v2183_v34 = vrot.slane %v6255_v41, 1  ;;  %v6663_v41 = vrot.slane %v6662_v22, 2 }
 0x2ff   : > { %v2408_v3 = vadd.f32 %v6027_v17, %v2380_v0  ;;  %v2079_v21 = vpop.f32.mrf.mxu0  ;;  %v4872_v0 = vld [vmem:[#allocation7 + $0x208] sm:$0xf0] }
 0x300   : > { %v2298_v59 = vrot.slane %v2079_v21, 2  ;;  %v4681_v23 = vor.u32 %v4872_v0, %v4680_v8  ;;  %v2184_v21 = vsel %vm848_vm0, %v2181_v14, %v2183_v34  ;;  %v4668_v14 = vld [vmem:[#allocation7 + $0x1e8] sm:$0xf] }
 0x301   : > { %v2432_v5 = vmax.f32 %v2408_v3, 0.0  ;;  %v1661_v3 = vsel %vm970_vm1, %v6663_v41, %v1660_v33  ;;  %v2235_v24 = vadd.f32 %v2184_v21, %v5981_v26  ;;  %v2185_v33 = vrot.slane %v6277_v63, 1 }
 0x302   : > { %v2299_v54 = vsel %vm970_vm1, %v2296_v40, %v2298_v59  ;;  %2868 = vmatmul.bf16.gmra.mxu1 %v6265_v55  ;;  %3660 = vmatmul.bf16.gmra.mxu0 %v6265_v55  ;;  %v1711_v18 = vadd.f32 %v1661_v3, %v5986_v27 }
 0x303   : > { %v2353_v9 = vadd.f32 %v2299_v54, %v2232_v62  ;;  %2912 = vmatmul.bf16.gmra.mxu2 %v6265_v55  ;;  %2957 = vmatmul.bf16.gmra.mxu3 %v6265_v55  ;;  %v2591_v61 = vsel %vm2491_vm15, %v2432_v5, 0.0  ;;  %v4674_v5 = vld [vmem:[#allocation7 + $0x204] sm:$0xf0] }
 0x304   : > { %v2615_v16 = vpack.c.bf16 %v2591_v61, %v2591_v61  ;;  %3727 = vmatpush.bf16.msra.mxu2 %v4681_v23 }
 0x305   : > { %v2381_v13 = vmul.f32 %v6017_v7, %v2353_v9 }
 0x306   : > { %v3095_v11 = vunpack.c.l.b16 %v2615_v16 }
 0x307   : > { %v2409_v32 = vadd.f32 %v6027_v17, %v2381_v13  ;;  %v2081_v39 = vpop.f32.mrf.mxu0 }
 0x308   : > { %v2300_v56 = vrot.slane %v2081_v39, 2  ;;  %v6664_v39 = vld [vmem:[#allocation25_spill] sm:$0xff] }
 0x309   : > { %v2433_v57 = vmax.f32 %v2409_v32, 0.0 }
 0x30a   : > { %v2301_v37 = vsel %vm970_vm1, %v2298_v59, %v2300_v56  ;;  %v2115_v56 = vadd.f32 %v6664_v39, %v1711_v18 }
 0x30b   : > { %v2592_v44 = vsel %vm6267_vm14, %v2433_v57, 0.0  ;;  %v2354_v40 = vadd.f32 %v2301_v37, %v2233_v45  ;;  %v2186_v45 = vsel %vm848_vm0, %v2183_v34, %v2185_v33  ;;  %v4869_v34 = vld [vmem:[#allocation7 + $0x1f0] sm:$0xf0] }
 0x30c   : > { %v2616_v1 = vpack.c.bf16 %v2592_v44, %v2592_v44 }
 0x30d   : > { %v2382_v49 = vmul.f32 %v6017_v7, %v2354_v40  ;;  %v2236_v40 = vadd.f32 %v2186_v45, %v2115_v56 }
 0x30e   : > { %v3096_v10 = vunpack.c.l.b16 %v2616_v1 }
 0x30f   : > { %v2410_v38 = vadd.f32 %v6027_v17, %v2382_v49  ;;  %v2084_v25 = vpop.f32.mrf.mxu0  ;;  %v2840_v47 = vpop.f32.mrf.mxu1 }
 0x310   : > { %v6294_v31 = vpack.c.b16 %v3096_v10, %v3095_v11  ;;  %v2302_v59 = vrot.slane %v2084_v25, 2  ;;  %v2187_v10 = vrot.slane %v6291_v20, 1  ;;  %v4669_v20 = vor.u32 %v4869_v34, %v4668_v14 }
 0x311   : > { %v2434_v51 = vmax.f32 %v2410_v38, 0.0 }
 0x312   : > { %3239 = vmatmul.bf16.vlgmr.msrb.gmra.mxu1 %v6117_v6  ;;  %3663 = vmatmul.bf16.gmra.mxu0 %v6294_v31 }
 0x313   : > { %3280 = vmatmul.bf16.vlgmr.msrb.gmra.mxu2 %v6117_v6  ;;  %3325 = vmatmul.bf16.vlgmr.msrb.gmra.mxu3 %v6117_v6  ;;  %v2593_v48 = vsel %vm2521_vm2, %v2434_v51, 0.0  ;;  %v4870_v6 = vld [vmem:[#allocation7 + $0x1fc] sm:$0xf] }
 0x314   : > { %v2617_v9 = vpack.c.bf16 %v2593_v48, %v2593_v48  ;;  %v4677_v15 = vor.u32 %v4870_v6, %v4674_v5  ;;  %3728 = vmatpush.bf16.msra.mxu2 %v4669_v20  ;;  %v4867_v6 = vld [vmem:[#allocation7 + $0x1e4] sm:$0xf]  ;;  %v4662_v5 = vld [vmem:[#allocation7 + $0x1ec] sm:$0xf0] }
 0x315   : > { %v4665_v18 = vor.u32 %v4867_v6, %v4662_v5 }
 0x316   : > { %v2881_v62 = vpop.f32.mrf.mxu2  ;;  %v2926_v52 = vpop.f32.mrf.mxu3  ;;  %3682 = vmatpush.bf16.msra.mxu1 %v4677_v15  ;;  %v3097_v32 = vunpack.c.l.b16 %v2617_v9 }
 0x317   : > { %v2086_v36 = vpop.f32.mrf.mxu0  ;;  %v6312_v54 = vpop.f32.mrf.mxu1  ;;  %v2974_v57 = vrot.slane %v2881_v62, 1  ;;  %v3022_v26 = vrot.slane %v2926_v52, 2 }
 0x318   : > { %v2304_v13 = vrot.slane %v2086_v36, 2  ;;  %v6324_v28 = vpack.c.b16 %v6086_v12, %v3097_v32 }
 0x31a   : > { %v2305_v4 = vsel %vm970_vm1, %v2302_v59, %v2304_v13  ;;  %3683 = vmatpush.bf16.msra.mxu1 %v4665_v18 }
 0x31b   : > { %v2356_v61 = vadd.f32 %v2305_v4, %v2235_v24 }
 0x31d   : > { %v2384_v50 = vmul.f32 %v6017_v7, %v2356_v61  ;;  %v5013_v61 = vld [vmem:[%s6600_s2] ss:$0 sm:$0xff] }
 0x31e   : > { %v2883_v30 = vpop.f32.mrf.mxu2  ;;  %v2928_v27 = vpop.f32.mrf.mxu3 }
 0x31f   : > { %v2975_v63 = vrot.slane %v2883_v30, 1  ;;  %v3023_v46 = vrot.slane %v2928_v27, 2  ;;  %v2089_v16 = vpop.f32.mrf.mxu0  ;;  %v2845_v37 = vpop.f32.mrf.mxu1  ;;  %v2412_v43 = vadd.f32 %v6027_v17, %v2384_v50 }
 0x320   : > { %v2306_v44 = vrot.slane %v2089_v16, 2 }
 0x321   : > { %v2976_v49 = vsel %vm848_vm0, %v2974_v57, %v2975_v63  ;;  %v3024_v11 = vsel %vm970_vm1, %v3022_v26, %v3023_v46  ;;  %v2436_v51 = vmax.f32 %v2412_v43, 0.0  ;;  %v4656_v26 = vld [vmem:[#allocation7 + $0x1d0] sm:$0xf] }
 0x322   : > { %v2307_v38 = vsel %vm970_vm1, %v2304_v13, %v2306_v44  ;;  %3244 = vmatmul.bf16.gmra.mxu1 %v6148_v29  ;;  %3668 = vmatmul.bf16.gmra.mxu0 %v6324_v28  ;;  %v3002_v17 = vadd.f32 %v2976_v49, %v2840_v47  ;;  %v2188_v47 = vsel %vm848_vm0, %v2185_v33, %v2187_v10  ;;  %v4650_v49 = vld [vmem:[#allocation7 + $0x1d4] sm:$0xf0] }
 0x323   : > { %v2357_v25 = vadd.f32 %v2307_v38, %v2236_v40  ;;  %3285 = vmatmul.bf16.gmra.mxu2 %v6148_v29  ;;  %3330 = vmatmul.bf16.gmra.mxu3 %v6148_v29  ;;  %v2595_v59 = vsel %vm2495_vm8, %v2436_v51, 0.0  ;;  %v2237_v52 = vadd.f32 %v2188_v47, %v5998_v2  ;;  %v4864_v40 = vld [vmem:[#allocation7 + $0x1cc] sm:$0xf] }
 0x324   : > { %v6342_v8 = vadd.f32 %v3024_v11, %v3002_v17  ;;  %v2619_v15 = vpack.c.bf16 %v2595_v59, %v2595_v59  ;;  %v4653_v10 = vor.u32 %v4864_v40, %v4650_v49 }
 0x325   : > { %v2385_v0 = vmul.f32 %v6017_v7, %v2357_v25 }
 0x326   : > { %v2886_v23 = vpop.f32.mrf.mxu2  ;;  %v2931_v48 = vpop.f32.mrf.mxu3  ;;  %v3503_v50 = vunpack.c.l.b16 %v2619_v15  ;;  %3684 = vmatpush.bf16.msra.mxu1 %v4653_v10  ;;  %v4857_v10 = vld [vmem:[#allocation7 + $0x190] sm:$0xf0] }
 0x327   : > { %v2977_v22 = vrot.slane %v2886_v23, 1  ;;  %v3025_v29 = vrot.slane %v2931_v48, 2  ;;  %v2091_v41 = vpop.f32.mrf.mxu0  ;;  %v2846_v3 = vpop.f32.mrf.mxu1  ;;  %v2413_v21 = vadd.f32 %v5012_v19, %v2385_v0  ;;  %v4644_v48 = vld [vmem:[#allocation7 + $0x1b8] sm:$0xf] }
 0x328   : > { %v2308_v62 = vrot.slane %v2091_v41, 2 }
 0x329   : > { %v2978_v7 = vsel %vm848_vm0, %v2975_v63, %v2977_v22  ;;  %v2437_v36 = vmax.f32 %v2413_v21, 0.0  ;;  %v3026_v9 = vsel %vm970_vm1, %v3023_v46, %v3025_v29  ;;  %v4866_v63 = vld [vmem:[#allocation7 + $0x1d8] sm:$0xf0]  ;;  %v4863_v22 = vld [vmem:[#allocation7 + $0x1c0] sm:$0xf0] }
 0x32a   : > { %v2309_v13 = vsel %vm970_vm1, %v2306_v44, %v2308_v62  ;;  %v3003_v24 = vadd.f32 %v2978_v7, %v6312_v54  ;;  %v4657_v46 = vor.u32 %v4866_v63, %v4656_v26  ;;  %v4645_v29 = vor.u32 %v4863_v22, %v4644_v48  ;;  %v4638_v7 = vld [vmem:[#allocation7 + $0x1bc] sm:$0xf0] }
 0x32b   : > { %v2358_v33 = vadd.f32 %v2309_v13, %v2237_v52  ;;  %v2596_v4 = vsel %vm6326_vm6, %v2437_v36, 0.0  ;;  %v4861_v52 = vld [vmem:[#allocation7 + $0x1b4] sm:$0xf] }
 0x32c   : > { %v2620_v58 = vpack.c.bf16 %v2596_v4, %v2596_v4  ;;  %v6356_v2 = vadd.f32 %v3026_v9, %v3003_v24  ;;  %3729 = vmatpush.bf16.msra.mxu2 %v4657_v46  ;;  %v4641_v6 = vor.u32 %v4861_v52, %v4638_v7  ;;  %v4860_v4 = vld [vmem:[#allocation7 + $0x1a8] sm:$0xf0] }
 0x32d   : > { %v2386_v32 = vmul.f32 %v5013_v61, %v2358_v33  ;;  %v4632_v33 = vld [vmem:[#allocation7 + $0x1a0] sm:$0xf] }
 0x32e   : > { %v2888_v39 = vpop.f32.mrf.mxu2  ;;  %v2933_v56 = vpop.f32.mrf.mxu3  ;;  %v3504_v45 = vunpack.c.l.b16 %v2620_v58  ;;  %3685 = vmatpush.bf16.msra.mxu1 %v4641_v6  ;;  %v4633_v58 = vor.u32 %v4860_v4, %v4632_v33 }
 0x32f   : > { %v2848_v57 = vpop.f32.mrf.mxu1  ;;  %v2414_v30 = vadd.f32 %v5012_v19, %v2386_v32 }
 0x330   : > { %v6361_v54 = vpack.c.b16 %v3504_v45, %v3503_v50  ;;  %3730 = vmatpush.bf16.msra.mxu2 %v4645_v29  ;;  %v4858_v50 = vld [vmem:[#allocation7 + $0x19c] sm:$0xf]  ;;  %v4626_v45 = vld [vmem:[#allocation7 + $0x1a4] sm:$0xf0] }
 0x331   : > { %v2438_v27 = vmax.f32 %v2414_v30, 0.0 }
 0x332   : > { %3247 = vmatmul.bf16.gmra.mxu1 %v6174_v60  ;;  %3671 = vmatmul.bf16.gmra.mxu0 %v6361_v54 }
 0x333   : > { %3289 = vmatmul.bf16.gmra.mxu2 %v6174_v60  ;;  %3334 = vmatmul.bf16.gmra.mxu3 %v6174_v60  ;;  %v2597_v16 = vsel %vm2525_vm5, %v2438_v27, 0.0 }
 0x334   : > { %v2621_v11 = vpack.c.bf16 %v2597_v16, %v2597_v16  ;;  %3731 = vmatpush.bf16.msra.mxu2 %v4633_v58 }
 0x336   : > { %v2890_v37 = vpop.f32.mrf.mxu2  ;;  %v2935_v43 = vpop.f32.mrf.mxu3  ;;  %v3505_v35 = vunpack.c.l.b16 %v2621_v11  ;;  %v4620_v11 = vld [vmem:[#allocation7 + $0x188] sm:$0xf] }
 0x337   : > { %v2850_v44 = vpop.f32.mrf.mxu1  ;;  %v2979_v17 = vrot.slane %v2890_v37, 1  ;;  %v3027_v25 = vrot.slane %v2935_v43, 2 }
 0x338   : > { %v6372_v20 = vpack.c.b16 %v6086_v12, %v3505_v35  ;;  %v4621_v35 = vor.u32 %v4857_v10, %v4620_v11 }
 0x33a   : > { %3732 = vmatpush.bf16.msra.mxu2 %v4621_v35 }
 0x33e   : > { %v2892_v1 = vpop.f32.mrf.mxu2  ;;  %v2937_v38 = vpop.f32.mrf.mxu3 }
 0x33f   : > { %v2980_v51 = vrot.slane %v2892_v1, 1  ;;  %v3028_v14 = vrot.slane %v2937_v38, 2  ;;  %v2853_v34 = vpop.f32.mrf.mxu1 }
 0x341   : > { %v2981_v0 = vsel %vm848_vm0, %v2979_v17, %v2980_v51  ;;  %v3029_v47 = vsel %vm970_vm1, %v3027_v25, %v3028_v14 }
 0x342   : > { %3252 = vmatmul.bf16.gmra.mxu1 %v6206_v53  ;;  %3676 = vmatmul.bf16.gmra.mxu0 %v6372_v20  ;;  %v3004_v23 = vadd.f32 %v2981_v0, %v2848_v57  ;;  %v4629_v57 = vor.u32 %v4858_v50, %v4626_v45 }
 0x343   : > { %3294 = vmatmul.bf16.gmra.mxu2 %v6206_v53  ;;  %3339 = vmatmul.bf16.gmra.mxu3 %v6206_v53 }
 0x344   : > { %v6380_v41 = vadd.f32 %v3029_v47, %v3004_v23  ;;  %3686 = vmatpush.bf16.msra.mxu1 %v4629_v57  ;;  %v4855_v47 = vld [vmem:[#allocation7 + $0x184] sm:$0xf]  ;;  %v4614_v23 = vld [vmem:[#allocation7 + $0x18c] sm:$0xf0] }
 0x345   : > { %v4617_v22 = vor.u32 %v4855_v47, %v4614_v23 }
 0x346   : > { %v2895_v12 = vpop.f32.mrf.mxu2  ;;  %v2940_v3 = vpop.f32.mrf.mxu3 }
 0x347   : > { %v2982_v19 = vrot.slane %v2895_v12, 1  ;;  %v3030_v21 = vrot.slane %v2940_v3, 2  ;;  %v2854_v59 = vpop.f32.mrf.mxu1 }
 0x348   : > { %3687 = vmatpush.bf16.msra.mxu1 %v4617_v22 }
 0x349   : > { %v2983_v62 = vsel %vm848_vm0, %v2980_v51, %v2982_v19  ;;  %v3031_v36 = vsel %vm970_vm1, %v3028_v14, %v3030_v21 }
 0x34a   : > { %v3005_v5 = vadd.f32 %v2983_v62, %v2850_v44 }
 0x34c   : > { %v6384_v9 = vadd.f32 %v3031_v36, %v3005_v5 }
 0x34e   : > { %v2897_v13 = vpop.f32.mrf.mxu2  ;;  %v2942_v15 = vpop.f32.mrf.mxu3 }
 0x34f   : > { %v2856_v18 = vpop.f32.mrf.mxu1  ;;  %v6386_v24 = vpop.f32.mrf.mxu0 }
 0x352   : > { %3255 = vmatmul.bf16.gmra.mxu1 %v6235_v42 }
 0x353   : > { %3298 = vmatmul.bf16.gmra.mxu2 %v6235_v42  ;;  %3343 = vmatmul.bf16.gmra.mxu3 %v6235_v42 }
 0x356   : > { %v2899_v61 = vpop.f32.mrf.mxu2  ;;  %v2944_v32 = vpop.f32.mrf.mxu3 }
 0x357   : > { %v2858_v39 = vpop.f32.mrf.mxu1  ;;  %v6391_v56 = vpop.f32.mrf.mxu0  ;;  %v2984_v26 = vrot.slane %v2899_v61, 1  ;;  %v3032_v63 = vrot.slane %v2944_v32, 2 }
 0x35e   : > { %v2901_v30 = vpop.f32.mrf.mxu2  ;;  %v2946_v27 = vpop.f32.mrf.mxu3 }
 0x35f   : > { %v2985_v46 = vrot.slane %v2901_v30, 1  ;;  %v3033_v16 = vrot.slane %v2946_v27, 2  ;;  %v2861_v37 = vpop.f32.mrf.mxu1  ;;  %v3653_v43 = vpop.f32.mrf.mxu0 }
 0x361   : > { %v2986_v44 = vsel %vm848_vm0, %v2984_v26, %v2985_v46  ;;  %v3034_v40 = vsel %vm970_vm1, %v3032_v63, %v3033_v16 }
 0x362   : > { %3260 = vmatmul.bf16.gmra.mxu1 %v6265_v55  ;;  %v3006_v49 = vadd.f32 %v2986_v44, %v2856_v18 }
 0x363   : > { %3303 = vmatmul.bf16.gmra.mxu2 %v6265_v55  ;;  %3348 = vmatmul.bf16.gmra.mxu3 %v6265_v55 }
 0x364   : > { %v6398_v1 = vadd.f32 %v3034_v40, %v3006_v49 }
 0x366   : > { %v2904_v38 = vpop.f32.mrf.mxu2  ;;  %v2949_v17 = vpop.f32.mrf.mxu3 }
 0x367   : > { %v2987_v25 = vrot.slane %v2904_v38, 1  ;;  %v3035_v51 = vrot.slane %v2949_v17, 2  ;;  %v2862_v14 = vpop.f32.mrf.mxu1  ;;  %v3654_v34 = vpop.f32.mrf.mxu0 }
 0x369   : > { %v2988_v0 = vsel %vm848_vm0, %v2985_v46, %v2987_v25  ;;  %v3036_v48 = vsel %vm970_vm1, %v3033_v16, %v3035_v51 }
 0x36a   : > { %v3007_v29 = vadd.f32 %v2988_v0, %v2858_v39 }
 0x36c   : > { %v6402_v12 = vadd.f32 %v3036_v48, %v3007_v29 }
 0x36e   : > { %v2906_v3 = vpop.f32.mrf.mxu2  ;;  %v2951_v19 = vpop.f32.mrf.mxu3 }
 0x36f   : > { %v2864_v21 = vpop.f32.mrf.mxu1  ;;  %v6404_v59 = vpop.f32.mrf.mxu0 }
 0x372   : > { %3263 = vmatmul.bf16.gmra.mxu1 %v6294_v31 }
 0x373   : > { %3307 = vmatmul.bf16.gmra.mxu2 %v6294_v31  ;;  %3352 = vmatmul.bf16.gmra.mxu3 %v6294_v31 }
 0x376   : > { %v2908_v62 = vpop.f32.mrf.mxu2  ;;  %v2953_v52 = vpop.f32.mrf.mxu3 }
 0x377   : > { %v2866_v7 = vpop.f32.mrf.mxu1  ;;  %v6409_v36 = vpop.f32.mrf.mxu0  ;;  %v2989_v13 = vrot.slane %v2908_v62, 1  ;;  %v3037_v15 = vrot.slane %v2953_v52, 2 }
 0x37e   : > { %v2910_v6 = vpop.f32.mrf.mxu2  ;;  %v2955_v5 = vpop.f32.mrf.mxu3 }
 0x37f   : > { %v2990_v18 = vrot.slane %v2910_v6, 1  ;;  %v3038_v33 = vrot.slane %v2955_v5, 2  ;;  %v2869_v4 = vpop.f32.mrf.mxu1  ;;  %v3661_v58 = vpop.f32.mrf.mxu0 }
 0x381   : > { %v2991_v61 = vsel %vm848_vm0, %v2989_v13, %v2990_v18  ;;  %v3039_v32 = vsel %vm970_vm1, %v3037_v15, %v3038_v33 }
 0x382   : > { %3268 = vmatmul.bf16.gmra.mxu1 %v6324_v28  ;;  %v3008_v39 = vadd.f32 %v2991_v61, %v2864_v21 }
 0x383   : > { %3312 = vmatmul.bf16.gmra.mxu2 %v6324_v28  ;;  %3357 = vmatmul.bf16.gmra.mxu3 %v6324_v28 }
 0x384   : > { %v6416_v50 = vadd.f32 %v3039_v32, %v3008_v39 }
 0x386   : > { %v2913_v45 = vpop.f32.mrf.mxu2  ;;  %v2958_v57 = vpop.f32.mrf.mxu3 }
 0x387   : > { %v2992_v30 = vrot.slane %v2913_v45, 1  ;;  %v3040_v27 = vrot.slane %v2958_v57, 2  ;;  %v2870_v26 = vpop.f32.mrf.mxu1  ;;  %v3662_v63 = vpop.f32.mrf.mxu0 }
 0x389   : > { %v2993_v46 = vsel %vm848_vm0, %v2990_v18, %v2992_v30  ;;  %v3041_v16 = vsel %vm970_vm1, %v3038_v33, %v3040_v27 }
 0x38a   : > { %v3009_v37 = vadd.f32 %v2993_v46, %v2866_v7 }
 0x38c   : > { %v6420_v43 = vadd.f32 %v3041_v16, %v3009_v37 }
 0x38e   : > { %v2915_v44 = vpop.f32.mrf.mxu2  ;;  %v2960_v40 = vpop.f32.mrf.mxu3 }
 0x38f   : > { %v3240_v49 = vpop.f32.mrf.mxu1  ;;  %v6422_v11 = vpop.f32.mrf.mxu0 }
 0x390   : > { %v3362_v10 = vadd.f32 %v3240_v49, %v6342_v8 }
 0x392   : > { %3688 = vmatmul.bf16.vlgmr.msra.gmra.mxu1 %v6174_v60 }
 0x393   : > { %3733 = vmatmul.bf16.vlgmr.msra.gmra.mxu2 %v6174_v60 }
 0x396   : > { %v3281_v35 = vpop.f32.mrf.mxu2  ;;  %v3326_v38 = vpop.f32.mrf.mxu3 }
 0x397   : > { %v3242_v17 = vpop.f32.mrf.mxu1  ;;  %v6427_v25 = vpop.f32.mrf.mxu0  ;;  %v3382_v0 = vrot.slane %v3281_v35, 1  ;;  %v3430_v47 = vrot.slane %v3326_v38, 2 }
 0x398   : > { %v3363_v51 = vadd.f32 %v3242_v17, %v6356_v2 }
 0x39e   : > { %v3283_v14 = vpop.f32.mrf.mxu2  ;;  %v3328_v34 = vpop.f32.mrf.mxu3 }
 0x39f   : > { %v3383_v23 = vrot.slane %v3283_v14, 1  ;;  %v3431_v48 = vrot.slane %v3328_v34, 2  ;;  %v3245_v22 = vpop.f32.mrf.mxu1  ;;  %v3669_v29 = vpop.f32.mrf.mxu0 }
 0x3a1   : > { %v3384_v8 = vsel %vm848_vm0, %v3382_v0, %v3383_v23  ;;  %v3432_v3 = vsel %vm970_vm1, %v3430_v47, %v3431_v48 }
 0x3a2   : > { %v3410_v60 = vadd.f32 %v3384_v8, %v3362_v10  ;;  %3693 = vmatmul.bf16.gmra.mxu1 %v6206_v53 }
 0x3a3   : > { %3738 = vmatmul.bf16.gmra.mxu2 %v6206_v53 }
 0x3a4   : > { %v6434_v19 = vadd.f32 %v3432_v3, %v3410_v60 }
 0x3a6   : > { %v3286_v2 = vpop.f32.mrf.mxu2  ;;  %v3331_v21 = vpop.f32.mrf.mxu3 }
 0x3a7   : > { %v3385_v62 = vrot.slane %v3286_v2, 1  ;;  %v3433_v52 = vrot.slane %v3331_v21, 2  ;;  %v3246_v7 = vpop.f32.mrf.mxu1  ;;  %v3670_v6 = vpop.f32.mrf.mxu0 }
 0x3a9   : > { %v3386_v5 = vsel %vm848_vm0, %v3383_v23, %v3385_v62  ;;  %v3434_v13 = vsel %vm970_vm1, %v3431_v48, %v3433_v52 }
 0x3aa   : > { %v3411_v15 = vadd.f32 %v3386_v5, %v3363_v51 }
 0x3ac   : > { %v6438_v18 = vadd.f32 %v3434_v13, %v3411_v15 }
 0x3ae   : > { %v3288_v33 = vpop.f32.mrf.mxu2  ;;  %v3333_v4 = vpop.f32.mrf.mxu3 }
 0x3af   : > { %v3248_v58 = vpop.f32.mrf.mxu1  ;;  %v6440_v61 = vpop.f32.mrf.mxu0 }
 0x3b0   : > { %v3364_v53 = vadd.f32 %v3248_v58, %v6380_v41 }
 0x3b2   : > { %3697 = vmatmul.bf16.gmra.mxu1 %v6235_v42 }
 0x3b3   : > { %3742 = vmatmul.bf16.gmra.mxu2 %v6235_v42 }
 0x3b6   : > { %v3290_v32 = vpop.f32.mrf.mxu2  ;;  %v3335_v39 = vpop.f32.mrf.mxu3 }
 0x3b7   : > { %v3250_v45 = vpop.f32.mrf.mxu1  ;;  %v6445_v57 = vpop.f32.mrf.mxu0  ;;  %v3387_v63 = vrot.slane %v3290_v32, 1  ;;  %v3435_v46 = vrot.slane %v3335_v39, 2 }
 0x3b8   : > { %v3365_v30 = vadd.f32 %v3250_v45, %v6384_v9 }
 0x3be   : > { %v3292_v27 = vpop.f32.mrf.mxu2  ;;  %v3337_v26 = vpop.f32.mrf.mxu3 }
 0x3bf   : > { %v3388_v16 = vrot.slane %v3292_v27, 1  ;;  %v3436_v37 = vrot.slane %v3337_v26, 2  ;;  %v3253_v44 = vpop.f32.mrf.mxu1  ;;  %v3677_v40 = vpop.f32.mrf.mxu0 }
 0x3c1   : > { %v3389_v41 = vsel %vm848_vm0, %v3387_v63, %v3388_v16  ;;  %v3437_v49 = vsel %vm970_vm1, %v3435_v46, %v3436_v37 }
 0x3c2   : > { %v3412_v42 = vadd.f32 %v3389_v41, %v3364_v53  ;;  %3702 = vmatmul.bf16.gmra.mxu1 %v6265_v55 }
 0x3c3   : > { %3747 = vmatmul.bf16.gmra.mxu2 %v6265_v55 }
 0x3c4   : > { %v6452_v10 = vadd.f32 %v3437_v49, %v3412_v42 }
 0x3c6   : > { %v3295_v9 = vpop.f32.mrf.mxu2  ;;  %v3340_v35 = vpop.f32.mrf.mxu3 }
 0x3c7   : > { %v3390_v38 = vrot.slane %v3295_v9, 1  ;;  %v3438_v17 = vrot.slane %v3340_v35, 2  ;;  %v3254_v51 = vpop.f32.mrf.mxu1  ;;  %v3678_v14 = vpop.f32.mrf.mxu0 }
 0x3c9   : > { %v3391_v34 = vsel %vm848_vm0, %v3388_v16, %v3390_v38  ;;  %v3439_v0 = vsel %vm970_vm1, %v3436_v37, %v3438_v17 }
 0x3ca   : > { %v3413_v47 = vadd.f32 %v3391_v34, %v3365_v30 }
 0x3cc   : > { %v6456_v23 = vadd.f32 %v3439_v0, %v3413_v47 }
 0x3ce   : > { %v3297_v48 = vpop.f32.mrf.mxu2  ;;  %v3342_v22 = vpop.f32.mrf.mxu3 }
 0x3cf   : > { %v3256_v29 = vpop.f32.mrf.mxu1 }
 0x3d0   : > { %v3366_v55 = vadd.f32 %v3256_v29, %v6398_v1 }
 0x3d2   : > { %3706 = vmatmul.bf16.gmra.mxu1 %v6294_v31 }
 0x3d3   : > { %3751 = vmatmul.bf16.gmra.mxu2 %v6294_v31 }
 0x3d6   : > { %v3299_v8 = vpop.f32.mrf.mxu2  ;;  %v3344_v3 = vpop.f32.mrf.mxu3 }
 0x3d7   : > { %v3258_v60 = vpop.f32.mrf.mxu1  ;;  %v3392_v52 = vrot.slane %v3299_v8, 1  ;;  %v3440_v7 = vrot.slane %v3344_v3, 2 }
 0x3d8   : > { %v3367_v2 = vadd.f32 %v3258_v60, %v6402_v12 }
 0x3de   : > { %v3301_v21 = vpop.f32.mrf.mxu2  ;;  %v3346_v62 = vpop.f32.mrf.mxu3 }
 0x3df   : > { %v3393_v6 = vrot.slane %v3301_v21, 1  ;;  %v3441_v5 = vrot.slane %v3346_v62, 2  ;;  %v3261_v13 = vpop.f32.mrf.mxu1 }
 0x3e1   : > { %v3394_v15 = vsel %vm848_vm0, %v3392_v52, %v3393_v6  ;;  %v3442_v1 = vsel %vm970_vm1, %v3440_v7, %v3441_v5 }
 0x3e2   : > { %v3414_v33 = vadd.f32 %v3394_v15, %v3366_v55  ;;  %3711 = vmatmul.bf16.gmra.mxu1 %v6324_v28 }
 0x3e3   : > { %3756 = vmatmul.bf16.gmra.mxu2 %v6324_v28 }
 0x3e4   : > { %v6466_v31 = vadd.f32 %v3442_v1, %v3414_v33 }
 0x3e6   : > { %v3304_v4 = vpop.f32.mrf.mxu2  ;;  %v3349_v12 = vpop.f32.mrf.mxu3 }
 0x3e7   : > { %v3395_v58 = vrot.slane %v3304_v4, 1  ;;  %v3443_v53 = vrot.slane %v3349_v12, 2  ;;  %v3262_v32 = vpop.f32.mrf.mxu1  ;;  %v6492_v4 = vld [vmem:[%s6603_s5] ss:$0 sm:$0xff] }
 0x3e8   : > { %v6498_v32 = vld [vmem:[%s6604_s6] ss:$0 sm:$0xff] }
 0x3e9   : > { %v3396_v39 = vsel %vm848_vm0, %v3393_v6, %v3395_v58  ;;  %v3444_v45 = vsel %vm970_vm1, %v3441_v5, %v3443_v53  ;;  %v3770_v6 = vadd.f32 %v6386_v24, %v6434_v19 }
 0x3ea   : > { %v3415_v30 = vadd.f32 %v3396_v39, %v3367_v2 }
 0x3ec   : > { %v6470_v27 = vadd.f32 %v3444_v45, %v3415_v30  ;;  %v3771_v45 = vadd.f32 %v6391_v56, %v6438_v18 }
 0x3ee   : > { %v3306_v26 = vpop.f32.mrf.mxu2  ;;  %v3351_v63 = vpop.f32.mrf.mxu3 }
 0x3ef   : > { %v3264_v46 = vpop.f32.mrf.mxu1 }
 0x3f0   : > { %v3368_v16 = vadd.f32 %v3264_v46, %v6416_v50 }
 0x3f2   : > { %3715 = vmatmul.bf16.gmra.mxu1 %v6361_v54 }
 0x3f3   : > { %3760 = vmatmul.bf16.gmra.mxu2 %v6361_v54 }
 0x3f6   : > { %v3308_v28 = vpop.f32.mrf.mxu2  ;;  %v3353_v37 = vpop.f32.mrf.mxu3 }
 0x3f7   : > { %v3266_v44 = vpop.f32.mrf.mxu1  ;;  %v3397_v42 = vrot.slane %v3308_v28, 1  ;;  %v3445_v9 = vrot.slane %v3353_v37, 2 }
 0x3f8   : > { %v3369_v40 = vadd.f32 %v3266_v44, %v6420_v43 }
 0x3fe   : > { %v3310_v41 = vpop.f32.mrf.mxu2  ;;  %v3355_v49 = vpop.f32.mrf.mxu3 }
 0x3ff   : > { %v3398_v35 = vrot.slane %v3310_v41, 1  ;;  %v3446_v38 = vrot.slane %v3355_v49, 2  ;;  %v3269_v17 = vpop.f32.mrf.mxu1 }
 0x400   : > { %v3772_v17 = vadd.f32 %v6404_v59, %v6452_v10  ;;  %v3773_v59 = vadd.f32 %v6409_v36, %v6456_v23 }
 0x401   : > { %v3399_v51 = vsel %vm848_vm0, %v3397_v42, %v3398_v35  ;;  %v3447_v50 = vsel %vm970_vm1, %v3445_v9, %v3446_v38 }
 0x402   : > { %v3416_v14 = vadd.f32 %v3399_v51, %v3368_v16  ;;  %3720 = vmatmul.bf16.gmra.mxu1 %v6372_v20 }
 0x403   : > { %3765 = vmatmul.bf16.gmra.mxu2 %v6372_v20 }
 0x404   : > { %v6480_v54 = vadd.f32 %v3447_v50, %v3416_v14 }
 0x406   : > { %v3313_v34 = vpop.f32.mrf.mxu2  ;;  %v3358_v43 = vpop.f32.mrf.mxu3 }
 0x407   : > { %v3400_v0 = vrot.slane %v3313_v34, 1  ;;  %v3448_v47 = vrot.slane %v3358_v43, 2  ;;  %v3270_v48 = vpop.f32.mrf.mxu1 }
 0x409   : > { %v3401_v22 = vsel %vm848_vm0, %v3398_v35, %v3400_v0  ;;  %v3449_v29 = vsel %vm970_vm1, %v3446_v38, %v3448_v47 }
 0x40a   : > { %v3417_v55 = vadd.f32 %v3401_v22, %v3369_v40 }
 0x40c   : > { %v6484_v8 = vadd.f32 %v3449_v29, %v3417_v55 }
 0x40e   : > { %v3315_v3 = vpop.f32.mrf.mxu2  ;;  %v3360_v60 = vpop.f32.mrf.mxu3 }
 0x40f   : > { %v3689_v2 = vpop.f32.mrf.mxu1 }
 0x410   : > { %v3790_v52 = vrot.slane %v3689_v2, 1 }
 0x416   : > { %v3734_v21 = vpop.f32.mrf.mxu2 }
 0x417   : > { %v3691_v62 = vpop.f32.mrf.mxu1  ;;  %v3838_v13 = vrot.slane %v3734_v21, 2 }
 0x418   : > { %v3791_v20 = vrot.slane %v3691_v62, 1 }
 0x41a   : > { %v3792_v7 = vsel %vm848_vm0, %v3790_v52, %v3791_v20 }
 0x41b   : > { %v3818_v33 = vadd.f32 %v3792_v7, %v3770_v6 }
 0x41e   : > { %v3736_v5 = vpop.f32.mrf.mxu2 }
 0x41f   : > { %v3839_v15 = vrot.slane %v3736_v5, 2  ;;  %v3694_v1 = vpop.f32.mrf.mxu1 }
 0x420   : > { %v3793_v58 = vrot.slane %v3694_v1, 1 }
 0x421   : > { %v3840_v12 = vsel %vm970_vm1, %v3838_v13, %v3839_v15 }
 0x422   : > { %v3866_v53 = vadd.f32 %v3840_v12, %v3818_v33  ;;  %v3794_v19 = vsel %vm848_vm0, %v3791_v20, %v3793_v58  ;;  %v3774_v12 = vadd.f32 %v6422_v11, %v6466_v31  ;;  %v3775_v11 = vadd.f32 %v6427_v25, %v6470_v27 }
 0x423   : > { %v3819_v16 = vadd.f32 %v3794_v19, %v3771_v45 }
 0x424   : > { %v3878_v24 = vmul.f32 %v6492_v4, %v3866_v53 }
 0x426   : > { %v3890_v39 = vadd.f32 %v6498_v32, %v3878_v24  ;;  %v3739_v30 = vpop.f32.mrf.mxu2 }
 0x427   : > { %v3841_v26 = vrot.slane %v3739_v30, 2  ;;  %v3696_v63 = vpop.f32.mrf.mxu1 }
 0x428   : > { %v3898_v46 = vmax.f32 %v3890_v39, 0.0 }
 0x429   : > { %v3842_v28 = vsel %vm970_vm1, %v3839_v15, %v3841_v26 }
 0x42a   : > { %3906 = vst [vmem:[%s5415_s18] sm:$0xff] %v3898_v46  ;;  %v3867_v37 = vadd.f32 %v3842_v28, %v3819_v16 }
 0x42c   : > { %v3879_v44 = vmul.f32 %v6492_v4, %v3867_v37 }
 0x42e   : > { %v3891_v40 = vadd.f32 %v6498_v32, %v3879_v44  ;;  %v3741_v41 = vpop.f32.mrf.mxu2 }
 0x42f   : > { %v3698_v49 = vpop.f32.mrf.mxu1 }
 0x430   : > { %v3899_v42 = vmax.f32 %v3891_v40, 0.0  ;;  %v3795_v18 = vrot.slane %v3698_v49, 1 }
 0x432   : > { %3907 = vst [vmem:[%s5415_s18 + $0x8] sm:$0xff] %v3899_v42 }
 0x436   : > { %v3743_v9 = vpop.f32.mrf.mxu2 }
 0x437   : > { %v3700_v35 = vpop.f32.mrf.mxu1  ;;  %v3843_v50 = vrot.slane %v3743_v9, 2 }
 0x438   : > { %v3796_v56 = vrot.slane %v3700_v35, 1 }
 0x43a   : > { %v3797_v38 = vsel %vm848_vm0, %v3795_v18, %v3796_v56 }
 0x43b   : > { %v3820_v43 = vadd.f32 %v3797_v38, %v3772_v17 }
 0x43e   : > { %v3745_v51 = vpop.f32.mrf.mxu2 }
 0x43f   : > { %v3844_v14 = vrot.slane %v3745_v51, 2  ;;  %v3703_v34 = vpop.f32.mrf.mxu1 }
 0x440   : > { %v3798_v47 = vrot.slane %v3703_v34, 1 }
 0x441   : > { %v3845_v0 = vsel %vm970_vm1, %v3843_v50, %v3844_v14  ;;  %v3776_v50 = vadd.f32 %v6440_v61, %v6480_v54  ;;  %v3777_v54 = vadd.f32 %v6445_v57, %v6484_v8 }
 0x442   : > { %v3868_v48 = vadd.f32 %v3845_v0, %v3820_v43  ;;  %v3799_v29 = vsel %vm848_vm0, %v3796_v56, %v3798_v47 }
 0x443   : > { %v3821_v21 = vadd.f32 %v3799_v29, %v3773_v59 }
 0x444   : > { %v3880_v22 = vmul.f32 %v6492_v4, %v3868_v48 }
 0x446   : > { %v3892_v55 = vadd.f32 %v6498_v32, %v3880_v22  ;;  %v3748_v10 = vpop.f32.mrf.mxu2 }
 0x447   : > { %v3846_v3 = vrot.slane %v3748_v10, 2  ;;  %v3705_v60 = vpop.f32.mrf.mxu1 }
 0x448   : > { %v3900_v2 = vmax.f32 %v3892_v55, 0.0 }
 0x449   : > { %v3847_v62 = vsel %vm970_vm1, %v3844_v14, %v3846_v3 }
 0x44a   : > { %3908 = vst [vmem:[%s5415_s18 + $0x10] sm:$0xff] %v3900_v2  ;;  %v3869_v20 = vadd.f32 %v3847_v62, %v3821_v21 }
 0x44c   : > { %v3881_v52 = vmul.f32 %v6492_v4, %v3869_v20 }
 0x44e   : > { %v3893_v7 = vadd.f32 %v6498_v32, %v3881_v52  ;;  %v3750_v6 = vpop.f32.mrf.mxu2 }
 0x44f   : > { %v3707_v5 = vpop.f32.mrf.mxu1 }
 0x450   : > { %v3901_v13 = vmax.f32 %v3893_v7, 0.0  ;;  %v3800_v23 = vrot.slane %v3707_v5, 1 }
 0x452   : > { %3909 = vst [vmem:[%s5415_s18 + $0x18] sm:$0xff] %v3901_v13 }
 0x456   : > { %v3752_v15 = vpop.f32.mrf.mxu2 }
 0x457   : > { %v3709_v1 = vpop.f32.mrf.mxu1  ;;  %v3848_v53 = vrot.slane %v3752_v15, 2 }
 0x458   : > { %v3801_v36 = vrot.slane %v3709_v1, 1 }
 0x45a   : > { %v3802_v33 = vsel %vm848_vm0, %v3800_v23, %v3801_v36 }
 0x45b   : > { %v3822_v39 = vadd.f32 %v3802_v33, %v3774_v12 }
 0x45e   : > { %v3754_v58 = vpop.f32.mrf.mxu2 }
 0x45f   : > { %v3849_v24 = vrot.slane %v3754_v58, 2  ;;  %v3712_v19 = vpop.f32.mrf.mxu1 }
 0x460   : > { %v3803_v30 = vrot.slane %v3712_v19, 1 }
 0x461   : > { %v3850_v45 = vsel %vm970_vm1, %v3848_v53, %v3849_v24 }
 0x462   : > { %v3870_v26 = vadd.f32 %v3850_v45, %v3822_v39  ;;  %v3804_v46 = vsel %vm848_vm0, %v3801_v36, %v3803_v30 }
 0x463   : > { %v3823_v40 = vadd.f32 %v3804_v46, %v3775_v11 }
 0x464   : > { %v3882_v63 = vmul.f32 %v6492_v4, %v3870_v26 }
 0x466   : > { %v3894_v16 = vadd.f32 %v6498_v32, %v3882_v63  ;;  %v3757_v31 = vpop.f32.mrf.mxu2 }
 0x467   : > { %v3851_v28 = vrot.slane %v3757_v31, 2  ;;  %v3714_v37 = vpop.f32.mrf.mxu1 }
 0x468   : > { %v3902_v44 = vmax.f32 %v3894_v16, 0.0 }
 0x469   : > { %v3852_v41 = vsel %vm970_vm1, %v3849_v24, %v3851_v28 }
 0x46a   : > { %3910 = vst [vmem:[%s5415_s18 + $0x20] sm:$0xff] %v3902_v44  ;;  %v3871_v49 = vadd.f32 %v3852_v41, %v3823_v40 }
 0x46c   : > { %v3883_v42 = vmul.f32 %v6492_v4, %v3871_v49 }
 0x46e   : > { %v3895_v9 = vadd.f32 %v6498_v32, %v3883_v42  ;;  %v3759_v35 = vpop.f32.mrf.mxu2 }
 0x46f   : > { %v3716_v56 = vpop.f32.mrf.mxu1 }
 0x470   : > { %v3903_v18 = vmax.f32 %v3895_v9, 0.0  ;;  %v3805_v17 = vrot.slane %v3716_v56, 1 }
 0x472   : > { %3911 = vst [vmem:[%s5415_s18 + $0x28] sm:$0xff] %v3903_v18 }
 0x476   : > { %v3761_v25 = vpop.f32.mrf.mxu2 }
 0x477   : > { %v3718_v27 = vpop.f32.mrf.mxu1  ;;  %v3853_v34 = vrot.slane %v3761_v25, 2 }
 0x478   : > { %v3806_v38 = vrot.slane %v3718_v27, 1 }
 0x47a   : > { %v3807_v51 = vsel %vm848_vm0, %v3805_v17, %v3806_v38 }
 0x47b   : > { %v3824_v47 = vadd.f32 %v3807_v51, %v3776_v50 }
 0x47e   : > { %v3763_v14 = vpop.f32.mrf.mxu2 }
 0x47f   : > { %v3854_v43 = vrot.slane %v3763_v14, 2  ;;  %v3721_v0 = vpop.f32.mrf.mxu1 }
 0x480   : > { %v3808_v22 = vrot.slane %v3721_v0, 1 }
 0x481   : > { %v3855_v48 = vsel %vm970_vm1, %v3853_v34, %v3854_v43 }
 0x482   : > { %v3872_v29 = vadd.f32 %v3855_v48, %v3824_v47  ;;  %v3809_v59 = vsel %vm848_vm0, %v3806_v38, %v3808_v22 }
 0x483   : > { %v3825_v21 = vadd.f32 %v3809_v59, %v3777_v54 }
 0x484   : > { %v3884_v55 = vmul.f32 %v6492_v4, %v3872_v29 }
 0x486   : > { %v3896_v61 = vadd.f32 %v6498_v32, %v3884_v55  ;;  %v3766_v10 = vpop.f32.mrf.mxu2 }
 0x487   : > { %v3856_v3 = vrot.slane %v3766_v10, 2  ;;  %v3723_v60 = vpop.f32.mrf.mxu1 }
 0x488   : > { %v3904_v2 = vmax.f32 %v3896_v61, 0.0 }
 0x489   : > { %v3857_v62 = vsel %vm970_vm1, %v3854_v43, %v3856_v3 }
 0x48a   : > { %3912 = vst [vmem:[%s5415_s18 + $0x30] sm:$0xff] %v3904_v2  ;;  %v3873_v20 = vadd.f32 %v3857_v62, %v3825_v21 }
 0x48c   : > { %v3885_v52 = vmul.f32 %v6492_v4, %v3873_v20 }
 0x48e   : > { %v3897_v57 = vadd.f32 %v6498_v32, %v3885_v52  ;;  %v3768_v8 = vpop.f32.mrf.mxu2 }
 0x490   : > { %v3905_v7 = vmax.f32 %v3897_v57, 0.0 }
 0x492   : > { %3913 = vst [vmem:[%s5415_s18 + $0x38] sm:$0xff] %v3905_v7 }
 0x493   : > { %5157 = shalt.err (!%p5154_p7)
}
 0x494   : > { %s5242_s18 = smov 128   ;;  %s5243_s12 = smov 8  }
 0x495   : > { %4908 = dma.vmem_to_hbm [thread:$0]  (%p5336_p3), %s3931_s29, 1024, %s3933_s19, %s3915_s11, %s5242_s18, %s5242_s18, %s5243_s12  }
 0x496 PF: > { %s6668_s22 = sld [smem:[#allocation24_spill]]  ;;  %p4927_p9 = scmp.ge.s32.totalorder %s5234_s8, 2 }
 0x497   : > { %s3947_s9 = sand.u32 1, %s5206_s24  }
 0x498   : > { %s3948_s27 = scalar_lea.sflag [#allocation6], %s3947_s9 }
 0x49c   : > { %p6669_p10 = scmp.ne.s32.totalorder %s6668_s22, 0 }
 0x49e   : > { %p4918_p11 = pnand %p4927_p9, %p6669_p10 }
 0x4a0   : > { %p4919_p12 = pneg %p4918_p11 }
 0x4a2   : > { %5201 = dma.done.wait (%p4919_p12), %s3948_s27, 1024  }
 0x4a3   : > { %5203 = vsyncadd (%p4919_p12), %s3948_s27, 4294966272  ;;  %s22_s8 = sadd.s32 1, %s5234_s8   ;;  %s6670_s27 = sld [smem:[#allocation20_spill]] }
 0x4a4   : > { %p19_p0 = scmp.ge.s32.totalorder %s22_s8, 10   ;;  %s6671_s28 = sld [smem:[#allocation21_spill]] }
 0x4a5   : > { %s6672_s29 = sld [smem:[#allocation22_spill]]  ;;  %s6674_s24 = smov %s5210_s25 }
 0x4a6   : > { %s6673_s30 = sld [smem:[#allocation23_spill]]  ;;  %s6675_s25 = smov %s5214_s26 }
 0x4a7   : > { %s6676_s26 = smov %s5366_s10  ;;  %21 = sbr.rel (!%p19_p0) target bundleno = 9 (0x9), region = 112 }
 0x4ac   :  { %3954 = vsyncpa [#allocation5], 1 }
 0x4ad   :  { %3956 = vsyncpa [#allocation5 + $0x1], 1 }
 0x4ae   :  { %3957 = vsyncpa [#allocation8], 1 }
 0x4af   :  { %3958 = vsyncpa [#allocation6], 1 }
 0x4b0   :  { %3960 = vsyncpa [#allocation6 + $0x1], 1 }
 0x4b1   :  { %3961 = vsyncmov [#allocation3] }
 0x4b4   :  { %s3962_s15 = vpop.sfrf %3961 }
 0x4b5   :  { %p4713_p3 = scmp.ne.s32.totalorder %s3962_s15, 0 }
 0x4b7   :  { %3966 = shalt.err (%p4713_p3)  }
 0x4b8   :  { %3968 = vsyncmov [#allocation3 + $0x1] }
 0x4bb   :  { %s3969_s10 = vpop.sfrf %3968 }
 0x4bc   :  { %p4714_p1 = scmp.ne.s32.totalorder %s3969_s10, 0 }
 0x4be   :  { %3973 = shalt.err (%p4714_p1)  }

</bundles_post_ra>
